<compile_context>
chip_gen: v6e
topology: v6e:2x2x1
jax: 0.10.0
libtpu: 0.0.40
codegen_flags: <defaults>
</compile_context>

<pallas_src>
import functools

import jax
import jax.numpy as jnp
from jax.experimental import pallas as pl
from jax.experimental.pallas import tpu as pltpu

# CNNModel hyper-parameters (fixed by the PyTorch spec).
K1, K2, K3 = 7, 5, 3          # conv kernel sizes
P1, P2, P3 = 3, 2, 1          # 'same' paddings
C1, C2, C3 = 64, 128, 256     # conv output channels
H1, H2 = 512, 128             # fc hidden sizes
BN_EPS = 1e-5


# ---------------------------------------------------------------------------
# Single fused kernel: conv1/2/3 (+BN+ReLU+pool) + 3-layer MLP head.
# ---------------------------------------------------------------------------
def _fused_forward_kernel(
    x1_ref,    # (B*L0, K1)        f32   conv1 im2col (zero padding already applied)
    w1_ref,    # (K1, C1)          bf16  conv1 weight, BN scale folded
    s1_ref,    # (1, C1)           f32   conv1 bias + BN shift
    w2_ref,    # (K2, C1, C2)      bf16  conv2 per-tap weights
    s2_ref,    # (1, C2)           f32
    w3_ref,    # (K3, C2, C3)      bf16  conv3 per-tap weights
    s3_ref,    # (1, C3)           f32
    fw1_hbm,   # (L3*C3, H1)       bf16  fc1 weight (HBM, pl.ANY) — fetched via async DMA
    fb1_ref,   # (1, H1)           f32
    fw2_hbm,   # (H1, H2)          bf16  fc2 weight (HBM, pl.ANY)
    fb2_ref,   # (1, H2)           f32
    fw3_ref,   # (1, H2)           f32
    fb3_ref,   # (1, 1)            f32   (SMEM scalar)
    o_ref,     # (B, 128)          f32   lane-dense output slab; column 0 holds the result
    p1_ref,    # (B, L1+2*P2, C1)  f32   VMEM scratch: padded, pooled conv1 output
    p2_ref,    # (B, L2+2*P3, C2)  f32   VMEM scratch: padded, pooled conv2 output
    fw1_vmem,  # (L3*C3, H1)       bf16  VMEM landing buffer for fc1 weight
    fw2_vmem,  # (H1, H2)          bf16  VMEM landing buffer for fc2 weight
    fc_sem,    # (2,)              DMA semaphores
    *,
    B, L0,
):
    L1, L2, L3 = L0 // 2, L0 // 4, L0 // 8
    f32, bf16 = jnp.float32, jnp.bfloat16

    # Kick off the FC-weight fetches immediately: they complete under the conv matmuls
    # instead of serializing before any compute.
    fw1_cp = pltpu.make_async_copy(fw1_hbm, fw1_vmem, fc_sem.at[0])
    fw2_cp = pltpu.make_async_copy(fw2_hbm, fw2_vmem, fc_sem.at[1])
    fw1_cp.start()
    fw2_cp.start()

    def maxpool2(v, c):
        # MaxPool1d(kernel=2, stride=2) over adjacent (batch-major) rows:
        # (N, c) -> (N//2, c) as a max of even/odd sublane rows (no lane folding).
        v3 = v.reshape(v.shape[0] // 2, 2, c)
        return jnp.maximum(v3[:, 0, :], v3[:, 1, :])

    # ---- conv1 + BN + ReLU + pool (single small im2col matmul, Cin=1) --------
    h = jnp.dot(x1_ref[...].astype(bf16), w1_ref[...], preferred_element_type=f32)
    h = jnp.maximum(h + s1_ref[...], 0.0)                 # (B*L0, C1)
    q1 = maxpool2(h, C1)                                  # (B*L1, C1)

    # Padded pooled activation in VMEM scratch; only the 2*P2 pad rows are zeroed
    # (no redundant full-tile zero store).
    p1_ref[:, :P2, :] = jnp.zeros((B, P2, C1), f32)
    p1_ref[:, P2 + L1:, :] = jnp.zeros((B, P2, C1), f32)
    p1_ref[:, P2:P2 + L1, :] = q1.reshape(B, L1, C1)

    # ---- conv2 + BN + ReLU + pool: tap-summed matmuls (no 320-lane concat) ----
    h = None
    for k in range(K2):
        xk = p1_ref[:, k:k + L1, :].reshape(B * L1, C1).astype(bf16)
        d = jnp.dot(xk, w2_ref[k], preferred_element_type=f32)
        h = d if h is None else h + d
    h = jnp.maximum(h + s2_ref[...], 0.0)                 # (B*L1, C2)
    q2 = maxpool2(h, C2)                                  # (B*L2, C2)

    p2_ref[:, :P3, :] = jnp.zeros((B, P3, C2), f32)
    p2_ref[:, P3 + L2:, :] = jnp.zeros((B, P3, C2), f32)
    p2_ref[:, P3:P3 + L2, :] = q2.reshape(B, L2, C2)

    # ---- conv3 + BN + ReLU + pool: tap-summed matmuls (no 384-lane concat) ----
    h = None
    for k in range(K3):
        xk = p2_ref[:, k:k + L2, :].reshape(B * L2, C2).astype(bf16)
        d = jnp.dot(xk, w3_ref[k], preferred_element_type=f32)
        h = d if h is None else h + d
    h = jnp.maximum(h + s3_ref[...], 0.0)                 # (B*L2, C3)
    q3 = maxpool2(h, C3)                                  # (B*L3, C3)

    # ---- flatten (channels-last; fc1 rows were pre-permuted to match) --------
    feat = q3.reshape(B, L3 * C3)

    # ---- MLP head -------------------------------------------------------------
    # TODO(synk): Dropout(0.5)/Dropout(0.3) are identity in eval mode; training-mode
    #             dropout / batch statistics are not implemented.
    fw1_cp.wait()   # fc1 weight landed while the convs ran
    z = jnp.dot(feat.astype(bf16), fw1_vmem[...], preferred_element_type=f32)
    z = jnp.maximum(z + fb1_ref[...], 0.0)
    fw2_cp.wait()
    z = jnp.dot(z.astype(bf16), fw2_vmem[...], preferred_element_type=f32)
    z = jnp.maximum(z + fb2_ref[...], 0.0)
    # Final Linear(128, 1) as a lane reduction (avoids an N=1 matmul).
    y = jnp.sum(z * fw3_ref[...], axis=1, keepdims=True) + fb3_ref[0, 0]    # (B, 1)
    o_ref[...] = jnp.broadcast_to(y, (B, o_ref.shape[1]))


def _full_spec(shape):
    zero = (0,) * len(shape)
    return pl.BlockSpec(shape, lambda i, _z=zero: _z)


def cnn_forward(prepared, x):
    """x: (B, input_size) float32 -> (B, 1) float32. Single fused Pallas kernel."""
    B, L0 = x.shape
    # MaxPool1d(2,2) is applied 3 times; every intermediate length must stay even.
    assert L0 % 8 == 0, f"input_size must be a multiple of 8, got {L0}"
    L1, L2, L3 = L0 // 2, L0 // 4, L0 // 8
    assert prepared["fw1"].shape[0] == L3 * C3, "fc1 weight does not match input_size"

    # conv1 im2col (Cin=1): (B*L0, K1) block, 'same' zero padding folded in.
    # TODO(synk): for large input_size, pass lane-dense x_pad and form the 7 taps
    #             in-kernel; at B*L0=128 this transfer is noise.
    x_pad = jnp.pad(x, ((0, 0), (P1, P1)))
    x1 = jnp.stack([x_pad[:, k:k + L0] for k in range(K1)], axis=-1).reshape(B * L0, K1)

    kernel = functools.partial(_fused_forward_kernel, B=B, L0=L0)

    out = pl.pallas_call(
        kernel,
        out_shape=jax.ShapeDtypeStruct((B, 128), jnp.float32),
        grid=(1,),   # the whole problem fits comfortably in VMEM at this scale
        in_specs=[
            _full_spec((B * L0, K1)),
            _full_spec((K1, C1)), _full_spec((1, C1)),
            _full_spec((K2, C1, C2)), _full_spec((1, C2)),
            _full_spec((K3, C2, C3)), _full_spec((1, C3)),
            pl.BlockSpec(memory_space=pl.ANY),                   # fw1 stays in HBM
            _full_spec((1, H1)),
            pl.BlockSpec(memory_space=pl.ANY),                   # fw2 stays in HBM
            _full_spec((1, H2)),
            _full_spec((1, H2)),
            pl.BlockSpec(memory_space=pltpu.MemorySpace.SMEM),   # fc3 bias scalar
        ],
        out_specs=_full_spec((B, 128)),
        scratch_shapes=[
            pltpu.VMEM((B, L1 + 2 * P2, C1), jnp.float32),
            pltpu.VMEM((B, L2 + 2 * P3, C2), jnp.float32),
            pltpu.VMEM((L3 * C3, H1), jnp.bfloat16),
            pltpu.VMEM((H1, H2), jnp.bfloat16),
            pltpu.SemaphoreType.DMA((2,)),
        ],
        compiler_params=pltpu.CompilerParams(
            dimension_semantics=("arbitrary",),
            vmem_limit_bytes=32 * 1024 * 1024,   # explicit budget; fits v5e/v6e/v7x
        ),
    )(
        x1,
        prepared["w1"], prepared["s1"],
        prepared["w2"], prepared["s2"],
        prepared["w3"], prepared["s3"],
        prepared["fw1"], prepared["fb1"],
        prepared["fw2"], prepared["fb2"],
        prepared["fw3"], prepared["fb3"],
    )
    # Output was written as a lane-dense 128-wide slab; the model result is column 0.
    return out[:, :1]


# ---------------------------------------------------------------------------
# One-time parameter preparation (outside the per-call path).
# ---------------------------------------------------------------------------
def _fold_conv_bn(w, b, gamma, beta, mean, var, eps=BN_EPS):
    """PyTorch Conv1d weight (Cout, Cin, K) + eval-mode BatchNorm1d ->
    fused per-tap (K, Cin, Cout) bf16 weight and (1, Cout) f32 shift."""
    cout, cin, k = w.shape
    s = gamma / jnp.sqrt(var + eps)
    w_taps = jnp.transpose(w * s[:, None, None], (2, 1, 0))   # (K, Cin, Cout)
    shift = ((b - mean) * s + beta).reshape(1, cout)
    return w_taps.astype(jnp.bfloat16), shift.astype(jnp.float32)


def prepare_params(params):
    """Fold BN into conv weights, reshape per-tap, pre-transpose / row-permute the
    FC weights for the kernel's channels-last flatten, cast weights to bf16."""
    c1, c2, c3 = params["conv1"], params["conv2"], params["conv3"]
    w1, s1 = _fold_conv_bn(c1["w"], c1["b"], c1["gamma"], c1["beta"], c1["mean"], c1["var"])
    w2, s2 = _fold_conv_bn(c2["w"], c2["b"], c2["gamma"], c2["beta"], c2["mean"], c2["var"])
    w3, s3 = _fold_conv_bn(c3["w"], c3["b"], c3["gamma"], c3["beta"], c3["mean"], c3["var"])

    feat = params["feature_size"]
    l3 = feat // C3
    # PyTorch flattens (B, C3, L3) channel-major (c*L3 + l); the kernel flattens
    # channels-last (l*C3 + c).  Permute fc1 rows once here instead of relayouting the
    # fc1 weight (or transposing activations) on every call.
    fw1 = params["fc1_w"].T.reshape(C3, l3, H1).transpose(1, 0, 2).reshape(feat, H1)

    return dict(
        w1=w1.reshape(K1, C1), s1=s1,          # Cin=1 squeezed for conv1's im2col matmul
        w2=w2, s2=s2, w3=w3, s3=s3,
        fw1=fw1.astype(jnp.bfloat16),
        fb1=params["fc1_b"].reshape(1, H1).astype(jnp.float32),
        fw2=params["fc2_w"].T.astype(jnp.bfloat16),
        fb2=params["fc2_b"].reshape(1, H2).astype(jnp.float32),
        fw3=params["fc3_w"].reshape(1, H2).astype(jnp.float32),
        fb3=params["fc3_b"].reshape(1, 1).astype(jnp.float32),
    )


# ---------------------------------------------------------------------------
# Parameter construction (deterministic, mirroring _initialize_weights).
# ---------------------------------------------------------------------------
def make_params(key, input_size):
    def conv_out(n, k, s=1, p=0):
        return (n + 2 * p - k) // s + 1

    feat = input_size
    feat = conv_out(feat, 7, 1, 3); feat = conv_out(feat, 2, 2, 0)
    feat = conv_out(feat, 5, 1, 2); feat = conv_out(feat, 2, 2, 0)
    feat = conv_out(feat, 3, 1, 1); feat = conv_out(feat, 2, 2, 0)
    feat *= 256

    ks = jax.random.split(key, 6)

    def kaiming_conv(k, cout, cin, ksz):
        std = (2.0 / (cout * ksz)) ** 0.5           # kaiming_normal_, fan_out, relu
        return std * jax.random.normal(k, (cout, cin, ksz), jnp.float32)

    def bn(c):
        return dict(gamma=jnp.ones((c,), jnp.float32), beta=jnp.zeros((c,), jnp.float32),
                    mean=jnp.zeros((c,), jnp.float32), var=jnp.ones((c,), jnp.float32))

    return dict(
        conv1=dict(w=kaiming_conv(ks[0], 64, 1, 7), b=jnp.zeros((64,), jnp.float32), **bn(64)),
        conv2=dict(w=kaiming_conv(ks[1], 128, 64, 5), b=jnp.zeros((128,), jnp.float32), **bn(128)),
        conv3=dict(w=kaiming_conv(ks[2], 256, 128, 3), b=jnp.zeros((256,), jnp.float32), **bn(256)),
        fc1_w=0.01 * jax.random.normal(ks[3], (512, feat), jnp.float32),   # PyTorch (out, in)
        fc1_b=jnp.zeros((512,), jnp.float32),
        fc2_w=0.01 * jax.random.normal(ks[4], (128, 512), jnp.float32),
        fc2_b=jnp.zeros((128,), jnp.float32),
        fc3_w=0.01 * jax.random.normal(ks[5], (1, 128), jnp.float32),
        fc3_b=jnp.zeros((1,), jnp.float32),
        feature_size=feat,
    )


if __name__ == "__main__":
    input_size = 64
    batch = 2
    key = jax.random.PRNGKey(0)
    k_x, k_p = jax.random.split(key)
    x = jax.random.normal(k_x, (batch, input_size), jnp.float32)

    params = make_params(k_p, input_size)
    prepared = prepare_params(params)          # one-time weight prep, not per-call

    fwd = jax.jit(cnn_forward)
    out = jax.block_until_ready(fwd(prepared, x))
    assert out.shape == (batch, 1), out.shape
    print("KERNEL_OK")
</pallas_src>

<mosaic_0001>
module attributes {stable_mosaic.version = 11 : i64} {
  func.func @_fused_forward_kernel(%arg0: i32, %arg1: memref<128x7xf32, #tpu.memory_space<vmem>>, %arg2: memref<7x64xbf16, #tpu.memory_space<vmem>>, %arg3: memref<1x64xf32, #tpu.memory_space<vmem>>, %arg4: memref<5x64x128xbf16, #tpu.memory_space<vmem>>, %arg5: memref<1x128xf32, #tpu.memory_space<vmem>>, %arg6: memref<3x128x256xbf16, #tpu.memory_space<vmem>>, %arg7: memref<1x256xf32, #tpu.memory_space<vmem>>, %arg8: memref<2048x512xbf16, #tpu.memory_space<any>>, %arg9: memref<1x512xf32, #tpu.memory_space<vmem>>, %arg10: memref<512x128xbf16, #tpu.memory_space<any>>, %arg11: memref<1x128xf32, #tpu.memory_space<vmem>>, %arg12: memref<1x128xf32, #tpu.memory_space<vmem>>, %arg13: memref<1x1xf32, #tpu.memory_space<smem>>, %arg14: memref<2x128xf32, #tpu.memory_space<vmem>>, %arg15: memref<2x36x64xf32, #tpu.memory_space<vmem>>, %arg16: memref<2x18x128xf32, #tpu.memory_space<vmem>>, %arg17: memref<2048x512xbf16, #tpu.memory_space<vmem>>, %arg18: memref<512x128xbf16, #tpu.memory_space<vmem>>, %arg19: memref<2x!tpu.dma_semaphore, #tpu.memory_space<semaphore_mem>>) attributes {dimension_semantics = [#tpu.dimension_semantics<arbitrary>], iteration_bounds = array<i64: 1>, scalar_prefetch = 0 : i64, scratch_operands = 5 : i64, tpu.core_type = #tpu.core_type<tc>, window_params = [{pipeline_mode = #tpu.pipeline_mode<synchronous>, transform_indices = @transform_0, window_bounds = array<i64: 128, 7>}, {pipeline_mode = #tpu.pipeline_mode<synchronous>, transform_indices = @transform_1, window_bounds = array<i64: 7, 64>}, {pipeline_mode = #tpu.pipeline_mode<synchronous>, transform_indices = @transform_2, window_bounds = array<i64: 1, 64>}, {pipeline_mode = #tpu.pipeline_mode<synchronous>, transform_indices = @transform_3, window_bounds = array<i64: 5, 64, 128>}, {pipeline_mode = #tpu.pipeline_mode<synchronous>, transform_indices = @transform_4, window_bounds = array<i64: 1, 128>}, {pipeline_mode = #tpu.pipeline_mode<synchronous>, transform_indices = @transform_5, window_bounds = array<i64: 3, 128, 256>}, {pipeline_mode = #tpu.pipeline_mode<synchronous>, transform_indices = @transform_6, window_bounds = array<i64: 1, 256>}, {}, {pipeline_mode = #tpu.pipeline_mode<synchronous>, transform_indices = @transform_8, window_bounds = array<i64: 1, 512>}, {}, {pipeline_mode = #tpu.pipeline_mode<synchronous>, transform_indices = @transform_10, window_bounds = array<i64: 1, 128>}, {pipeline_mode = #tpu.pipeline_mode<synchronous>, transform_indices = @transform_11, window_bounds = array<i64: 1, 128>}, {transform_indices = @transform_12, window_bounds = array<i64: 1, 1>}, {pipeline_mode = #tpu.pipeline_mode<synchronous>, transform_indices = @transform_13, window_bounds = array<i64: 2, 128>}]} {
    %c0_i32 = arith.constant 0 : i32
    %0 = tpu.memref_slice %arg19[%c0_i32] : memref<2x!tpu.dma_semaphore, #tpu.memory_space<semaphore_mem>> -> memref<1x!tpu.dma_semaphore, #tpu.memory_space<semaphore_mem>>
    %1 = tpu.memref_squeeze %0 : memref<1x!tpu.dma_semaphore, #tpu.memory_space<semaphore_mem>> -> memref<!tpu.dma_semaphore, #tpu.memory_space<semaphore_mem>>
    tpu.enqueue_dma source(%arg8 : memref<2048x512xbf16, #tpu.memory_space<any>>) target(%arg17 : memref<2048x512xbf16, #tpu.memory_space<vmem>>) target_semaphore(%1 : memref<!tpu.dma_semaphore, #tpu.memory_space<semaphore_mem>>)
    %c1_i32 = arith.constant 1 : i32
    %2 = tpu.memref_slice %arg19[%c1_i32] : memref<2x!tpu.dma_semaphore, #tpu.memory_space<semaphore_mem>> -> memref<1x!tpu.dma_semaphore, #tpu.memory_space<semaphore_mem>>
    %3 = tpu.memref_squeeze %2 : memref<1x!tpu.dma_semaphore, #tpu.memory_space<semaphore_mem>> -> memref<!tpu.dma_semaphore, #tpu.memory_space<semaphore_mem>>
    tpu.enqueue_dma source(%arg10 : memref<512x128xbf16, #tpu.memory_space<any>>) target(%arg18 : memref<512x128xbf16, #tpu.memory_space<vmem>>) target_semaphore(%3 : memref<!tpu.dma_semaphore, #tpu.memory_space<semaphore_mem>>)
    %c0 = arith.constant 0 : index
    %c0_0 = arith.constant 0 : index
    %4 = vector.load %arg1[%c0, %c0_0] : memref<128x7xf32, #tpu.memory_space<vmem>>, vector<128x7xf32>
    %5 = arith.truncf %4 : vector<128x7xf32> to vector<128x7xbf16>
    %c0_1 = arith.constant 0 : index
    %c0_2 = arith.constant 0 : index
    %6 = vector.load %arg2[%c0_1, %c0_2] : memref<7x64xbf16, #tpu.memory_space<vmem>>, vector<7x64xbf16>
    %cst = arith.constant dense<0.000000e+00> : vector<128x64xf32>
    %7 = tpu.matmul %5, %6, %cst {dimension_numbers = #tpu.dot_dimension_numbers<[1], [0], [0], [1], [0, 0, 1, 1], [], []>} : vector<128x7xbf16>, vector<7x64xbf16>, vector<128x64xf32> -> vector<128x64xf32>
    %c0_3 = arith.constant 0 : index
    %c0_4 = arith.constant 0 : index
    %8 = vector.load %arg3[%c0_3, %c0_4] : memref<1x64xf32, #tpu.memory_space<vmem>>, vector<1x64xf32>
    %9 = vector.broadcast %8 : vector<1x64xf32> to vector<128x64xf32>
    %10 = arith.addf %7, %9 : vector<128x64xf32>
    %cst_5 = arith.constant 0.000000e+00 : f32
    %11 = vector.broadcast %cst_5 : f32 to vector<128x64xf32>
    %12 = arith.maximumf %10, %11 : vector<128x64xf32>
    %13 = vector.shape_cast %12 : vector<128x64xf32> to vector<64x2x64xf32>
    %14 = vector.extract_strided_slice %13 {offsets = [0, 0, 0], sizes = [64, 1, 64], strides = [1, 1, 1]} : vector<64x2x64xf32> to vector<64x1x64xf32>
    %15 = vector.shape_cast %14 : vector<64x1x64xf32> to vector<64x64xf32>
    %16 = vector.extract_strided_slice %13 {offsets = [0, 1, 0], sizes = [64, 1, 64], strides = [1, 1, 1]} : vector<64x2x64xf32> to vector<64x1x64xf32>
    %17 = vector.shape_cast %16 : vector<64x1x64xf32> to vector<64x64xf32>
    %18 = arith.maximumf %15, %17 : vector<64x64xf32>
    %cst_6 = arith.constant 0.000000e+00 : f32
    %19 = vector.broadcast %cst_6 : f32 to vector<2x2x64xf32>
    %c0_7 = arith.constant 0 : index
    %c0_8 = arith.constant 0 : index
    %c0_9 = arith.constant 0 : index
    %20 = vector.load %arg15[%c0_7, %c0_8, %c0_9] : memref<2x36x64xf32, #tpu.memory_space<vmem>>, vector<2x2x64xf32>
    tpu.vector_store %arg15[%c0_7, %c0_8, %c0_9], %19 {strides = array<i32>} : memref<2x36x64xf32, #tpu.memory_space<vmem>>, vector<2x2x64xf32>,
    %cst_10 = arith.constant 0.000000e+00 : f32
    %21 = vector.broadcast %cst_10 : f32 to vector<2x2x64xf32>
    %c0_11 = arith.constant 0 : index
    %c34 = arith.constant 34 : index
    %c0_12 = arith.constant 0 : index
    %22 = vector.load %arg15[%c0_11, %c34, %c0_12] : memref<2x36x64xf32, #tpu.memory_space<vmem>>, vector<2x2x64xf32>
    tpu.vector_store %arg15[%c0_11, %c34, %c0_12], %21 {strides = array<i32>} : memref<2x36x64xf32, #tpu.memory_space<vmem>>, vector<2x2x64xf32>,
    %23 = vector.shape_cast %18 : vector<64x64xf32> to vector<2x32x64xf32>
    %c0_13 = arith.constant 0 : index
    %c2 = arith.constant 2 : index
    %c0_14 = arith.constant 0 : index
    %24 = vector.load %arg15[%c0_13, %c2, %c0_14] : memref<2x36x64xf32, #tpu.memory_space<vmem>>, vector<2x32x64xf32>
    tpu.vector_store %arg15[%c0_13, %c2, %c0_14], %23 {strides = array<i32>} : memref<2x36x64xf32, #tpu.memory_space<vmem>>, vector<2x32x64xf32>,
    %c0_15 = arith.constant 0 : index
    %c0_16 = arith.constant 0 : index
    %c0_17 = arith.constant 0 : index
    %25 = vector.load %arg15[%c0_15, %c0_16, %c0_17] : memref<2x36x64xf32, #tpu.memory_space<vmem>>, vector<2x32x64xf32>
    %26 = vector.shape_cast %25 : vector<2x32x64xf32> to vector<64x64xf32>
    %27 = arith.truncf %26 : vector<64x64xf32> to vector<64x64xbf16>
    %c0_18 = arith.constant 0 : index
    %c0_19 = arith.constant 0 : index
    %c0_20 = arith.constant 0 : index
    %28 = vector.load %arg4[%c0_18, %c0_19, %c0_20] : memref<5x64x128xbf16, #tpu.memory_space<vmem>>, vector<1x64x128xbf16>
    %29 = vector.shape_cast %28 : vector<1x64x128xbf16> to vector<64x128xbf16>
    %cst_21 = arith.constant dense<0.000000e+00> : vector<64x128xf32>
    %30 = tpu.matmul %27, %29, %cst_21 {dimension_numbers = #tpu.dot_dimension_numbers<[1], [0], [0], [1], [0, 0, 1, 1], [], []>} : vector<64x64xbf16>, vector<64x128xbf16>, vector<64x128xf32> -> vector<64x128xf32>
    %c0_22 = arith.constant 0 : index
    %c1 = arith.constant 1 : index
    %c0_23 = arith.constant 0 : index
    %31 = vector.load %arg15[%c0_22, %c1, %c0_23] : memref<2x36x64xf32, #tpu.memory_space<vmem>>, vector<2x32x64xf32>
    %32 = vector.shape_cast %31 : vector<2x32x64xf32> to vector<64x64xf32>
    %33 = arith.truncf %32 : vector<64x64xf32> to vector<64x64xbf16>
    %c1_24 = arith.constant 1 : index
    %c0_25 = arith.constant 0 : index
    %c0_26 = arith.constant 0 : index
    %34 = vector.load %arg4[%c1_24, %c0_25, %c0_26] : memref<5x64x128xbf16, #tpu.memory_space<vmem>>, vector<1x64x128xbf16>
    %35 = vector.shape_cast %34 : vector<1x64x128xbf16> to vector<64x128xbf16>
    %cst_27 = arith.constant dense<0.000000e+00> : vector<64x128xf32>
    %36 = tpu.matmul %33, %35, %cst_27 {dimension_numbers = #tpu.dot_dimension_numbers<[1], [0], [0], [1], [0, 0, 1, 1], [], []>} : vector<64x64xbf16>, vector<64x128xbf16>, vector<64x128xf32> -> vector<64x128xf32>
    %37 = arith.addf %30, %36 : vector<64x128xf32>
    %c0_28 = arith.constant 0 : index
    %c2_29 = arith.constant 2 : index
    %c0_30 = arith.constant 0 : index
    %38 = vector.load %arg15[%c0_28, %c2_29, %c0_30] : memref<2x36x64xf32, #tpu.memory_space<vmem>>, vector<2x32x64xf32>
    %39 = vector.shape_cast %38 : vector<2x32x64xf32> to vector<64x64xf32>
    %40 = arith.truncf %39 : vector<64x64xf32> to vector<64x64xbf16>
    %c2_31 = arith.constant 2 : index
    %c0_32 = arith.constant 0 : index
    %c0_33 = arith.constant 0 : index
    %41 = vector.load %arg4[%c2_31, %c0_32, %c0_33] : memref<5x64x128xbf16, #tpu.memory_space<vmem>>, vector<1x64x128xbf16>
    %42 = vector.shape_cast %41 : vector<1x64x128xbf16> to vector<64x128xbf16>
    %cst_34 = arith.constant dense<0.000000e+00> : vector<64x128xf32>
    %43 = tpu.matmul %40, %42, %cst_34 {dimension_numbers = #tpu.dot_dimension_numbers<[1], [0], [0], [1], [0, 0, 1, 1], [], []>} : vector<64x64xbf16>, vector<64x128xbf16>, vector<64x128xf32> -> vector<64x128xf32>
    %44 = arith.addf %37, %43 : vector<64x128xf32>
    %c0_35 = arith.constant 0 : index
    %c3 = arith.constant 3 : index
    %c0_36 = arith.constant 0 : index
    %45 = vector.load %arg15[%c0_35, %c3, %c0_36] : memref<2x36x64xf32, #tpu.memory_space<vmem>>, vector<2x32x64xf32>
    %46 = vector.shape_cast %45 : vector<2x32x64xf32> to vector<64x64xf32>
    %47 = arith.truncf %46 : vector<64x64xf32> to vector<64x64xbf16>
    %c3_37 = arith.constant 3 : index
    %c0_38 = arith.constant 0 : index
    %c0_39 = arith.constant 0 : index
    %48 = vector.load %arg4[%c3_37, %c0_38, %c0_39] : memref<5x64x128xbf16, #tpu.memory_space<vmem>>, vector<1x64x128xbf16>
    %49 = vector.shape_cast %48 : vector<1x64x128xbf16> to vector<64x128xbf16>
    %cst_40 = arith.constant dense<0.000000e+00> : vector<64x128xf32>
    %50 = tpu.matmul %47, %49, %cst_40 {dimension_numbers = #tpu.dot_dimension_numbers<[1], [0], [0], [1], [0, 0, 1, 1], [], []>} : vector<64x64xbf16>, vector<64x128xbf16>, vector<64x128xf32> -> vector<64x128xf32>
    %51 = arith.addf %44, %50 : vector<64x128xf32>
    %c0_41 = arith.constant 0 : index
    %c4 = arith.constant 4 : index
    %c0_42 = arith.constant 0 : index
    %52 = vector.load %arg15[%c0_41, %c4, %c0_42] : memref<2x36x64xf32, #tpu.memory_space<vmem>>, vector<2x32x64xf32>
    %53 = vector.shape_cast %52 : vector<2x32x64xf32> to vector<64x64xf32>
    %54 = arith.truncf %53 : vector<64x64xf32> to vector<64x64xbf16>
    %c4_43 = arith.constant 4 : index
    %c0_44 = arith.constant 0 : index
    %c0_45 = arith.constant 0 : index
    %55 = vector.load %arg4[%c4_43, %c0_44, %c0_45] : memref<5x64x128xbf16, #tpu.memory_space<vmem>>, vector<1x64x128xbf16>
    %56 = vector.shape_cast %55 : vector<1x64x128xbf16> to vector<64x128xbf16>
    %cst_46 = arith.constant dense<0.000000e+00> : vector<64x128xf32>
    %57 = tpu.matmul %54, %56, %cst_46 {dimension_numbers = #tpu.dot_dimension_numbers<[1], [0], [0], [1], [0, 0, 1, 1], [], []>} : vector<64x64xbf16>, vector<64x128xbf16>, vector<64x128xf32> -> vector<64x128xf32>
    %58 = arith.addf %51, %57 : vector<64x128xf32>
    %c0_47 = arith.constant 0 : index
    %c0_48 = arith.constant 0 : index
    %59 = vector.load %arg5[%c0_47, %c0_48] : memref<1x128xf32, #tpu.memory_space<vmem>>, vector<1x128xf32>
    %60 = vector.broadcast %59 : vector<1x128xf32> to vector<64x128xf32>
    %61 = arith.addf %58, %60 : vector<64x128xf32>
    %cst_49 = arith.constant 0.000000e+00 : f32
    %62 = vector.broadcast %cst_49 : f32 to vector<64x128xf32>
    %63 = arith.maximumf %61, %62 : vector<64x128xf32>
    %64 = vector.shape_cast %63 : vector<64x128xf32> to vector<32x2x128xf32>
    %65 = vector.extract_strided_slice %64 {offsets = [0, 0, 0], sizes = [32, 1, 128], strides = [1, 1, 1]} : vector<32x2x128xf32> to vector<32x1x128xf32>
    %66 = vector.shape_cast %65 : vector<32x1x128xf32> to vector<32x128xf32>
    %67 = vector.extract_strided_slice %64 {offsets = [0, 1, 0], sizes = [32, 1, 128], strides = [1, 1, 1]} : vector<32x2x128xf32> to vector<32x1x128xf32>
    %68 = vector.shape_cast %67 : vector<32x1x128xf32> to vector<32x128xf32>
    %69 = arith.maximumf %66, %68 : vector<32x128xf32>
    %cst_50 = arith.constant 0.000000e+00 : f32
    %70 = vector.broadcast %cst_50 : f32 to vector<2x1x128xf32>
    %c0_51 = arith.constant 0 : index
    %c0_52 = arith.constant 0 : index
    %c0_53 = arith.constant 0 : index
    %71 = vector.load %arg16[%c0_51, %c0_52, %c0_53] : memref<2x18x128xf32, #tpu.memory_space<vmem>>, vector<2x1x128xf32>
    tpu.vector_store %arg16[%c0_51, %c0_52, %c0_53], %70 {strides = array<i32>} : memref<2x18x128xf32, #tpu.memory_space<vmem>>, vector<2x1x128xf32>,
    %cst_54 = arith.constant 0.000000e+00 : f32
    %72 = vector.broadcast %cst_54 : f32 to vector<2x1x128xf32>
    %c0_55 = arith.constant 0 : index
    %c17 = arith.constant 17 : index
    %c0_56 = arith.constant 0 : index
    %73 = vector.load %arg16[%c0_55, %c17, %c0_56] : memref<2x18x128xf32, #tpu.memory_space<vmem>>, vector<2x1x128xf32>
    tpu.vector_store %arg16[%c0_55, %c17, %c0_56], %72 {strides = array<i32>} : memref<2x18x128xf32, #tpu.memory_space<vmem>>, vector<2x1x128xf32>,
    %74 = vector.shape_cast %69 : vector<32x128xf32> to vector<2x16x128xf32>
    %c0_57 = arith.constant 0 : index
    %c1_58 = arith.constant 1 : index
    %c0_59 = arith.constant 0 : index
    %75 = vector.load %arg16[%c0_57, %c1_58, %c0_59] : memref<2x18x128xf32, #tpu.memory_space<vmem>>, vector<2x16x128xf32>
    tpu.vector_store %arg16[%c0_57, %c1_58, %c0_59], %74 {strides = array<i32>} : memref<2x18x128xf32, #tpu.memory_space<vmem>>, vector<2x16x128xf32>,
    %c0_60 = arith.constant 0 : index
    %c0_61 = arith.constant 0 : index
    %c0_62 = arith.constant 0 : index
    %76 = vector.load %arg16[%c0_60, %c0_61, %c0_62] : memref<2x18x128xf32, #tpu.memory_space<vmem>>, vector<2x16x128xf32>
    %77 = vector.shape_cast %76 : vector<2x16x128xf32> to vector<32x128xf32>
    %78 = arith.truncf %77 : vector<32x128xf32> to vector<32x128xbf16>
    %c0_63 = arith.constant 0 : index
    %c0_64 = arith.constant 0 : index
    %c0_65 = arith.constant 0 : index
    %79 = vector.load %arg6[%c0_63, %c0_64, %c0_65] : memref<3x128x256xbf16, #tpu.memory_space<vmem>>, vector<1x128x256xbf16>
    %80 = vector.shape_cast %79 : vector<1x128x256xbf16> to vector<128x256xbf16>
    %cst_66 = arith.constant dense<0.000000e+00> : vector<32x256xf32>
    %81 = tpu.matmul %78, %80, %cst_66 {dimension_numbers = #tpu.dot_dimension_numbers<[1], [0], [0], [1], [0, 0, 1, 1], [], []>} : vector<32x128xbf16>, vector<128x256xbf16>, vector<32x256xf32> -> vector<32x256xf32>
    %c0_67 = arith.constant 0 : index
    %c1_68 = arith.constant 1 : index
    %c0_69 = arith.constant 0 : index
    %82 = vector.load %arg16[%c0_67, %c1_68, %c0_69] : memref<2x18x128xf32, #tpu.memory_space<vmem>>, vector<2x16x128xf32>
    %83 = vector.shape_cast %82 : vector<2x16x128xf32> to vector<32x128xf32>
    %84 = arith.truncf %83 : vector<32x128xf32> to vector<32x128xbf16>
    %c1_70 = arith.constant 1 : index
    %c0_71 = arith.constant 0 : index
    %c0_72 = arith.constant 0 : index
    %85 = vector.load %arg6[%c1_70, %c0_71, %c0_72] : memref<3x128x256xbf16, #tpu.memory_space<vmem>>, vector<1x128x256xbf16>
    %86 = vector.shape_cast %85 : vector<1x128x256xbf16> to vector<128x256xbf16>
    %cst_73 = arith.constant dense<0.000000e+00> : vector<32x256xf32>
    %87 = tpu.matmul %84, %86, %cst_73 {dimension_numbers = #tpu.dot_dimension_numbers<[1], [0], [0], [1], [0, 0, 1, 1], [], []>} : vector<32x128xbf16>, vector<128x256xbf16>, vector<32x256xf32> -> vector<32x256xf32>
    %88 = arith.addf %81, %87 : vector<32x256xf32>
    %c0_74 = arith.constant 0 : index
    %c2_75 = arith.constant 2 : index
    %c0_76 = arith.constant 0 : index
    %89 = vector.load %arg16[%c0_74, %c2_75, %c0_76] : memref<2x18x128xf32, #tpu.memory_space<vmem>>, vector<2x16x128xf32>
    %90 = vector.shape_cast %89 : vector<2x16x128xf32> to vector<32x128xf32>
    %91 = arith.truncf %90 : vector<32x128xf32> to vector<32x128xbf16>
    %c2_77 = arith.constant 2 : index
    %c0_78 = arith.constant 0 : index
    %c0_79 = arith.constant 0 : index
    %92 = vector.load %arg6[%c2_77, %c0_78, %c0_79] : memref<3x128x256xbf16, #tpu.memory_space<vmem>>, vector<1x128x256xbf16>
    %93 = vector.shape_cast %92 : vector<1x128x256xbf16> to vector<128x256xbf16>
    %cst_80 = arith.constant dense<0.000000e+00> : vector<32x256xf32>
    %94 = tpu.matmul %91, %93, %cst_80 {dimension_numbers = #tpu.dot_dimension_numbers<[1], [0], [0], [1], [0, 0, 1, 1], [], []>} : vector<32x128xbf16>, vector<128x256xbf16>, vector<32x256xf32> -> vector<32x256xf32>
    %95 = arith.addf %88, %94 : vector<32x256xf32>
    %c0_81 = arith.constant 0 : index
    %c0_82 = arith.constant 0 : index
    %96 = vector.load %arg7[%c0_81, %c0_82] : memref<1x256xf32, #tpu.memory_space<vmem>>, vector<1x256xf32>
    %97 = vector.broadcast %96 : vector<1x256xf32> to vector<32x256xf32>
    %98 = arith.addf %95, %97 : vector<32x256xf32>
    %cst_83 = arith.constant 0.000000e+00 : f32
    %99 = vector.broadcast %cst_83 : f32 to vector<32x256xf32>
    %100 = arith.maximumf %98, %99 : vector<32x256xf32>
    %101 = vector.shape_cast %100 : vector<32x256xf32> to vector<16x2x256xf32>
    %102 = vector.extract_strided_slice %101 {offsets = [0, 0, 0], sizes = [16, 1, 256], strides = [1, 1, 1]} : vector<16x2x256xf32> to vector<16x1x256xf32>
    %103 = vector.shape_cast %102 : vector<16x1x256xf32> to vector<16x256xf32>
    %104 = vector.extract_strided_slice %101 {offsets = [0, 1, 0], sizes = [16, 1, 256], strides = [1, 1, 1]} : vector<16x2x256xf32> to vector<16x1x256xf32>
    %105 = vector.shape_cast %104 : vector<16x1x256xf32> to vector<16x256xf32>
    %106 = arith.maximumf %103, %105 : vector<16x256xf32>
    %107 = vector.shape_cast %106 : vector<16x256xf32> to vector<2x2048xf32>
    %c0_i32_84 = arith.constant 0 : i32
    %108 = tpu.memref_slice %arg19[%c0_i32_84] : memref<2x!tpu.dma_semaphore, #tpu.memory_space<semaphore_mem>> -> memref<1x!tpu.dma_semaphore, #tpu.memory_space<semaphore_mem>>
    %109 = tpu.memref_squeeze %108 : memref<1x!tpu.dma_semaphore, #tpu.memory_space<semaphore_mem>> -> memref<!tpu.dma_semaphore, #tpu.memory_space<semaphore_mem>>
    tpu.wait_dma2 semaphore(%109 : memref<!tpu.dma_semaphore, #tpu.memory_space<semaphore_mem>>) src(%arg8 : memref<2048x512xbf16, #tpu.memory_space<any>>) dst(%arg17 : memref<2048x512xbf16, #tpu.memory_space<vmem>>)
    %110 = arith.truncf %107 : vector<2x2048xf32> to vector<2x2048xbf16>
    %c0_85 = arith.constant 0 : index
    %c0_86 = arith.constant 0 : index
    %111 = vector.load %arg17[%c0_85, %c0_86] : memref<2048x512xbf16, #tpu.memory_space<vmem>>, vector<2048x512xbf16>
    %cst_87 = arith.constant dense<0.000000e+00> : vector<2x512xf32>
    %112 = tpu.matmul %110, %111, %cst_87 {dimension_numbers = #tpu.dot_dimension_numbers<[1], [0], [0], [1], [0, 0, 1, 1], [], []>} : vector<2x2048xbf16>, vector<2048x512xbf16>, vector<2x512xf32> -> vector<2x512xf32>
    %c0_88 = arith.constant 0 : index
    %c0_89 = arith.constant 0 : index
    %113 = vector.load %arg9[%c0_88, %c0_89] : memref<1x512xf32, #tpu.memory_space<vmem>>, vector<1x512xf32>
    %114 = vector.broadcast %113 : vector<1x512xf32> to vector<2x512xf32>
    %115 = arith.addf %112, %114 : vector<2x512xf32>
    %cst_90 = arith.constant 0.000000e+00 : f32
    %116 = vector.broadcast %cst_90 : f32 to vector<2x512xf32>
    %117 = arith.maximumf %115, %116 : vector<2x512xf32>
    %c1_i32_91 = arith.constant 1 : i32
    %118 = tpu.memref_slice %arg19[%c1_i32_91] : memref<2x!tpu.dma_semaphore, #tpu.memory_space<semaphore_mem>> -> memref<1x!tpu.dma_semaphore, #tpu.memory_space<semaphore_mem>>
    %119 = tpu.memref_squeeze %118 : memref<1x!tpu.dma_semaphore, #tpu.memory_space<semaphore_mem>> -> memref<!tpu.dma_semaphore, #tpu.memory_space<semaphore_mem>>
    tpu.wait_dma2 semaphore(%119 : memref<!tpu.dma_semaphore, #tpu.memory_space<semaphore_mem>>) src(%arg10 : memref<512x128xbf16, #tpu.memory_space<any>>) dst(%arg18 : memref<512x128xbf16, #tpu.memory_space<vmem>>)
    %120 = arith.truncf %117 : vector<2x512xf32> to vector<2x512xbf16>
    %c0_92 = arith.constant 0 : index
    %c0_93 = arith.constant 0 : index
    %121 = vector.load %arg18[%c0_92, %c0_93] : memref<512x128xbf16, #tpu.memory_space<vmem>>, vector<512x128xbf16>
    %cst_94 = arith.constant dense<0.000000e+00> : vector<2x128xf32>
    %122 = tpu.matmul %120, %121, %cst_94 {dimension_numbers = #tpu.dot_dimension_numbers<[1], [0], [0], [1], [0, 0, 1, 1], [], []>} : vector<2x512xbf16>, vector<512x128xbf16>, vector<2x128xf32> -> vector<2x128xf32>
    %c0_95 = arith.constant 0 : index
    %c0_96 = arith.constant 0 : index
    %123 = vector.load %arg11[%c0_95, %c0_96] : memref<1x128xf32, #tpu.memory_space<vmem>>, vector<1x128xf32>
    %124 = vector.broadcast %123 : vector<1x128xf32> to vector<2x128xf32>
    %125 = arith.addf %122, %124 : vector<2x128xf32>
    %cst_97 = arith.constant 0.000000e+00 : f32
    %126 = vector.broadcast %cst_97 : f32 to vector<2x128xf32>
    %127 = arith.maximumf %125, %126 : vector<2x128xf32>
    %c0_98 = arith.constant 0 : index
    %c0_99 = arith.constant 0 : index
    %128 = vector.load %arg12[%c0_98, %c0_99] : memref<1x128xf32, #tpu.memory_space<vmem>>, vector<1x128xf32>
    %129 = vector.broadcast %128 : vector<1x128xf32> to vector<2x128xf32>
    %130 = arith.mulf %127, %129 : vector<2x128xf32>
    %cst_100 = arith.constant dense<0.000000e+00> : vector<2xf32>
    %131 = vector.multi_reduction <add>, %130, %cst_100 [1] : vector<2x128xf32> to vector<2xf32>
    %132 = vector.shape_cast %131 : vector<2xf32> to vector<2x1xf32>
    %c0_101 = arith.constant 0 : index
    %c0_102 = arith.constant 0 : index
    %133 = memref.load %arg13[%c0_101, %c0_102] : memref<1x1xf32, #tpu.memory_space<smem>>
    %134 = vector.broadcast %133 : f32 to vector<2x1xf32>
    %135 = arith.addf %132, %134 : vector<2x1xf32>
    %136 = vector.shape_cast %135 : vector<2x1xf32> to vector<2x1xf32>
    %137 = vector.broadcast %136 : vector<2x1xf32> to vector<2x128xf32>
    %c0_103 = arith.constant 0 : index
    %c0_104 = arith.constant 0 : index
    %138 = vector.load %arg14[%c0_103, %c0_104] : memref<2x128xf32, #tpu.memory_space<vmem>>, vector<2x128xf32>
    tpu.vector_store %arg14[%c0_103, %c0_104], %137 {strides = array<i32>} : memref<2x128xf32, #tpu.memory_space<vmem>>, vector<2x128xf32>,
    return
  }
  func.func @transform_0(%arg0: i32) -> (i32, i32) {
    %c0_i32 = arith.constant 0 : i32
    %c0_i32_0 = arith.constant 0 : i32
    %c0_i32_1 = arith.constant 0 : i32
    return %c0_i32, %c0_i32_0 : i32, i32
  }
  func.func @transform_1(%arg0: i32) -> (i32, i32) {
    %c0_i32 = arith.constant 0 : i32
    %c0_i32_0 = arith.constant 0 : i32
    %c0_i32_1 = arith.constant 0 : i32
    return %c0_i32, %c0_i32_0 : i32, i32
  }
  func.func @transform_2(%arg0: i32) -> (i32, i32) {
    %c0_i32 = arith.constant 0 : i32
    %c0_i32_0 = arith.constant 0 : i32
    %c0_i32_1 = arith.constant 0 : i32
    return %c0_i32, %c0_i32_0 : i32, i32
  }
  func.func @transform_3(%arg0: i32) -> (i32, i32, i32) {
    %c0_i32 = arith.constant 0 : i32
    %c0_i32_0 = arith.constant 0 : i32
    %c0_i32_1 = arith.constant 0 : i32
    %c0_i32_2 = arith.constant 0 : i32
    return %c0_i32, %c0_i32_0, %c0_i32_1 : i32, i32, i32
  }
  func.func @transform_4(%arg0: i32) -> (i32, i32) {
    %c0_i32 = arith.constant 0 : i32
    %c0_i32_0 = arith.constant 0 : i32
    %c0_i32_1 = arith.constant 0 : i32
    return %c0_i32, %c0_i32_0 : i32, i32
  }
  func.func @transform_5(%arg0: i32) -> (i32, i32, i32) {
    %c0_i32 = arith.constant 0 : i32
    %c0_i32_0 = arith.constant 0 : i32
    %c0_i32_1 = arith.constant 0 : i32
    %c0_i32_2 = arith.constant 0 : i32
    return %c0_i32, %c0_i32_0, %c0_i32_1 : i32, i32, i32
  }
  func.func @transform_6(%arg0: i32) -> (i32, i32) {
    %c0_i32 = arith.constant 0 : i32
    %c0_i32_0 = arith.constant 0 : i32
    %c0_i32_1 = arith.constant 0 : i32
    return %c0_i32, %c0_i32_0 : i32, i32
  }
  func.func @transform_8(%arg0: i32) -> (i32, i32) {
    %c0_i32 = arith.constant 0 : i32
    %c0_i32_0 = arith.constant 0 : i32
    %c0_i32_1 = arith.constant 0 : i32
    return %c0_i32, %c0_i32_0 : i32, i32
  }
  func.func @transform_10(%arg0: i32) -> (i32, i32) {
    %c0_i32 = arith.constant 0 : i32
    %c0_i32_0 = arith.constant 0 : i32
    %c0_i32_1 = arith.constant 0 : i32
    return %c0_i32, %c0_i32_0 : i32, i32
  }
  func.func @transform_11(%arg0: i32) -> (i32, i32) {
    %c0_i32 = arith.constant 0 : i32
    %c0_i32_0 = arith.constant 0 : i32
    %c0_i32_1 = arith.constant 0 : i32
    return %c0_i32, %c0_i32_0 : i32, i32
  }
  func.func @transform_12(%arg0: i32) -> (i32, i32) {
    %c0_i32 = arith.constant 0 : i32
    %c0_i32_0 = arith.constant 0 : i32
    %c0_i32_1 = arith.constant 0 : i32
    return %c0_i32, %c0_i32_0 : i32, i32
  }
  func.func @transform_13(%arg0: i32) -> (i32, i32) {
    %c0_i32 = arith.constant 0 : i32
    %c0_i32_0 = arith.constant 0 : i32
    %c0_i32_1 = arith.constant 0 : i32
    return %c0_i32, %c0_i32_0 : i32, i32
  }
}

</mosaic_0001>

<bundles_post_ra>
// kernel: cnn_forward.1
= control target key start
LH: loop header
LB: loop body
LE: loop exit
PB: predicated region body
PF: predicated region fallthrough
CT: control target
= control target key end

     0   :  { %19 = vsyncpa [#allocation9], 0  ;;  %s10499_s0 = inlined_call_operand.vmem [shape: f32[128,7], index: 0, kind: input, shape index: {}]   ;;  %s10500_s1 = inlined_call_operand.hbm [shape: bf16[7,64], index: 1, kind: input, shape index: {}]   ;;  %s10501_s2 = inlined_call_operand.hbm [shape: f32[1,64], index: 2, kind: input, shape index: {}]   ;;  %s10502_s3 = inlined_call_operand.hbm [shape: bf16[5,64,128], index: 3, kind: input, shape index: {}]   ;;  %s10503_s4 = inlined_call_operand.hbm [shape: f32[1,128], index: 4, kind: input, shape index: {}]   ;;  %s10504_s5 = inlined_call_operand.hbm [shape: bf16[3,128,256], index: 5, kind: input, shape index: {}]   ;;  %s10505_s6 = inlined_call_operand.hbm [shape: f32[1,256], index: 6, kind: input, shape index: {}]   ;;  %s10506_s7 = inlined_call_operand.hbm [shape: bf16[2048,512], index: 7, kind: input, shape index: {}]   ;;  %s10507_s8 = inlined_call_operand.hbm [shape: f32[1,512], index: 8, kind: input, shape index: {}]   ;;  %s10508_s9 = inlined_call_operand.hbm [shape: bf16[512,128], index: 9, kind: input, shape index: {}]   ;;  %s10509_s10 = inlined_call_operand.hbm [shape: f32[1,128], index: 10, kind: input, shape index: {}]   ;;  %s10510_s11 = inlined_call_operand.hbm [shape: f32[1,128], index: 11, kind: input, shape index: {}]   ;;  %s10511_s12 = inlined_call_operand.<no memory space> [shape: f32[1,1], index: 12, kind: input, shape index: {}]   ;;  %s10512_s13 = inlined_call_operand.vmem [shape: f32[2,128], index: 13, kind: output, shape index: {}]  }
   0x1   :  { %20 = vsyncpa [#allocation11], 0 }
   0x2   :  { %21 = vsyncpa [#allocation14], 0 }
   0x3   :  { %22 = vsyncpa [#allocation17], 0 }
   0x4   :  { %23 = vsyncpa [#allocation20], 0  ;;  %s9752_s25 = smov [#allocation10]   ;;  %s9753_s27 = smov [#allocation13]  }
   0x5   :  { %s42_s26 = sshll.u32 %s9752_s25, 4  ;;  %s64_s28 = sshll.u32 %s9753_s27, 4  ;;  %s43_s26 = int_to_ptr.vmem [resolvable:$true] %s42_s26  ;;  %s65_s28 = int_to_ptr.vmem [resolvable:$true] %s64_s28 }
   0x6   :  { %s9526_s29 = scalar_lea.vmem %s43_s26, 16  ;;  %s9530_s30 = scalar_lea.vmem %s43_s26, 32 }
   0x7   :  { %p9527_p0 = scmp.ne.s32.totalorder %s43_s26, %s9526_s29  ;;  %p9531_p1 = scmp.lt.s32.totalorder %s43_s26, %s43_s26 }
   0x8   :  { %p9532_p2 = scmp.lt.s32.totalorder %s9530_s30, %s9526_s29 }
   0xa   :  { %p9533_p3 = por %p9532_p2, %p9531_p1 }
   0xc   :  { %p9534_p4 = pnand %p9533_p3, %p9527_p0 }
   0xe   :  { %9537 = shalt.err (!%p9534_p4)
}
   0xf   :  { %45 = dma.hbm_to_vmem [thread:$0]  %s10501_s2, 16, %s43_s26, [#allocation11]  }
  0x10   :  { %s9546_s16 = scalar_lea.vmem %s65_s28, 16  ;;  %s9550_s17 = scalar_lea.vmem %s65_s28, 32 }
  0x11   :  { %p9547_p5 = scmp.ne.s32.totalorder %s65_s28, %s9546_s16  ;;  %p9551_p6 = scmp.lt.s32.totalorder %s65_s28, %s65_s28 }
  0x12   :  { %p9552_p7 = scmp.lt.s32.totalorder %s9550_s17, %s9546_s16 }
  0x14   :  { %p9553_p8 = por %p9552_p7, %p9551_p6 }
  0x16   :  { %p9554_p9 = pnand %p9553_p8, %p9547_p5 }
  0x18   :  { %9557 = shalt.err (!%p9554_p9)
}
  0x19   :  { %67 = dma.hbm_to_vmem [thread:$0]  %s10503_s4, 16, %s65_s28, [#allocation14]  }
  0x1a   :  { %s9754_s20 = smov [#allocation16]   ;;  %s9755_s22 = smov [#allocation19]  }
  0x1b   :  { %s86_s21 = sshll.u32 %s9754_s20, 4  ;;  %s106_s23 = sshll.u32 %s9755_s22, 4  ;;  %s87_s21 = int_to_ptr.vmem [resolvable:$true] %s86_s21  ;;  %s107_s23 = int_to_ptr.vmem [resolvable:$true] %s106_s23 }
  0x1c   :  { %s9566_s24 = scalar_lea.vmem %s87_s21, 32  ;;  %p9571_p11 = scmp.lt.s32.totalorder %s87_s21, %s87_s21 }
  0x1d   :  { %p9567_p10 = scmp.ne.s32.totalorder %s87_s21, %s9566_s24  ;;  %p9572_p12 = scmp.lt.s32.totalorder %s9566_s24, %s9566_s24 }
  0x1f   :  { %p9573_p13 = por %p9572_p12, %p9571_p11 }
  0x21   :  { %p9574_p0 = pnand %p9573_p13, %p9567_p10 }
  0x23   :  { %9577 = shalt.err (!%p9574_p0)
}
  0x24   :  { %89 = dma.hbm_to_vmem [thread:$0]  %s10505_s6, 32, %s87_s21, [#allocation17]  }
  0x25   :  { %s9586_s26 = scalar_lea.vmem %s107_s23, 16  ;;  %s9590_s4 = scalar_lea.vmem %s107_s23, 32 }
  0x26   :  { %p9587_p1 = scmp.ne.s32.totalorder %s107_s23, %s9586_s26  ;;  %p9591_p2 = scmp.lt.s32.totalorder %s107_s23, %s107_s23 }
  0x27   :  { %p9592_p3 = scmp.lt.s32.totalorder %s9590_s4, %s9586_s26 }
  0x29   :  { %p9593_p4 = por %p9592_p3, %p9591_p2 }
  0x2b   :  { %p9594_p5 = pnand %p9593_p4, %p9587_p1 }
  0x2d   :  { %9597 = shalt.err (!%p9594_p5)
}
  0x2e   :  { %109 = dma.hbm_to_vmem [thread:$0]  %s10509_s10, 16, %s107_s23, [#allocation20]  }
  0x2f   :  { %s9756_s29 = smov [#allocation8]   ;;  %s9757_s14 = smov [#allocation12]  }
  0x30   :  { %s32_s30 = sshll.u32 %s9756_s29, 4  ;;  %s51_s15 = sshll.u32 %s9757_s14, 4  ;;  %s33_s30 = int_to_ptr.vmem [resolvable:$true] %s32_s30  ;;  %s52_s15 = int_to_ptr.vmem [resolvable:$true] %s51_s15 }
  0x31   :  { %s9606_s16 = scalar_lea.vmem %s33_s30, 64  ;;  %p9611_p7 = scmp.lt.s32.totalorder %s33_s30, %s33_s30 }
  0x32   :  { %p9607_p6 = scmp.ne.s32.totalorder %s33_s30, %s9606_s16  ;;  %p9612_p8 = scmp.lt.s32.totalorder %s9606_s16, %s9606_s16 }
  0x34   :  { %p9613_p9 = por %p9612_p8, %p9611_p7 }
  0x36   :  { %p9614_p10 = pnand %p9613_p9, %p9607_p6 }
  0x38   :  { %9617 = shalt.err (!%p9614_p10)
}
  0x39   :  { %35 = dma.hbm_to_vmem [thread:$0]  %s10500_s1, 64, %s33_s30, [#allocation9]  }
  0x3a   :  { %s9626_s18 = scalar_lea.vmem %s52_s15, 2560  ;;  %p9631_p12 = scmp.lt.s32.totalorder %s52_s15, %s52_s15 }
  0x3b   :  { %p9627_p11 = scmp.ne.s32.totalorder %s52_s15, %s9626_s18  ;;  %p9632_p13 = scmp.lt.s32.totalorder %s9626_s18, %s9626_s18 }
  0x3d   :  { %p9633_p0 = por %p9632_p13, %p9631_p12 }
  0x3f   :  { %p9634_p1 = pnand %p9633_p0, %p9627_p11 }
  0x41   :  { %9637 = shalt.err (!%p9634_p1)
}
  0x42   :  { %s9758_s10 = smov 64   ;;  %s9759_s19 = smov 4  }
  0x43   :  { %57 = dma.hbm_to_vmem [thread:$0]  %s10502_s3, 2560, %s52_s15, [#allocation11], %s9758_s10, %s9758_s10, %s9759_s19  }
  0x44   :  { %s9760_s22 = smov [#allocation15]  }
  0x45   :  { %s73_s23 = sshll.u32 %s9760_s22, 4  ;;  %s74_s23 = int_to_ptr.vmem [resolvable:$true] %s73_s23 }
  0x46   :  { %s9646_s24 = scalar_lea.vmem %s74_s23, 6144  ;;  %p9651_p3 = scmp.lt.s32.totalorder %s74_s23, %s74_s23 }
  0x47   :  { %p9647_p2 = scmp.ne.s32.totalorder %s74_s23, %s9646_s24  ;;  %p9652_p4 = scmp.lt.s32.totalorder %s9646_s24, %s9646_s24 }
  0x49   :  { %p9653_p5 = por %p9652_p4, %p9651_p3 }
  0x4b   :  { %p9654_p6 = pnand %p9653_p5, %p9647_p2 }
  0x4d   :  { %9657 = shalt.err (!%p9654_p6)
}
  0x4e   :  { %s9761_s1 = smov 128   ;;  %s9762_s2 = smov 8  }
  0x4f   :  { %79 = dma.hbm_to_vmem [thread:$0]  %s10504_s5, 6144, %s74_s23, [#allocation14], %s9761_s1, %s9761_s1, %s9762_s2  }
  0x50   :  { %s9763_s4 = smov [#allocation18]   ;;  %s9764_s3 = smov [#allocation21]  }
  0x51   :  { %s96_s27 = sshll.u32 %s9763_s4, 4  ;;  %s116_s28 = sshll.u32 %s9764_s3, 4  ;;  %s97_s27 = int_to_ptr.vmem [resolvable:$true] %s96_s27  ;;  %s117_s28 = int_to_ptr.vmem [resolvable:$true] %s116_s28 }
  0x52   :  { %s9666_s29 = scalar_lea.vmem %s97_s27, 64  ;;  %p9671_p8 = scmp.lt.s32.totalorder %s97_s27, %s97_s27 }
  0x53   :  { %p9667_p7 = scmp.ne.s32.totalorder %s97_s27, %s9666_s29  ;;  %p9672_p9 = scmp.lt.s32.totalorder %s9666_s29, %s9666_s29 }
  0x55   :  { %p9673_p10 = por %p9672_p9, %p9671_p8 }
  0x57   :  { %p9674_p11 = pnand %p9673_p10, %p9667_p7 }
  0x59   :  { %9677 = shalt.err (!%p9674_p11)
}
  0x5a   :  { %99 = dma.hbm_to_vmem [thread:$0]  %s10507_s8, 64, %s97_s27, [#allocation17]  }
  0x5b   :  { %s9686_s15 = scalar_lea.vmem %s117_s28, 16  ;;  %s9690_s5 = scalar_lea.vmem %s117_s28, 32 }
  0x5c   :  { %p9687_p12 = scmp.ne.s32.totalorder %s117_s28, %s9686_s15  ;;  %p9691_p13 = scmp.lt.s32.totalorder %s117_s28, %s117_s28 }
  0x5d   :  { %p9692_p0 = scmp.lt.s32.totalorder %s9690_s5, %s9686_s15 }
  0x5f   :  { %p9693_p1 = por %p9692_p0, %p9691_p13 }
  0x61   :  { %p9694_p2 = pnand %p9693_p1, %p9687_p12 }
  0x63   :  { %9697 = shalt.err (!%p9694_p2)
}
  0x64   :  { %119 = dma.hbm_to_vmem [thread:$0]  %s10510_s11, 16, %s117_s28, [#allocation20]  }
  0x65   :  { %9738 = dma.done.wait [#allocation9], 64  }
  0x66   :  { %9739 = vsyncadd [#allocation9], 4294967232 }
  0x67   :  { %9740 = dma.done.wait [#allocation11], 2576  }
  0x68   :  { %9741 = vsyncadd [#allocation11], 4294964720 }
  0x69   :  { %9742 = dma.done.wait [#allocation14], 6160  }
  0x6a   :  { %9743 = vsyncadd [#allocation14], 4294961136 }
  0x6b   :  { %9744 = dma.done.wait [#allocation17], 96  }
  0x6c   :  { %9745 = vsyncadd [#allocation17], 4294967200 }
  0x6d   :  { %9746 = dma.done.wait [#allocation20], 32  }
  0x6e   :  { %9747 = vsyncadd [#allocation20], 4294967264  ;;  %vm230_vm0 = vcmask 1042432   ;;  %vm231_vm1 = vcmask 1043456   ;;  %v9765_v0 = vmov 65535   ;;  %v173_v4 = vld [vmem:[%s10499_s0] sm:$0xff]  ;;  %v370_v42 = vlaneseq }
  0x6f   :  { %v232_v1 = vsel %vm230_vm0, 4294967295, %v9765_v0  ;;  %v197_v3 = vld [vmem:[#allocation8] sm:$0xf]  ;;  %v174_v5 = vld [vmem:[%s10499_s0 + $0x8] sm:$0xff]  ;;  %vm205_vm2 = vcmask 56320   ;;  %v175_v8 = vld [vmem:[%s10499_s0 + $0x10] sm:$0xff] }
  0x70   :  { %v233_v2 = vsel %vm231_vm1, %v232_v1, 0  ;;  %v189_v7 = vpack.c.bf16 %v174_v5, %v173_v4  ;;  %v176_v9 = vld [vmem:[%s10499_s0 + $0x18] sm:$0xff]  ;;  %v177_v10 = vld [vmem:[%s10499_s0 + $0x20] sm:$0xff]  ;;  %v178_v11 = vld [vmem:[%s10499_s0 + $0x28] sm:$0xff]  ;;  %vm958_vm3 = vcmask 517120   ;;  %v9766_v32 = vmov 0.0  }
  0x71   :  { %v235_v6 = vand.u32 %v233_v2, %v197_v3  ;;  %v190_v12 = vpack.c.bf16 %v176_v9, %v175_v8  ;;  %v191_v13 = vpack.c.bf16 %v178_v11, %v177_v10  ;;  %v179_v14 = vld [vmem:[%s10499_s0 + $0x30] sm:$0xff]  ;;  %v180_v15 = vld [vmem:[%s10499_s0 + $0x38] sm:$0xff]  ;;  %v181_v16 = vld [vmem:[%s10499_s0 + $0x40] sm:$0xff]  ;;  %959 = vst.msk [vmem:[#allocation2] sm:$0x3] %vm958_vm3, %v9766_v32  ;;  %v9933_v44 = vshrl.u32 %v370_v42, 7 }
  0x72   :  { %8507 = vmatprep.mubr.msk.bf16.mxu0 %vm205_vm2, %v189_v7  ;;  %v182_v17 = vld [vmem:[%s10499_s0 + $0x48] sm:$0xff]  ;;  %v192_v18 = vpack.c.bf16 %v180_v15, %v179_v14  ;;  %v183_v20 = vld [vmem:[%s10499_s0 + $0x50] sm:$0xff]  ;;  %v184_v21 = vld [vmem:[%s10499_s0 + $0x58] sm:$0xff]  ;;  %961 = vst.msk [vmem:[#allocation2 + $0x22] sm:$0x3] %vm958_vm3, %v9766_v32  ;;  %vm1283_vm4 = vcmask 1041409  }
  0x73   :  { %8505 = vmatprep.subr.bf16.mxu0 %v235_v6  ;;  %v193_v19 = vpack.c.bf16 %v182_v17, %v181_v16  ;;  %v185_v22 = vld [vmem:[%s10499_s0 + $0x60] sm:$0xff]  ;;  %v186_v23 = vld [vmem:[%s10499_s0 + $0x68] sm:$0xff]  ;;  %v194_v24 = vpack.c.bf16 %v184_v21, %v183_v20  ;;  %v187_v26 = vld [vmem:[%s10499_s0 + $0x70] sm:$0xff]  ;;  %960 = vst.msk [vmem:[#allocation2 + $0x28] sm:$0x3] %vm958_vm3, %v9766_v32  ;;  %v9945_v57 = vsub.s32 0, %v9933_v44 }
  0x74   :  { %8506 = vmatpush3.bf16.msra.mxu0 %v235_v6  ;;  %v195_v25 = vpack.c.bf16 %v186_v23, %v185_v22  ;;  %v188_v27 = vld [vmem:[%s10499_s0 + $0x78] sm:$0xff]  ;;  %962 = vst.msk [vmem:[#allocation2 + $0x4a] sm:$0x3] %vm958_vm3, %v9766_v32  ;;  %2323 = vst [vmem:[#allocation3] sm:$0x1] %v9766_v32  ;;  %v8629_v34 = vld [vmem:[#allocation12 + $0x28] sm:$0xff]  }
  0x75   :  { %v196_v28 = vpack.c.bf16 %v188_v27, %v187_v26  ;;  %v8625_v29 = vld [vmem:[#allocation12 + $0x38] sm:$0xff]   ;;  %v8626_v31 = vld [vmem:[#allocation12 + $0x30] sm:$0xff]   ;;  %2324 = vst [vmem:[#allocation3 + $0x18] sm:$0x1] %v9766_v32  ;;  %2325 = vst [vmem:[#allocation3 + $0x11] sm:$0x1] %v9766_v32 }
  0x76   :  { %8523 = vmatprep.subr.bf16.mxu0 %v8625_v29  ;;  %v8627_v30 = vld [vmem:[#allocation12 + $0x18] sm:$0xff]   ;;  %2326 = vst [vmem:[#allocation3 + $0x29] sm:$0x1] %v9766_v32  ;;  %v8628_v33 = vld [vmem:[#allocation12 + $0x10] sm:$0xff]   ;;  %v8630_v35 = vld [vmem:[#allocation12 + $0x8] sm:$0xff]   ;;  %vm1285_vm5 = vcmask 1042434  }
  0x77   :  { %8508 = vmatmul.mubr.msk.bf16.vlgmr.msra.gmra.mxu0 %vm205_vm2, %v190_v12  ;;  %8539 = vmatprep.subr.bf16.mxu1 %v8627_v30  ;;  %v8631_v36 = vld [vmem:[#allocation12 + $0x20] sm:$0xff]   ;;  %v9927_v38 = vld [vmem:[#allocation12 + $0x58] sm:$0xff]   ;;  %v9767_v40 = vmov 1983009808   ;;  %vm1287_vm6 = vcmask 1043459   ;;  %vm1289_vm7 = vcmask 1044484  }
  0x78   :  { %8511 = vmatprep.mubr.msk.bf16.mxu0 %vm205_vm2, %v191_v13  ;;  %8524 = vmatpush3.bf16.msra.mxu0 %v8625_v29  ;;  %v8632_v37 = vld [vmem:[#allocation12] sm:$0xff]   ;;  %v9929_v39 = vld [vmem:[#allocation12 + $0x78] sm:$0xff]   ;;  %v368_v41 = vunpack.c.l.s4 %v9767_v40  ;;  %vm1291_vm8 = vcmask 1045509   ;;  %vm1293_vm9 = vcmask 1046534   ;;  %vm1295_vm10 = vcmask 1047559   ;;  %s9769_s0 = smov [#allocation4]  }
  0x79   :  { %8525 = vmatprep.subr.bf16.mxu0 %v8626_v31  ;;  %8540 = vmatpush3.bf16.msra.mxu1 %v8627_v30  ;;  %v9935_v45 = vld [vmem:[#allocation10] ss:$0 sm:$0xff]  ;;  %vm1354_vm11 = vcmask 523264   ;;  %s157_s20 = sshll.u32 %s9769_s0, 4  ;;  %s9770_s21 = smov [#allocation5]   ;;  %s158_s20 = int_to_ptr.vmem [resolvable:$true] %s157_s20 }
  0x7a   :  { %8541 = vmatprep.subr.bf16.mxu1 %v8628_v33  ;;  %v369_v43 = vunpack.c.0.s8 %v368_v41  ;;  %s169_s22 = sshll.u32 %s9770_s21, 4  ;;  %s9706_s23 = scalar_lea.vmem %s158_s20, 65536  ;;  %s170_s22 = int_to_ptr.vmem [resolvable:$true] %s169_s22 }
  0x7b   :  { %p9707_p3 = scmp.ne.s32.totalorder %s158_s20, %s9706_s23  ;;  %p9711_p4 = scmp.lt.s32.totalorder %s158_s20, %s158_s20 }
  0x7c   :  { %8526 = vmatpush3.bf16.msra.mxu0 %v8626_v31  ;;  %v9939_v48 = vsub.s32 %v369_v43, %v9933_v44  ;;  %p9712_p5 = scmp.lt.s32.totalorder %s9706_s23, %s9706_s23 }
  0x7d   :  { %8542 = vmatpush3.bf16.msra.mxu1 %v8628_v33  ;;  %8527 = vmatprep.subr.bf16.mxu0 %v8629_v34 }
  0x7e   :  { %8543 = vmatprep.subr.bf16.mxu1 %v8630_v35  ;;  %p9713_p6 = por %p9712_p5, %p9711_p4 }
  0x7f   :  { %8512 = vmatmul.mubr.msk.bf16.gmra.mxu0 %vm205_vm2, %v192_v18 }
  0x80   :  { %8515 = vmatprep.mubr.msk.bf16.mxu0 %vm205_vm2, %v193_v19  ;;  %8528 = vmatpush3.bf16.msra.mxu0 %v8629_v34  ;;  %p9714_p7 = pnand %p9713_p6, %p9707_p3 }
  0x81   :  { %8544 = vmatpush3.bf16.msra.mxu1 %v8630_v35  ;;  %8529 = vmatprep.subr.bf16.mxu0 %v8631_v36 }
  0x82   :  { %8545 = vmatprep.subr.bf16.mxu1 %v8632_v37 }
  0x84   :  { %8530 = vmatpush3.bf16.msra.mxu0 %v8631_v36 }
  0x85   :  { %8546 = vmatpush3.bf16.msra.mxu1 %v8632_v37  ;;  %8555 = vmatprep.subr.bf16.mxu0 %v9927_v38 }
  0x86   :  { %8571 = vmatprep.subr.bf16.mxu1 %v9929_v39 }
  0x87   :  { %8516 = vmatmul.mubr.msk.bf16.gmra.mxu0 %vm205_vm2, %v194_v24 }
  0x88   :  { %8519 = vmatprep.mubr.msk.bf16.mxu0 %vm205_vm2, %v195_v25 }
  0x8f   :  { %8520 = vmatmul.mubr.msk.bf16.gmra.mxu0 %vm205_vm2, %v196_v28 }
 0x137   :  { %v8509_v46 = vpop.f32.mrf.mxu0 }
 0x138   :  { %v280_v47 = vadd.f32 %v8509_v46, %v9935_v45 }
 0x139   :  { %v271_v49 = vpop.f32.mrf.mxu0 }
 0x13a   :  { %v336_v50 = vmax.f32 %v280_v47, 0.0  ;;  %v272_v51 = vadd.f32 %v9935_v45, %v271_v49 }
 0x13b   :  { %v8510_v52 = vpop.f32.mrf.mxu0 }
 0x13c   :  { %v400_v53 = vcombine.high %v336_v50, %v336_v50  ;;  %v407_v54 = vrot.slane %v336_v50, %v9939_v48  ;;  %v334_v55 = vmax.f32 %v272_v51, 0.0  ;;  %v283_v56 = vadd.f32 %v8510_v52, %v9935_v45 }
 0x13d   :  { %v274_v58 = vpop.f32.mrf.mxu0 }
 0x13e   :  { %v414_v59 = vrot.slane %v400_v53, %v9939_v48  ;;  %v415_v60 = vcombine.high %v407_v54, %v407_v54  ;;  %v7671_v61 = vrot.slane %v407_v54, 9  ;;  %v366_v62 = vcombine.high %v334_v55, %v334_v55 }
 0x13f   :  { %v373_v63 = vrot.slane %v334_v55, %v9939_v48  ;;  %v337_v0 = vmax.f32 %v283_v56, 0.0  ;;  %v275_v1 = vadd.f32 %v9935_v45, %v274_v58  ;;  %v8513_v22 = vpop.f32.mrf.mxu0 }
 0x140   :  { %v416_v2 = vcombine.high %v414_v59, %v414_v59  ;;  %v7672_v3 = vrot.slane %v415_v60, 9  ;;  %v7673_v4 = vrot.slane %v414_v59, 9  ;;  %v902_v5 = vmax.f32 %v407_v54, %v7671_v61 }
 0x141   :  { %v380_v6 = vrot.slane %v366_v62, %v9939_v48  ;;  %v381_v7 = vcombine.high %v373_v63, %v373_v63  ;;  %v7663_v8 = vrot.slane %v373_v63, 9  ;;  %v417_v9 = vcombine.high %v337_v0, %v337_v0  ;;  %v287_v41 = vpop.f32.mrf.mxu0 }
 0x142   :  { %v7674_v10 = vrot.slane %v416_v2, 9  ;;  %v903_v11 = vmax.f32 %v415_v60, %v7672_v3  ;;  %v904_v12 = vmax.f32 %v414_v59, %v7673_v4  ;;  %v1062_v13 = vrot.slane %v902_v5, %v9945_v57 }
 0x143   :  { %v382_v14 = vcombine.high %v380_v6, %v380_v6  ;;  %v7664_v15 = vrot.slane %v381_v7, 9  ;;  %v7665_v16 = vrot.slane %v380_v6, 9  ;;  %v894_v17 = vmax.f32 %v373_v63, %v7663_v8  ;;  %v8514_v62 = vpop.f32.mrf.mxu0 }
 0x144   :  { %v905_v18 = vmax.f32 %v416_v2, %v7674_v10  ;;  %v1066_v19 = vrot.slane %v903_v11, %v9945_v57  ;;  %v1070_v20 = vrot.slane %v904_v12, %v9945_v57  ;;  %v424_v21 = vrot.slane %v337_v0, %v9939_v48 }
 0x145   :  { %v7666_v23 = vrot.slane %v382_v14, 9  ;;  %v895_v24 = vmax.f32 %v381_v7, %v7664_v15  ;;  %v896_v25 = vmax.f32 %v380_v6, %v7665_v16  ;;  %v1030_v26 = vrot.slane %v894_v17, %v9945_v57  ;;  %v290_v15 = vpop.f32.mrf.mxu0 }
 0x146   :  { %v1074_v27 = vrot.slane %v905_v18, %v9945_v57  ;;  %v1297_v28 = vsel %vm1283_vm4, %v1066_v19, %v1062_v13  ;;  %v431_v29 = vrot.slane %v417_v9, %v9939_v48  ;;  %v432_v30 = vcombine.high %v424_v21, %v424_v21 }
 0x147   :  { %v1298_v31 = vsel %vm1285_vm5, %v1070_v20, %v1297_v28  ;;  %v897_v32 = vmax.f32 %v382_v14, %v7666_v23  ;;  %v1034_v33 = vrot.slane %v895_v24, %v9945_v57  ;;  %v1038_v34 = vrot.slane %v896_v25, %v9945_v57 }
 0x148   :  { %v433_v35 = vcombine.high %v431_v29, %v431_v29  ;;  %v7675_v36 = vrot.slane %v424_v21, 9  ;;  %v7676_v37 = vrot.slane %v432_v30, 9  ;;  %v7677_v40 = vrot.slane %v431_v29, 9 }
 0x149   :  { %v1042_v42 = vrot.slane %v897_v32, %v9945_v57  ;;  %v1284_v43 = vsel %vm1283_vm4, %v1034_v33, %v1030_v26  ;;  %v1299_v46 = vsel %vm1287_vm6, %v1074_v27, %v1298_v31  ;;  %v335_v47 = vmax.f32 %v275_v1, 0.0  ;;  %v9986_v32 = vpop.f32.mrf.mxu0 }
 0x14a   :  { %v1286_v49 = vsel %vm1285_vm5, %v1038_v34, %v1284_v43  ;;  %v7678_v50 = vrot.slane %v433_v35, 9  ;;  %v906_v51 = vmax.f32 %v424_v21, %v7675_v36  ;;  %v907_v52 = vmax.f32 %v432_v30, %v7676_v37 }
 0x14b   :  { %v908_v53 = vmax.f32 %v431_v29, %v7677_v40  ;;  %v383_v54 = vcombine.high %v335_v47, %v335_v47  ;;  %v390_v55 = vrot.slane %v335_v47, %v9939_v48  ;;  %v1288_v56 = vsel %vm1287_vm6, %v1042_v42, %v1286_v49 }
 0x14c   :  { %v909_v58 = vmax.f32 %v433_v35, %v7678_v50  ;;  %v1078_v59 = vrot.slane %v906_v51, %v9945_v57  ;;  %v1082_v60 = vrot.slane %v907_v52, %v9945_v57  ;;  %v296_v61 = vadd.f32 %v8513_v22, %v9935_v45 }
 0x14d   :  { %v1086_v63 = vrot.slane %v908_v53, %v9945_v57  ;;  %v397_v0 = vrot.slane %v383_v54, %v9939_v48  ;;  %v398_v1 = vcombine.high %v390_v55, %v390_v55  ;;  %v7667_v2 = vrot.slane %v390_v55, 9  ;;  %v9999_v54 = vpop.f32.mrf.mxu0 }
 0x14e   :  { %v1090_v3 = vrot.slane %v909_v58, %v9945_v57  ;;  %v1300_v4 = vsel %vm1289_vm7, %v1078_v59, %v1299_v46  ;;  %v340_v5 = vmax.f32 %v296_v61, 0.0  ;;  %v288_v6 = vadd.f32 %v9935_v45, %v287_v41 }
 0x14f   :  { %v1301_v7 = vsel %vm1291_vm8, %v1082_v60, %v1300_v4  ;;  %v399_v8 = vcombine.high %v397_v0, %v397_v0  ;;  %v7668_v9 = vrot.slane %v398_v1, 9  ;;  %v7669_v10 = vrot.slane %v397_v0, 9 }
 0x150   :  { %v1302_v11 = vsel %vm1293_vm9, %v1086_v63, %v1301_v7  ;;  %v898_v12 = vmax.f32 %v390_v55, %v7667_v2  ;;  %v468_v13 = vcombine.high %v340_v5, %v340_v5  ;;  %v475_v14 = vrot.slane %v340_v5, %v9939_v48 }
 0x151   :  { %v1303_v16 = vsel %vm1295_vm10, %v1090_v3, %v1302_v11  ;;  %v7670_v17 = vrot.slane %v399_v8, 9  ;;  %v899_v18 = vmax.f32 %v398_v1, %v7668_v9  ;;  %v900_v19 = vmax.f32 %v397_v0, %v7669_v10 }
 0x152   :  { %1356 = vst.msk [vmem:[#allocation2 + $0xa] sm:$0xff] %vm1354_vm11, %v1303_v16  ;;  %v1046_v20 = vrot.slane %v898_v12, %v9945_v57  ;;  %v482_v21 = vrot.slane %v468_v13, %v9939_v48  ;;  %v483_v22 = vcombine.high %v475_v14, %v475_v14  ;;  %v7687_v23 = vrot.slane %v475_v14, 9 }
 0x153   :  { %v901_v24 = vmax.f32 %v399_v8, %v7670_v17  ;;  %v1050_v25 = vrot.slane %v899_v18, %v9945_v57  ;;  %v1054_v26 = vrot.slane %v900_v19, %v9945_v57  ;;  %v338_v27 = vmax.f32 %v288_v6, 0.0  ;;  %v8518_v8 = vpop.f32.mrf.mxu0 }
 0x154   :  { %v1290_v28 = vsel %vm1289_vm7, %v1046_v20, %v1288_v56  ;;  %v484_v29 = vcombine.high %v482_v21, %v482_v21  ;;  %v7688_v30 = vrot.slane %v483_v22, 9  ;;  %v7689_v31 = vrot.slane %v482_v21, 9 }
 0x155   :  { %v1058_v33 = vrot.slane %v901_v24, %v9945_v57  ;;  %v1292_v34 = vsel %vm1291_vm8, %v1050_v25, %v1290_v28  ;;  %v918_v35 = vmax.f32 %v475_v14, %v7687_v23  ;;  %v434_v36 = vcombine.high %v338_v27, %v338_v27  ;;  %v306_v25 = vpop.f32.mrf.mxu0 }
 0x156   :  { %v1294_v37 = vsel %vm1293_vm9, %v1054_v26, %v1292_v34  ;;  %v7690_v40 = vrot.slane %v484_v29, 9  ;;  %v919_v41 = vmax.f32 %v483_v22, %v7688_v30  ;;  %v920_v42 = vmax.f32 %v482_v21, %v7689_v31 }
 0x157   :  { %v1296_v43 = vsel %vm1295_vm10, %v1058_v33, %v1294_v37  ;;  %v1126_v46 = vrot.slane %v918_v35, %v9945_v57  ;;  %v441_v47 = vrot.slane %v338_v27, %v9939_v48  ;;  %v448_v49 = vrot.slane %v434_v36, %v9939_v48 }
 0x158   :  { %1355 = vst.msk [vmem:[#allocation2 + $0x2] sm:$0xff] %vm1354_vm11, %v1296_v43  ;;  %v921_v50 = vmax.f32 %v484_v29, %v7690_v40  ;;  %v1130_v51 = vrot.slane %v919_v41, %v9945_v57  ;;  %v1134_v52 = vrot.slane %v920_v42, %v9945_v57  ;;  %v299_v53 = vadd.f32 %v8514_v62, %v9935_v45 }
 0x159   :  { %v449_v55 = vcombine.high %v441_v47, %v441_v47  ;;  %v450_v56 = vcombine.high %v448_v49, %v448_v49  ;;  %v7679_v58 = vrot.slane %v441_v47, 9  ;;  %v7681_v59 = vrot.slane %v448_v49, 9 }
 0x15a   :  { %v1138_v60 = vrot.slane %v921_v50, %v9945_v57  ;;  %v1311_v61 = vsel %vm1283_vm4, %v1130_v51, %v1126_v46  ;;  %v341_v63 = vmax.f32 %v299_v53, 0.0  ;;  %v291_v0 = vadd.f32 %v9935_v45, %v290_v15 }
 0x15b   :  { %v1312_v1 = vsel %vm1285_vm5, %v1134_v52, %v1311_v61  ;;  %v7680_v2 = vrot.slane %v449_v55, 9  ;;  %v7682_v3 = vrot.slane %v450_v56, 9  ;;  %v910_v4 = vmax.f32 %v441_v47, %v7679_v58  ;;  %v8521_v47 = vpop.f32.mrf.mxu0 }
 0x15c   :  { %v912_v5 = vmax.f32 %v448_v49, %v7681_v59  ;;  %v485_v62 = vcombine.high %v341_v63, %v341_v63  ;;  %v492_v6 = vrot.slane %v341_v63, %v9939_v48  ;;  %v1313_v7 = vsel %vm1287_vm6, %v1138_v60, %v1312_v1 }
 0x15d   :  { %v911_v9 = vmax.f32 %v449_v55, %v7680_v2  ;;  %v913_v10 = vmax.f32 %v450_v56, %v7682_v3  ;;  %v1094_v11 = vrot.slane %v910_v4, %v9945_v57  ;;  %v339_v12 = vmax.f32 %v291_v0, 0.0  ;;  %v319_v4 = vpop.f32.mrf.mxu0 }
 0x15e   :  { %v1102_v13 = vrot.slane %v912_v5, %v9945_v57  ;;  %v499_v14 = vrot.slane %v485_v62, %v9939_v48  ;;  %v500_v15 = vcombine.high %v492_v6, %v492_v6  ;;  %v7691_v16 = vrot.slane %v492_v6, 9 }
 0x15f   :  { %v1098_v17 = vrot.slane %v911_v9, %v9945_v57  ;;  %v1106_v18 = vrot.slane %v913_v10, %v9945_v57  ;;  %v451_v19 = vcombine.high %v339_v12, %v339_v12  ;;  %v458_v20 = vrot.slane %v339_v12, %v9939_v48 }
 0x160   :  { %v501_v21 = vcombine.high %v499_v14, %v499_v14  ;;  %v7692_v22 = vrot.slane %v500_v15, 9  ;;  %v7693_v23 = vrot.slane %v499_v14, 9  ;;  %v922_v24 = vmax.f32 %v492_v6, %v7691_v16 }
 0x161   :  { %v1304_v26 = vsel %vm1283_vm4, %v1098_v17, %v1094_v11  ;;  %v465_v27 = vrot.slane %v451_v19, %v9939_v48  ;;  %v466_v28 = vcombine.high %v458_v20, %v458_v20  ;;  %v7683_v29 = vrot.slane %v458_v20, 9 }
 0x162   :  { %v1305_v30 = vsel %vm1285_vm5, %v1102_v13, %v1304_v26  ;;  %v7694_v31 = vrot.slane %v501_v21, 9  ;;  %v923_v33 = vmax.f32 %v500_v15, %v7692_v22  ;;  %v924_v34 = vmax.f32 %v499_v14, %v7693_v23 }
 0x163   :  { %v1142_v35 = vrot.slane %v922_v24, %v9945_v57  ;;  %v467_v36 = vcombine.high %v465_v27, %v465_v27  ;;  %v7684_v37 = vrot.slane %v466_v28, 9  ;;  %v7685_v40 = vrot.slane %v465_v27, 9 }
 0x164   :  { %v925_v41 = vmax.f32 %v501_v21, %v7694_v31  ;;  %v1146_v42 = vrot.slane %v923_v33, %v9945_v57  ;;  %v1150_v43 = vrot.slane %v924_v34, %v9945_v57  ;;  %v914_v46 = vmax.f32 %v458_v20, %v7683_v29 }
 0x165   :  { %v1314_v49 = vsel %vm1289_vm7, %v1142_v35, %v1313_v7  ;;  %v7686_v50 = vrot.slane %v467_v36, 9  ;;  %v915_v51 = vmax.f32 %v466_v28, %v7684_v37  ;;  %v916_v52 = vmax.f32 %v465_v27, %v7685_v40 }
 0x166   :  { %v1154_v53 = vrot.slane %v925_v41, %v9945_v57  ;;  %v1315_v55 = vsel %vm1291_vm8, %v1146_v42, %v1314_v49  ;;  %v1110_v56 = vrot.slane %v914_v46, %v9945_v57  ;;  %v1306_v58 = vsel %vm1287_vm6, %v1106_v18, %v1305_v30 }
 0x167   :  { %v1316_v59 = vsel %vm1293_vm9, %v1150_v43, %v1315_v55  ;;  %v917_v60 = vmax.f32 %v467_v36, %v7686_v50  ;;  %v1114_v61 = vrot.slane %v915_v51, %v9945_v57  ;;  %v1118_v63 = vrot.slane %v916_v52, %v9945_v57 }
 0x168   :  { %v1317_v0 = vsel %vm1295_vm10, %v1154_v53, %v1316_v59  ;;  %v1307_v1 = vsel %vm1289_vm7, %v1110_v56, %v1306_v58  ;;  %v312_v2 = vadd.f32 %v9986_v32, %v9935_v45  ;;  %v304_v3 = vadd.f32 %v9935_v45, %v9999_v54 }
 0x169   :  { %1358 = vst.msk [vmem:[#allocation2 + $0x1a] sm:$0xff] %vm1354_vm11, %v1317_v0  ;;  %v1122_v5 = vrot.slane %v917_v60, %v9945_v57  ;;  %v1308_v62 = vsel %vm1291_vm8, %v1114_v61, %v1307_v1  ;;  %v315_v6 = vadd.f32 %v8518_v8, %v9935_v45  ;;  %v307_v7 = vadd.f32 %v9935_v45, %v306_v25 }
 0x16a   :  { %v1309_v9 = vsel %vm1293_vm9, %v1118_v63, %v1308_v62  ;;  %v344_v10 = vmax.f32 %v312_v2, 0.0  ;;  %v342_v11 = vmax.f32 %v304_v3, 0.0  ;;  %v10040_v32 = vadd.f32 %v8521_v47, %v9935_v45 }
 0x16b   :  { %v1310_v54 = vsel %vm1295_vm10, %v1122_v5, %v1309_v9  ;;  %v345_v12 = vmax.f32 %v315_v6, 0.0  ;;  %v343_v13 = vmax.f32 %v307_v7, 0.0  ;;  %v10044_v14 = vadd.f32 %v9935_v45, %v319_v4 }
 0x16c   :  { %1357 = vst.msk [vmem:[#allocation2 + $0x12] sm:$0xff] %vm1354_vm11, %v1310_v54  ;;  %v536_v15 = vcombine.high %v344_v10, %v344_v10  ;;  %v543_v8 = vrot.slane %v344_v10, %v9939_v48  ;;  %v502_v16 = vcombine.high %v342_v11, %v342_v11  ;;  %v509_v17 = vrot.slane %v342_v11, %v9939_v48 }
 0x16d   :  { %v553_v18 = vcombine.high %v345_v12, %v345_v12  ;;  %v560_v19 = vrot.slane %v345_v12, %v9939_v48  ;;  %v519_v20 = vcombine.high %v343_v13, %v343_v13  ;;  %v526_v21 = vrot.slane %v343_v13, %v9939_v48 }
 0x16e   :  { %v550_v22 = vrot.slane %v536_v15, %v9939_v48  ;;  %v551_v23 = vcombine.high %v543_v8, %v543_v8  ;;  %v7703_v24 = vrot.slane %v543_v8, 9  ;;  %v516_v25 = vrot.slane %v502_v16, %v9939_v48 }
 0x16f   :  { %v517_v26 = vcombine.high %v509_v17, %v509_v17  ;;  %v7695_v27 = vrot.slane %v509_v17, 9  ;;  %v567_v28 = vrot.slane %v553_v18, %v9939_v48  ;;  %v568_v29 = vcombine.high %v560_v19, %v560_v19 }
 0x170   :  { %v552_v30 = vcombine.high %v550_v22, %v550_v22  ;;  %v7704_v31 = vrot.slane %v551_v23, 9  ;;  %v7705_v33 = vrot.slane %v550_v22, 9  ;;  %v934_v34 = vmax.f32 %v543_v8, %v7703_v24 }
 0x171   :  { %v518_v35 = vcombine.high %v516_v25, %v516_v25  ;;  %v7696_v36 = vrot.slane %v517_v26, 9  ;;  %v7697_v37 = vrot.slane %v516_v25, 9  ;;  %v926_v40 = vmax.f32 %v509_v17, %v7695_v27 }
 0x172   :  { %v7706_v41 = vrot.slane %v552_v30, 9  ;;  %v935_v42 = vmax.f32 %v551_v23, %v7704_v31  ;;  %v936_v43 = vmax.f32 %v550_v22, %v7705_v33  ;;  %v1190_v46 = vrot.slane %v934_v34, %v9945_v57 }
 0x173   :  { %v7698_v47 = vrot.slane %v518_v35, 9  ;;  %v927_v49 = vmax.f32 %v517_v26, %v7696_v36  ;;  %v928_v50 = vmax.f32 %v516_v25, %v7697_v37  ;;  %v1158_v51 = vrot.slane %v926_v40, %v9945_v57  ;;  %v8522_v36 = vpop.f32.mrf.mxu0 }
 0x174   :  { %v937_v52 = vmax.f32 %v552_v30, %v7706_v41  ;;  %v1194_v53 = vrot.slane %v935_v42, %v9945_v57  ;;  %v1198_v55 = vrot.slane %v936_v43, %v9945_v57  ;;  %v569_v56 = vcombine.high %v567_v28, %v567_v28 }
 0x175   :  { %v929_v58 = vmax.f32 %v518_v35, %v7698_v47  ;;  %v1162_v59 = vrot.slane %v927_v49, %v9945_v57  ;;  %v1166_v60 = vrot.slane %v928_v50, %v9945_v57  ;;  %v7707_v61 = vrot.slane %v560_v19, 9 }
 0x176   :  { %v1202_v63 = vrot.slane %v937_v52, %v9945_v57  ;;  %v1325_v0 = vsel %vm1283_vm4, %v1194_v53, %v1190_v46  ;;  %v7708_v1 = vrot.slane %v568_v29, 9  ;;  %v7709_v2 = vrot.slane %v567_v28, 9 }
 0x177   :  { %v1326_v3 = vsel %vm1285_vm5, %v1198_v55, %v1325_v0  ;;  %v1170_v4 = vrot.slane %v929_v58, %v9945_v57  ;;  %v1318_v5 = vsel %vm1283_vm4, %v1162_v59, %v1158_v51  ;;  %v7710_v62 = vrot.slane %v569_v56, 9 }
 0x178   :  { %v1319_v6 = vsel %vm1285_vm5, %v1166_v60, %v1318_v5  ;;  %v938_v7 = vmax.f32 %v560_v19, %v7707_v61  ;;  %v939_v9 = vmax.f32 %v568_v29, %v7708_v1  ;;  %v940_v10 = vmax.f32 %v567_v28, %v7709_v2 }
 0x179   :  { %v941_v11 = vmax.f32 %v569_v56, %v7710_v62  ;;  %v1327_v54 = vsel %vm1287_vm6, %v1202_v63, %v1326_v3  ;;  %v533_v12 = vrot.slane %v519_v20, %v9939_v48  ;;  %v534_v13 = vcombine.high %v526_v21, %v526_v21 }
 0x17a   :  { %v1206_v15 = vrot.slane %v938_v7, %v9945_v57  ;;  %v1210_v8 = vrot.slane %v939_v9, %v9945_v57  ;;  %v1214_v16 = vrot.slane %v940_v10, %v9945_v57  ;;  %v7699_v17 = vrot.slane %v526_v21, 9 }
 0x17b   :  { %v1218_v18 = vrot.slane %v941_v11, %v9945_v57  ;;  %v535_v22 = vcombine.high %v533_v12, %v533_v12  ;;  %v7700_v23 = vrot.slane %v534_v13, 9  ;;  %v7701_v19 = vrot.slane %v533_v12, 9 }
 0x17c   :  { %v1328_v24 = vsel %vm1289_vm7, %v1206_v15, %v1327_v54  ;;  %v930_v25 = vmax.f32 %v526_v21, %v7699_v17  ;;  %v1320_v26 = vsel %vm1287_vm6, %v1170_v4, %v1319_v6  ;;  %v348_v20 = vmax.f32 %v10040_v32, 0.0 }
 0x17d   :  { %v1329_v27 = vsel %vm1291_vm8, %v1210_v8, %v1328_v24  ;;  %v7702_v28 = vrot.slane %v535_v22, 9  ;;  %v931_v29 = vmax.f32 %v534_v13, %v7700_v23  ;;  %v932_v30 = vmax.f32 %v533_v12, %v7701_v19 }
 0x17e   :  { %v1330_v31 = vsel %vm1293_vm9, %v1214_v16, %v1329_v27  ;;  %v1174_v33 = vrot.slane %v930_v25, %v9945_v57  ;;  %v604_v34 = vcombine.high %v348_v20, %v348_v20  ;;  %v611_v35 = vrot.slane %v348_v20, %v9939_v48 }
 0x17f   :  { %v1331_v37 = vsel %vm1295_vm10, %v1218_v18, %v1330_v31  ;;  %v933_v21 = vmax.f32 %v535_v22, %v7702_v28  ;;  %v1178_v40 = vrot.slane %v931_v29, %v9945_v57  ;;  %v1182_v32 = vrot.slane %v932_v30, %v9945_v57 }
 0x180   :  { %1360 = vst.msk [vmem:[#allocation2 + $0x32] sm:$0xff] %vm1354_vm11, %v1331_v37  ;;  %v1321_v41 = vsel %vm1289_vm7, %v1174_v33, %v1320_v26  ;;  %v618_v42 = vrot.slane %v604_v34, %v9939_v48  ;;  %v619_v43 = vcombine.high %v611_v35, %v611_v35  ;;  %v7719_v46 = vrot.slane %v611_v35, 9  ;;  %v322_v26 = vpop.f32.mrf.mxu0  ;;  %v1383_v34 = vld [vmem:[#allocation2 + $0x1] sm:$0xff] }
 0x181   :  { %v1186_v47 = vrot.slane %v933_v21, %v9945_v57  ;;  %v1322_v49 = vsel %vm1291_vm8, %v1178_v40, %v1321_v41  ;;  %v346_v50 = vmax.f32 %v10044_v14, 0.0  ;;  %v331_v51 = vadd.f32 %v8522_v36, %v9935_v45  ;;  %v1363_v36 = vld [vmem:[#allocation2] sm:$0xff]  ;;  %v1364_v41 = vld [vmem:[#allocation2 + $0x8] sm:$0xff] }
 0x182   :  { %v1323_v52 = vsel %vm1293_vm9, %v1182_v32, %v1322_v49  ;;  %v620_v53 = vcombine.high %v618_v42, %v618_v42  ;;  %v7720_v55 = vrot.slane %v619_v43, 9  ;;  %v7721_v56 = vrot.slane %v618_v42, 9 }
 0x183   :  { %v1324_v58 = vsel %vm1295_vm10, %v1186_v47, %v1323_v52  ;;  %v950_v59 = vmax.f32 %v611_v35, %v7719_v46  ;;  %v570_v60 = vcombine.high %v346_v50, %v346_v50  ;;  %v577_v61 = vrot.slane %v346_v50, %v9939_v48  ;;  %v1384_v35 = vld [vmem:[#allocation2 + $0x9] sm:$0xff]  ;;  %v1366_v52 = vld [vmem:[#allocation2 + $0x18] sm:$0xff] }
 0x184   :  { %1359 = vst.msk [vmem:[#allocation2 + $0x2a] sm:$0xff] %vm1354_vm11, %v1324_v58  ;;  %v7722_v63 = vrot.slane %v620_v53, 9  ;;  %v951_v0 = vmax.f32 %v619_v43, %v7720_v55  ;;  %v952_v1 = vmax.f32 %v618_v42, %v7721_v56  ;;  %v349_v2 = vmax.f32 %v331_v51, 0.0  ;;  %v1385_v42 = vld [vmem:[#allocation2 + $0x11] sm:$0xff]  ;;  %v1386_v43 = vld [vmem:[#allocation2 + $0x19] sm:$0xff] }
 0x185   :  { %v1254_v14 = vrot.slane %v950_v59, %v9945_v57  ;;  %v584_v3 = vrot.slane %v570_v60, %v9939_v48  ;;  %v585_v4 = vcombine.high %v577_v61, %v577_v61  ;;  %v7711_v5 = vrot.slane %v577_v61, 9  ;;  %v1365_v51 = vld [vmem:[#allocation2 + $0x10] sm:$0xff] }
 0x186   :  { %v953_v62 = vmax.f32 %v620_v53, %v7722_v63  ;;  %v1258_v6 = vrot.slane %v951_v0, %v9945_v57  ;;  %v1262_v7 = vrot.slane %v952_v1, %v9945_v57  ;;  %v621_v9 = vcombine.high %v349_v2, %v349_v2 }
 0x187   :  { %v586_v10 = vcombine.high %v584_v3, %v584_v3  ;;  %v7712_v11 = vrot.slane %v585_v4, 9  ;;  %v7713_v54 = vrot.slane %v584_v3, 9  ;;  %v942_v13 = vmax.f32 %v577_v61, %v7711_v5 }
 0x188   :  { %v1339_v12 = vsel %vm1283_vm4, %v1258_v6, %v1254_v14  ;;  %v628_v15 = vrot.slane %v349_v2, %v9939_v48  ;;  %v635_v8 = vrot.slane %v621_v9, %v9939_v48  ;;  %v1266_v16 = vrot.slane %v953_v62, %v9945_v57 }
 0x189   :  { %v7714_v17 = vrot.slane %v586_v10, 9  ;;  %v943_v18 = vmax.f32 %v585_v4, %v7712_v11  ;;  %v944_v22 = vmax.f32 %v584_v3, %v7713_v54  ;;  %v1340_v23 = vsel %vm1285_vm5, %v1262_v7, %v1339_v12  ;;  %v8636_v11 = vld [vmem:[#allocation12 + $0x70] sm:$0xff]  }
 0x18a   :  { %v636_v19 = vcombine.high %v628_v15, %v628_v15  ;;  %v637_v24 = vcombine.high %v635_v8, %v635_v8  ;;  %v7723_v25 = vrot.slane %v628_v15, 9  ;;  %v7725_v28 = vrot.slane %v635_v8, 9 }
 0x18b   :  { %v10102_v20 = vmax.f32 %v586_v10, %v7714_v17  ;;  %v1226_v27 = vrot.slane %v943_v18, %v9945_v57  ;;  %v1222_v29 = vrot.slane %v942_v13, %v9945_v57  ;;  %v1230_v37 = vrot.slane %v944_v22, %v9945_v57  ;;  %v1387_v53 = vld [vmem:[#allocation2 + $0x29] sm:$0xff]  ;;  %v8635_v10 = vld [vmem:[#allocation12 + $0x50] sm:$0xff]  }
 0x18c   :  { %v7724_v30 = vrot.slane %v636_v19, 9  ;;  %v7726_v31 = vrot.slane %v637_v24, 9  ;;  %v954_v33 = vmax.f32 %v628_v15, %v7723_v25  ;;  %v956_v21 = vmax.f32 %v635_v8, %v7725_v28  ;;  %v1367_v60 = vld [vmem:[#allocation2 + $0x28] sm:$0xff]  ;;  %v1368_v61 = vld [vmem:[#allocation2 + $0x30] sm:$0xff] }
 0x18d   :  { %v1341_v40 = vsel %vm1287_vm6, %v1266_v16, %v1340_v23  ;;  %v323_v32 = vadd.f32 %v9935_v45, %v322_v26  ;;  %v1234_v46 = vrot.slane %v10102_v20, %v9945_v57  ;;  %v1332_v55 = vsel %vm1283_vm4, %v1226_v27, %v1222_v29  ;;  %v1388_v45 = vld [vmem:[#allocation2 + $0x31] sm:$0xff] }
 0x18e   :  { %v955_v47 = vmax.f32 %v636_v19, %v7724_v30  ;;  %v957_v49 = vmax.f32 %v637_v24, %v7726_v31  ;;  %v1270_v50 = vrot.slane %v954_v33, %v9945_v57  ;;  %v1278_v56 = vrot.slane %v956_v21, %v9945_v57  ;;  %v8637_v19 = vld [vmem:[#allocation12 + $0x48] sm:$0xff]   ;;  %v1606_v21 = vld [vmem:[#allocation2 + $0x2] sm:$0xff] }
 0x18f   :  { %v347_v58 = vmax.f32 %v323_v32, 0.0  ;;  %v1391_v59 = vpack.c.bf16 %v1384_v35, %v1383_v34  ;;  %v1371_v2 = vpack.c.bf16 %v1364_v41, %v1363_v36  ;;  %v1392_v4 = vpack.c.bf16 %v1386_v43, %v1385_v42  ;;  %v8638_v27 = vld [vmem:[#allocation12 + $0x68] sm:$0xff]   ;;  %v8640_v34 = vld [vmem:[#allocation12 + $0x60] sm:$0xff]  }
 0x190   :  { %v1274_v63 = vrot.slane %v955_v47, %v9945_v57  ;;  %v1282_v0 = vrot.slane %v957_v49, %v9945_v57  ;;  %v1342_v1 = vsel %vm1289_vm7, %v1270_v50, %v1341_v40  ;;  %v1372_v5 = vpack.c.bf16 %v1366_v52, %v1365_v51  ;;  %v1737_v40 = vld [vmem:[#allocation2 + $0xb] sm:$0xff]  ;;  %v1736_v51 = vld [vmem:[#allocation2 + $0x3] sm:$0xff] }
 0x191   :  { %v587_v14 = vcombine.high %v347_v58, %v347_v58  ;;  %v594_v3 = vrot.slane %v347_v58, %v9939_v48  ;;  %8531 = vmatprep.mubr.msk.bf16.mxu0 %vm1354_vm11, %v1391_v59  ;;  %v1333_v62 = vsel %vm1285_vm5, %v1230_v37, %v1332_v55  ;;  %8547 = vmatprep.mubr.msk.bf16.mxu1 %vm1354_vm11, %v1371_v2  ;;  %v8641_v37 = vld [vmem:[#allocation12 + $0x98] sm:$0xff]   ;;  %v1607_v47 = vld [vmem:[#allocation2 + $0xa] sm:$0xff]  ;;  %v1738_v55 = vld [vmem:[#allocation2 + $0x13] sm:$0xff] }
 0x192   :  { %v1343_v6 = vsel %vm1291_vm8, %v1274_v63, %v1342_v1  ;;  %v1393_v7 = vpack.c.bf16 %v1388_v45, %v1387_v53  ;;  %v1373_v9 = vpack.c.bf16 %v1368_v61, %v1367_v60  ;;  %8532 = vmatmul.mubr.msk.bf16.vlgmr.msra.gmra.mxu0 %vm1354_vm11, %v1392_v4  ;;  %8548 = vmatmul.mubr.msk.bf16.vlgmr.msra.gmra.mxu1 %vm1354_vm11, %v1372_v5  ;;  %v1608_v53 = vld [vmem:[#allocation2 + $0x12] sm:$0xff]  ;;  %v1610_v58 = vld [vmem:[#allocation2 + $0x2a] sm:$0xff]  ;;  %v1739_v60 = vld [vmem:[#allocation2 + $0x1b] sm:$0xff] }
 0x193   :  { %v1344_v54 = vsel %vm1293_vm9, %v1278_v56, %v1343_v6  ;;  %v601_v12 = vrot.slane %v587_v14, %v9939_v48  ;;  %v602_v13 = vcombine.high %v594_v3, %v594_v3  ;;  %v7715_v15 = vrot.slane %v594_v3, 9  ;;  %8556 = vmatpush3.bf16.msra.mxu0 %v9927_v38  ;;  %8572 = vmatpush3.bf16.msra.mxu1 %v9929_v39  ;;  %v8639_v39 = vld [vmem:[#allocation12 + $0x40] sm:$0xff]   ;;  %v1609_v56 = vld [vmem:[#allocation2 + $0x1a] sm:$0xff]  ;;  %v1611_v63 = vld [vmem:[#allocation2 + $0x32] sm:$0xff] }
 0x194   :  { %v1345_v8 = vsel %vm1295_vm10, %v1282_v0, %v1344_v54  ;;  %8535 = vmatprep.mubr.msk.bf16.mxu0 %vm1354_vm11, %v1393_v7  ;;  %8551 = vmatprep.mubr.msk.bf16.mxu1 %vm1354_vm11, %v1373_v9  ;;  %v1334_v23 = vsel %vm1287_vm6, %v1234_v46, %v1333_v62  ;;  %v1614_v50 = vpack.c.bf16 %v1607_v47, %v1606_v21  ;;  %v1740_v0 = vld [vmem:[#allocation2 + $0x2b] sm:$0xff]  ;;  %v8642_v1 = vld [vmem:[#allocation12 + $0x90] sm:$0xff]  }
 0x195   :  { %1362 = vst.msk [vmem:[#allocation2 + $0x42] sm:$0xff] %vm1354_vm11, %v1345_v8  ;;  %v603_v16 = vcombine.high %v601_v12, %v601_v12  ;;  %v7716_v17 = vrot.slane %v602_v13, 9  ;;  %v7717_v18 = vrot.slane %v601_v12, 9  ;;  %v946_v22 = vmax.f32 %v594_v3, %v7715_v15  ;;  %8557 = vmatprep.subr.bf16.mxu0 %v8635_v10  ;;  %8573 = vmatprep.subr.bf16.mxu1 %v8636_v11  ;;  %v8643_v3 = vld [vmem:[#allocation12 + $0x88] sm:$0xff]   ;;  %v1866_v54 = vld [vmem:[#allocation2 + $0x4] sm:$0xff]  ;;  %v1869_v8 = vld [vmem:[#allocation2 + $0x1c] sm:$0xff] }
 0x196   :  { %v1744_v52 = vpack.c.bf16 %v1737_v40, %v1736_v51  ;;  %v1615_v45 = vpack.c.bf16 %v1609_v56, %v1608_v53  ;;  %v1745_v61 = vpack.c.bf16 %v1739_v60, %v1738_v55  ;;  %v1616_v2 = vpack.c.bf16 %v1611_v63, %v1610_v58  ;;  %v1867_v6 = vld [vmem:[#allocation2 + $0xc] sm:$0xff]  ;;  %v8672_v47 = vld [vmem:[#allocation15 + $0x30] ss:$8 sps:$4 sm:$0xff]   ;;  %v8695_v53 = vld [vmem:[#allocation15 + $0x174] ss:$8 sps:$4 sm:$0xff]  }
 0x197   :  { %v7718_v24 = vrot.slane %v603_v16, 9  ;;  %v947_v25 = vmax.f32 %v602_v13, %v7716_v17  ;;  %v948_v26 = vmax.f32 %v601_v12, %v7717_v18  ;;  %v1238_v20 = vrot.slane %v946_v22, %v9945_v57  ;;  %8558 = vmatpush3.bf16.msra.mxu0 %v8635_v10  ;;  %8574 = vmatpush3.bf16.msra.mxu1 %v8636_v11  ;;  %v8644_v10 = vld [vmem:[#allocation12 + $0x80] sm:$0xff]   ;;  %v1868_v13 = vld [vmem:[#allocation2 + $0x14] sm:$0xff] }
 0x198   :  { %8559 = vmatprep.subr.bf16.mxu0 %v8637_v19  ;;  %8575 = vmatprep.subr.bf16.mxu1 %v8638_v27  ;;  %v1874_v12 = vpack.c.bf16 %v1867_v6, %v1866_v54  ;;  %v1870_v17 = vld [vmem:[#allocation2 + $0x2c] sm:$0xff]  ;;  %v8686_v55 = vld [vmem:[#allocation15 + $0x14] ss:$8 sps:$4 sm:$0xff]   ;;  %v8684_v56 = vld [vmem:[#allocation15 + $0x10] ss:$8 sps:$4 sm:$0xff]   ;;  %v9768_v58 = vmov 0  }
 0x199   :  { %v949_v28 = vmax.f32 %v603_v16, %v7718_v24  ;;  %v1242_v29 = vrot.slane %v947_v25, %v9945_v57  ;;  %v1246_v30 = vrot.slane %v948_v26, %v9945_v57  ;;  %v1335_v38 = vsel %vm1289_vm7, %v1238_v20, %v1334_v23  ;;  %v8647_v24 = vld [vmem:[#allocation15 + $0xf4] ss:$8 sps:$4 sm:$0xff]   ;;  %v8645_v25 = vld [vmem:[#allocation15 + $0xf0] ss:$8 sps:$4 sm:$0xff]   ;;  %v8653_v26 = vld [vmem:[#allocation15 + $0xe4] ss:$8 sps:$4 sm:$0xff]  }
 0x19a   :  { %v1875_v16 = vpack.c.bf16 %v1869_v8, %v1868_v13  ;;  %v8650_v20 = vld [vmem:[#allocation15 + $0x74] ss:$8 sps:$4 sm:$0xff]   ;;  %v8677_v21 = vld [vmem:[#allocation15 + $0xa4] ss:$8 sps:$4 sm:$0xff]   ;;  %v8687_v51 = vld [vmem:[#allocation15 + $0x80] ss:$8 sps:$4 sm:$0xff]  }
 0x19b   :  { %v1250_v31 = vrot.slane %v949_v28, %v9945_v57  ;;  %v1336_v33 = vsel %vm1291_vm8, %v1242_v29, %v1335_v38  ;;  %8560 = vmatpush3.bf16.msra.mxu0 %v8637_v19  ;;  %8576 = vmatpush3.bf16.msra.mxu1 %v8638_v27  ;;  %v8651_v27 = vld [vmem:[#allocation15 + $0xe0] ss:$8 sps:$4 sm:$0xff]   ;;  %v8648_v28 = vld [vmem:[#allocation15 + $0x70] ss:$8 sps:$4 sm:$0xff]   ;;  %v8656_v29 = vld [vmem:[#allocation15 + $0x64] ss:$8 sps:$4 sm:$0xff]  }
 0x19c   :  { %v1337_v35 = vsel %vm1293_vm9, %v1246_v30, %v1336_v33  ;;  %8561 = vmatprep.subr.bf16.mxu0 %v8639_v39  ;;  %8577 = vmatprep.subr.bf16.mxu1 %v8640_v34  ;;  %v1613_v62 = vld [vmem:[#allocation2 + $0x42] sm:$0xff]  ;;  %v8668_v40 = vld [vmem:[#allocation15 + $0x44] ss:$8 sps:$4 sm:$0xff]  }
 0x19d   :  { %v1338_v36 = vsel %vm1295_vm10, %v1250_v31, %v1337_v35  ;;  %v1743_v9 = vld [vmem:[#allocation2 + $0x43] sm:$0xff]  ;;  %v8665_v31 = vld [vmem:[#allocation15 + $0xc4] ss:$8 sps:$4 sm:$0xff]  }
 0x19e   :  { %1361 = vst.msk [vmem:[#allocation2 + $0x3a] sm:$0xff] %vm1354_vm11, %v1338_v36  ;;  %v1873_v23 = vld [vmem:[#allocation2 + $0x44] sm:$0xff]  ;;  %v8660_v36 = vld [vmem:[#allocation15 + $0x50] ss:$8 sps:$4 sm:$0xff]  }
 0x19f   :  { %8562 = vmatpush3.bf16.msra.mxu0 %v8639_v39  ;;  %8578 = vmatpush3.bf16.msra.mxu1 %v8640_v34  ;;  %v8659_v30 = vld [vmem:[#allocation15 + $0xd4] ss:$8 sps:$4 sm:$0xff]   ;;  %v8654_v38 = vld [vmem:[#allocation15 + $0x60] ss:$8 sps:$4 sm:$0xff]   ;;  %v8657_v39 = vld [vmem:[#allocation15 + $0xd0] ss:$8 sps:$4 sm:$0xff]  }
 0x1a0   :  { %8587 = vmatprep.subr.bf16.mxu0 %v8641_v37  ;;  %2648 = vmatprep.subr.bf16.mxu1 %v8647_v24  ;;  %v8663_v33 = vld [vmem:[#allocation15 + $0xc0] ss:$8 sps:$4 sm:$0xff]   ;;  %v8662_v34 = vld [vmem:[#allocation15 + $0x54] ss:$8 sps:$4 sm:$0xff]  }
 0x1a1   :  { %v8671_v35 = vld [vmem:[#allocation15 + $0xb4] ss:$8 sps:$4 sm:$0xff]  }
 0x1a5   :  { %v1389_v32 = vld [vmem:[#allocation2 + $0x39] sm:$0xff]  ;;  %v1390_v41 = vld [vmem:[#allocation2 + $0x41] sm:$0xff] }
 0x1a6   :  { %v1369_v42 = vld [vmem:[#allocation2 + $0x38] sm:$0xff]  ;;  %v1394_v43 = vpack.c.bf16 %v1390_v41, %v1389_v32  ;;  %v1370_v46 = vld [vmem:[#allocation2 + $0x40] sm:$0xff]  ;;  %v8675_v32 = vld [vmem:[#allocation15 + $0xa0] ss:$8 sps:$4 sm:$0xff]  }
 0x1a7   :  { %v1374_v49 = vpack.c.bf16 %v1370_v46, %v1369_v42  ;;  %v1741_v59 = vld [vmem:[#allocation2 + $0x33] sm:$0xff]  ;;  %v1742_v5 = vld [vmem:[#allocation2 + $0x3b] sm:$0xff] }
 0x1a8   :  { %8536 = vmatmul.mubr.msk.bf16.gmra.mxu0 %vm1354_vm11, %v1394_v43  ;;  %v1746_v14 = vpack.c.bf16 %v1741_v59, %v1740_v0  ;;  %v1612_v4 = vld [vmem:[#allocation2 + $0x3a] sm:$0xff]  ;;  %v1747_v11 = vpack.c.bf16 %v1743_v9, %v1742_v5  ;;  %v8666_v41 = vld [vmem:[#allocation15 + $0x40] ss:$8 sps:$4 sm:$0xff]   ;;  %v8692_v59 = vld [vmem:[#allocation15 + $0x4] ss:$8 sps:$4 sm:$0xff]  }
 0x1a9   :  { %8552 = vmatmul.mubr.msk.bf16.gmra.mxu1 %vm1354_vm11, %v1374_v49  ;;  %8563 = vmatprep.mubr.msk.bf16.mxu0 %vm1354_vm11, %v1614_v50  ;;  %v1617_v7 = vpack.c.bf16 %v1613_v62, %v1612_v4  ;;  %v1871_v15 = vld [vmem:[#allocation2 + $0x34] sm:$0xff]  ;;  %v1872_v22 = vld [vmem:[#allocation2 + $0x3c] sm:$0xff] }
 0x1aa   :  { %8579 = vmatprep.mubr.msk.bf16.mxu1 %vm1354_vm11, %v1744_v52  ;;  %v1876_v18 = vpack.c.bf16 %v1871_v15, %v1870_v17  ;;  %v1877_v19 = vpack.c.bf16 %v1873_v23, %v1872_v22  ;;  %v8683_v42 = vld [vmem:[#allocation15 + $0x94] ss:$8 sps:$4 sm:$0xff]   ;;  %v8681_v46 = vld [vmem:[#allocation15 + $0x90] ss:$8 sps:$4 sm:$0xff]   ;;  %v8689_v49 = vld [vmem:[#allocation15 + $0x84] ss:$8 sps:$4 sm:$0xff]  }
 0x1ab   :  { %v8674_v43 = vld [vmem:[#allocation15 + $0x34] ss:$8 sps:$4 sm:$0xff]   ;;  %v8680_v50 = vld [vmem:[#allocation15 + $0x24] ss:$8 sps:$4 sm:$0xff]   ;;  %v8678_v52 = vld [vmem:[#allocation15 + $0x20] ss:$8 sps:$4 sm:$0xff]  }
 0x1b0   :  { %8564 = vmatmul.mubr.msk.bf16.vlgmr.msra.gmra.mxu0 %vm1354_vm11, %v1615_v45  ;;  %v8690_v45 = vld [vmem:[#allocation15] ss:$8 sps:$4 sm:$0xff]  }
 0x1b1   :  { %8580 = vmatmul.mubr.msk.bf16.vlgmr.msra.gmra.mxu1 %vm1354_vm11, %v1745_v61  ;;  %8588 = vmatpush3.bf16.msra.mxu0 %v8641_v37  ;;  %v8669_v37 = vld [vmem:[#allocation15 + $0xb0] ss:$8 sps:$4 sm:$0xff]  }
 0x1b2   :  { %8567 = vmatprep.mubr.msk.bf16.mxu0 %vm1354_vm11, %v1616_v2  ;;  %8583 = vmatprep.mubr.msk.bf16.mxu1 %vm1354_vm11, %v1746_v14 }
 0x1b3   :  { %8589 = vmatprep.subr.bf16.mxu0 %v8642_v1  ;;  %2649 = vmatpush1.bf16.msra.mxu1 %v8645_v25 }
 0x1b4   :  { %2650 = vmatprep.subr.bf16.mxu1 %v8653_v26 }
 0x1b5   :  { %8590 = vmatpush3.bf16.msra.mxu0 %v8642_v1 }
 0x1b6   :  { %8591 = vmatprep.subr.bf16.mxu0 %v8643_v3 }
 0x1b7   :  { %2651 = vmatpush1.bf16.msra.mxu1 %v8651_v27 }
 0x1b8   :  { %8568 = vmatmul.mubr.msk.bf16.gmra.mxu0 %vm1354_vm11, %v1617_v7  ;;  %2652 = vmatprep.subr.bf16.mxu1 %v8659_v30 }
 0x1b9   :  { %8584 = vmatmul.mubr.msk.bf16.gmra.mxu1 %vm1354_vm11, %v1747_v11  ;;  %8592 = vmatpush3.bf16.msra.mxu0 %v8643_v3 }
 0x1ba   :  { %8595 = vmatprep.mubr.msk.bf16.mxu0 %vm1354_vm11, %v1874_v12  ;;  %8593 = vmatprep.subr.bf16.mxu0 %v8644_v10 }
 0x1bb   :  { %2653 = vmatpush1.bf16.msra.mxu1 %v8657_v39  ;;  %2680 = vmatprep.mubr.bf16.mxu1 %v9768_v58 }
 0x1bc   :  { %2654 = vmatprep.subr.bf16.mxu1 %v8665_v31 }
 0x1bd   :  { %8594 = vmatpush3.bf16.msra.mxu0 %v8644_v10 }
 0x1be   :  { %2781 = vmatprep.subr.bf16.mxu0 %v8650_v20 }
 0x1bf   :  { %2655 = vmatpush1.bf16.msra.mxu1 %v8663_v33 }
 0x1c0   :  { %8596 = vmatmul.mubr.msk.bf16.vlgmr.msra.gmra.mxu0 %vm1354_vm11, %v1875_v16  ;;  %2656 = vmatprep.subr.bf16.mxu1 %v8671_v35  ;;  %v10158_v35 = vld [vmem:[#allocation13] ss:$0 sm:$0xff] }
 0x1c1   :  { %8599 = vmatprep.mubr.msk.bf16.mxu0 %vm1354_vm11, %v1876_v18  ;;  %2782 = vmatpush1.bf16.msra.mxu0 %v8648_v28 }
 0x1c2   :  { %2783 = vmatprep.subr.bf16.mxu0 %v8656_v29 }
 0x1c3   :  { %2657 = vmatpush1.bf16.msra.mxu1 %v8669_v37 }
 0x1c4   :  { %2658 = vmatprep.subr.bf16.mxu1 %v8677_v21 }
 0x1c5   :  { %2784 = vmatpush1.bf16.msra.mxu0 %v8654_v38 }
 0x1c6   :  { %2785 = vmatprep.subr.bf16.mxu0 %v8662_v34 }
 0x1c7   :  { %2659 = vmatpush1.bf16.msra.mxu1 %v8675_v32 }
 0x1c8   :  { %8600 = vmatmul.mubr.msk.bf16.gmra.mxu0 %vm1354_vm11, %v1877_v19  ;;  %2660 = vmatprep.subr.bf16.mxu1 %v8683_v42 }
 0x1c9   :  { %2786 = vmatpush1.bf16.msra.mxu0 %v8660_v36  ;;  %2813 = vmatprep.mubr.bf16.mxu0 %v9768_v58 }
 0x1ca   :  { %2787 = vmatprep.subr.bf16.mxu0 %v8668_v40 }
 0x1cb   :  { %2661 = vmatpush1.bf16.msra.mxu1 %v8681_v46 }
 0x1cc   :  { %2662 = vmatprep.subr.bf16.mxu1 %v8689_v49 }
 0x1cd   :  { %2788 = vmatpush1.bf16.msra.mxu0 %v8666_v41 }
 0x1ce   :  { %2789 = vmatprep.subr.bf16.mxu0 %v8674_v43 }
 0x1cf   :  { %2663 = vmatpush1.bf16.msra.mxu1 %v8687_v51 }
 0x1d0   :  { %2937 = vmatprep.subr.bf16.mxu1 %v8695_v53 }
 0x1d1   :  { %2790 = vmatpush1.bf16.msra.mxu0 %v8672_v47 }
 0x1d2   :  { %2791 = vmatprep.subr.bf16.mxu0 %v8680_v50 }
 0x1d5   :  { %2792 = vmatpush1.bf16.msra.mxu0 %v8678_v52 }
 0x1d6   :  { %2793 = vmatprep.subr.bf16.mxu0 %v8686_v55 }
 0x1d9   :  { %2794 = vmatpush1.bf16.msra.mxu0 %v8684_v56 }
 0x1da   :  { %2795 = vmatprep.subr.bf16.mxu0 %v8692_v59 }
 0x1dd   :  { %2796 = vmatpush1.bf16.msra.mxu0 %v8690_v45 }
 0x252   :  { %v8533_v60 = vpop.f32.mrf.mxu0  ;;  %v8549_v61 = vpop.f32.mrf.mxu1 }
 0x253   :  { %v1584_v23 = vadd.f32 %v8549_v61, %v8533_v60 }
 0x254   :  { %v1474_v63 = vpop.f32.mrf.mxu0  ;;  %v1575_v0 = vpop.f32.mrf.mxu1 }
 0x255   :  { %v1576_v24 = vadd.f32 %v1575_v0, %v1474_v63 }
 0x256   :  { %v8534_v1 = vpop.f32.mrf.mxu0  ;;  %v8550_v2 = vpop.f32.mrf.mxu1 }
 0x257   :  { %v1587_v27 = vadd.f32 %v8550_v2, %v8534_v1 }
 0x258   :  { %v1477_v14 = vpop.f32.mrf.mxu0  ;;  %v1578_v3 = vpop.f32.mrf.mxu1 }
 0x259   :  { %v1579_v31 = vadd.f32 %v1578_v3, %v1477_v14 }
 0x268   :  { %v8537_v4 = vpop.f32.mrf.mxu0 }
 0x269   :  { %v8553_v5 = vpop.f32.mrf.mxu1 }
 0x26a   :  { %v1490_v62 = vpop.f32.mrf.mxu0  ;;  %v1600_v33 = vadd.f32 %v8553_v5, %v8537_v4 }
 0x26b   :  { %v1591_v6 = vpop.f32.mrf.mxu1 }
 0x26c   :  { %v8538_v7 = vpop.f32.mrf.mxu0  ;;  %v1592_v36 = vadd.f32 %v1591_v6, %v1490_v62 }
 0x26d   :  { %v8554_v9 = vpop.f32.mrf.mxu1 }
 0x26e   :  { %v1493_v10 = vpop.f32.mrf.mxu0  ;;  %v1603_v40 = vadd.f32 %v8554_v9, %v8538_v7 }
 0x26f   :  { %v1594_v11 = vpop.f32.mrf.mxu1 }
 0x270   :  { %v8565_v54 = vpop.f32.mrf.mxu0  ;;  %v1595_v32 = vadd.f32 %v1594_v11, %v1493_v10 }
 0x271   :  { %v8581_v12 = vpop.f32.mrf.mxu1  ;;  %v1730_v25 = vadd.f32 %v8565_v54, %v1584_v23 }
 0x272   :  { %v1697_v13 = vpop.f32.mrf.mxu0 }
 0x273   :  { %v1827_v15 = vpop.f32.mrf.mxu1  ;;  %v1728_v28 = vadd.f32 %v1697_v13, %v1576_v24  ;;  %v1860_v30 = vadd.f32 %v8581_v12, %v1730_v25 }
 0x274   :  { %v8566_v8 = vpop.f32.mrf.mxu0 }
 0x275   :  { %v8582_v16 = vpop.f32.mrf.mxu1  ;;  %v1731_v38 = vadd.f32 %v8566_v8, %v1587_v27  ;;  %v1858_v37 = vadd.f32 %v1827_v15, %v1728_v28 }
 0x276   :  { %v1700_v17 = vpop.f32.mrf.mxu0 }
 0x277   :  { %v1830_v18 = vpop.f32.mrf.mxu1  ;;  %v1729_v41 = vadd.f32 %v1700_v17, %v1579_v31  ;;  %v1861_v46 = vadd.f32 %v8582_v16, %v1731_v38 }
 0x278   :  { %v8569_v22 = vpop.f32.mrf.mxu0 }
 0x279   :  { %v8585_v26 = vpop.f32.mrf.mxu1  ;;  %v1734_v42 = vadd.f32 %v8569_v22, %v1600_v33  ;;  %v1859_v60 = vadd.f32 %v1830_v18, %v1729_v41 }
 0x27a   :  { %v1713_v19 = vpop.f32.mrf.mxu0 }
 0x27b   :  { %v1843_v39 = vpop.f32.mrf.mxu1  ;;  %v1732_v51 = vadd.f32 %v1713_v19, %v1592_v36  ;;  %v1864_v61 = vadd.f32 %v8585_v26, %v1734_v42 }
 0x27c   :  { %v8570_v20 = vpop.f32.mrf.mxu0 }
 0x27d   :  { %v8586_v47 = vpop.f32.mrf.mxu1  ;;  %v1735_v52 = vadd.f32 %v8570_v20, %v1603_v40  ;;  %v10164_v4 = vadd.f32 %v1843_v39, %v1732_v51 }
 0x27e   :  { %v1716_v29 = vpop.f32.mrf.mxu0 }
 0x27f   :  { %v1733_v53 = vadd.f32 %v1716_v29, %v1595_v32  ;;  %v1846_v0 = vpop.f32.mrf.mxu1  ;;  %v10166_v5 = vadd.f32 %v8586_v47, %v1735_v52 }
 0x280   :  { %v8597_v34 = vpop.f32.mrf.mxu0 }
 0x281   :  { %v1990_v21 = vadd.f32 %v8597_v34, %v1860_v30  ;;  %v10168_v62 = vadd.f32 %v1846_v0, %v1733_v53 }
 0x282   :  { %v1957_v43 = vpop.f32.mrf.mxu0 }
 0x283   :  { %v2005_v49 = vadd.f32 %v10158_v35, %v1990_v21  ;;  %v1988_v50 = vadd.f32 %v1957_v43, %v1858_v37 }
 0x284   :  { %v8598_v55 = vpop.f32.mrf.mxu0 }
 0x285   :  { %v2013_v56 = vmax.f32 %v2005_v49, 0.0  ;;  %v2003_v59 = vadd.f32 %v10158_v35, %v1988_v50  ;;  %v1991_v45 = vadd.f32 %v8598_v55, %v1861_v46 }
 0x286   :  { %v1960_v63 = vpop.f32.mrf.mxu0 }
 0x287   :  { %v2061_v1 = vcombine.high %v2013_v56, %v2013_v56  ;;  %v2068_v2 = vrot.slane %v2013_v56, %v9939_v48  ;;  %v2011_v14 = vmax.f32 %v2003_v59, 0.0  ;;  %v2006_v3 = vadd.f32 %v10158_v35, %v1991_v45 }
 0x288   :  { %v1989_v6 = vadd.f32 %v1960_v63, %v1859_v60  ;;  %v8601_v7 = vpop.f32.mrf.mxu0 }
 0x289   :  { %v2075_v9 = vrot.slane %v2061_v1, %v9939_v48  ;;  %v2076_v10 = vcombine.high %v2068_v2, %v2068_v2  ;;  %v7776_v11 = vrot.slane %v2068_v2, 9  ;;  %v2027_v54 = vcombine.high %v2011_v14, %v2011_v14 }
 0x28a   :  { %v2034_v12 = vrot.slane %v2011_v14, %v9939_v48  ;;  %v2014_v13 = vmax.f32 %v2006_v3, 0.0  ;;  %v2004_v15 = vadd.f32 %v10158_v35, %v1989_v6  ;;  %v1994_v8 = vadd.f32 %v8601_v7, %v1864_v61 }
 0x28b   :  { %v2077_v16 = vcombine.high %v2075_v9, %v2075_v9  ;;  %v7777_v17 = vrot.slane %v2076_v10, 9  ;;  %v7778_v18 = vrot.slane %v2075_v9, 9  ;;  %v2299_v22 = vmax.f32 %v2068_v2, %v7776_v11 }
 0x28c   :  { %v2041_v23 = vrot.slane %v2027_v54, %v9939_v48  ;;  %v2042_v19 = vcombine.high %v2034_v12, %v2034_v12  ;;  %v7768_v24 = vrot.slane %v2034_v12, 9  ;;  %v2078_v25 = vcombine.high %v2014_v13, %v2014_v13 }
 0x28d   :  { %v7779_v26 = vrot.slane %v2077_v16, 9  ;;  %v2300_v20 = vmax.f32 %v2076_v10, %v7777_v17  ;;  %v2301_v27 = vmax.f32 %v2075_v9, %v7778_v18  ;;  %v2394_v28 = vrot.slane %v2299_v22, %v9945_v57  ;;  %v1973_v9 = vpop.f32.mrf.mxu0 }
 0x28e   :  { %v2043_v29 = vcombine.high %v2041_v23, %v2041_v23  ;;  %v7769_v30 = vrot.slane %v2042_v19, 9  ;;  %v7770_v38 = vrot.slane %v2041_v23, 9  ;;  %v2291_v39 = vmax.f32 %v2034_v12, %v7768_v24 }
 0x28f   :  { %v2302_v31 = vmax.f32 %v2077_v16, %v7779_v26  ;;  %v2398_v33 = vrot.slane %v2300_v20, %v9945_v57  ;;  %v2402_v34 = vrot.slane %v2301_v27, %v9945_v57  ;;  %v2085_v36 = vrot.slane %v2014_v13, %v9939_v48 }
 0x290   :  { %v7771_v37 = vrot.slane %v2043_v29, 9  ;;  %v2292_v21 = vmax.f32 %v2042_v19, %v7769_v30  ;;  %v2293_v40 = vmax.f32 %v2041_v23, %v7770_v38  ;;  %v2362_v32 = vrot.slane %v2291_v39, %v9945_v57 }
 0x291   :  { %v2406_v41 = vrot.slane %v2302_v31, %v9945_v57  ;;  %v2494_v42 = vsel %vm1283_vm4, %v2398_v33, %v2394_v28  ;;  %v2092_v43 = vrot.slane %v2078_v25, %v9939_v48  ;;  %v2093_v46 = vcombine.high %v2085_v36, %v2085_v36 }
 0x292   :  { %v2495_v47 = vsel %vm1285_vm5, %v2402_v34, %v2494_v42  ;;  %v2294_v49 = vmax.f32 %v2043_v29, %v7771_v37  ;;  %v2366_v50 = vrot.slane %v2292_v21, %v9945_v57  ;;  %v2370_v51 = vrot.slane %v2293_v40, %v9945_v57  ;;  %v8602_v37 = vpop.f32.mrf.mxu0 }
 0x293   :  { %v2094_v52 = vcombine.high %v2092_v43, %v2092_v43  ;;  %v7780_v53 = vrot.slane %v2085_v36, 9  ;;  %v7781_v55 = vrot.slane %v2093_v46, 9  ;;  %v7782_v56 = vrot.slane %v2092_v43, 9 }
 0x294   :  { %v2374_v59 = vrot.slane %v2294_v49, %v9945_v57  ;;  %v2487_v45 = vsel %vm1283_vm4, %v2366_v50, %v2362_v32  ;;  %v2496_v60 = vsel %vm1287_vm6, %v2406_v41, %v2495_v47  ;;  %v2012_v61 = vmax.f32 %v2004_v15, 0.0 }
 0x295   :  { %v2488_v63 = vsel %vm1285_vm5, %v2370_v51, %v2487_v45  ;;  %v7783_v0 = vrot.slane %v2094_v52, 9  ;;  %v2303_v1 = vmax.f32 %v2085_v36, %v7780_v53  ;;  %v2304_v2 = vmax.f32 %v2093_v46, %v7781_v55  ;;  %v1976_v45 = vpop.f32.mrf.mxu0 }
 0x296   :  { %v2305_v14 = vmax.f32 %v2092_v43, %v7782_v56  ;;  %v2044_v3 = vcombine.high %v2012_v61, %v2012_v61  ;;  %v2051_v6 = vrot.slane %v2012_v61, %v9939_v48  ;;  %v2489_v7 = vsel %vm1287_vm6, %v2374_v59, %v2488_v63 }
 0x297   :  { %v2306_v10 = vmax.f32 %v2094_v52, %v7783_v0  ;;  %v2410_v11 = vrot.slane %v2303_v1, %v9945_v57  ;;  %v2414_v54 = vrot.slane %v2304_v2, %v9945_v57  ;;  %v2009_v12 = vadd.f32 %v10158_v35, %v1994_v8 }
 0x298   :  { %v2418_v13 = vrot.slane %v2305_v14, %v9945_v57  ;;  %v2058_v15 = vrot.slane %v2044_v3, %v9939_v48  ;;  %v2059_v16 = vcombine.high %v2051_v6, %v2051_v6  ;;  %v7772_v17 = vrot.slane %v2051_v6, 9 }
 0x299   :  { %v2422_v18 = vrot.slane %v2306_v10, %v9945_v57  ;;  %v2497_v22 = vsel %vm1289_vm7, %v2410_v11, %v2496_v60  ;;  %v2017_v23 = vmax.f32 %v2009_v12, 0.0  ;;  %v1992_v19 = vadd.f32 %v1973_v9, %v10164_v4  ;;  %v8693_v11 = vld [vmem:[#allocation15 + $0x170] ss:$8 sps:$4 sm:$0xff]  }
 0x29a   :  { %v2498_v24 = vsel %vm1291_vm8, %v2414_v54, %v2497_v22  ;;  %v2060_v25 = vcombine.high %v2058_v15, %v2058_v15  ;;  %v7773_v26 = vrot.slane %v2059_v16, 9  ;;  %v7774_v20 = vrot.slane %v2058_v15, 9 }
 0x29b   :  { %v2499_v8 = vsel %vm1293_vm9, %v2418_v13, %v2498_v24  ;;  %v2295_v27 = vmax.f32 %v2051_v6, %v7772_v17  ;;  %v2129_v28 = vcombine.high %v2017_v23, %v2017_v23  ;;  %v2136_v29 = vrot.slane %v2017_v23, %v9939_v48 }
 0x29c   :  { %v2500_v30 = vsel %vm1295_vm10, %v2422_v18, %v2499_v8  ;;  %v7775_v38 = vrot.slane %v2060_v25, 9  ;;  %v2296_v39 = vmax.f32 %v2059_v16, %v7773_v26  ;;  %v2297_v31 = vmax.f32 %v2058_v15, %v7774_v20  ;;  %v8698_v16 = vld [vmem:[#allocation15 + $0x164] ss:$8 sps:$4 sm:$0xff]   ;;  %v8696_v20 = vld [vmem:[#allocation15 + $0x160] ss:$8 sps:$4 sm:$0xff]  }
 0x29d   :  { %2520 = vst [vmem:[#allocation3 + $0x9] sm:$0xff] %v2500_v30  ;;  %v2378_v33 = vrot.slane %v2295_v27, %v9945_v57  ;;  %v2143_v4 = vrot.slane %v2129_v28, %v9939_v48  ;;  %v2144_v34 = vcombine.high %v2136_v29, %v2136_v29  ;;  %v7792_v36 = vrot.slane %v2136_v29, 9 }
 0x29e   :  { %v2298_v21 = vmax.f32 %v2060_v25, %v7775_v38  ;;  %v2382_v40 = vrot.slane %v2296_v39, %v9945_v57  ;;  %v2386_v32 = vrot.slane %v2297_v31, %v9945_v57  ;;  %v2007_v41 = vadd.f32 %v10158_v35, %v1992_v19 }
 0x29f   :  { %v2490_v42 = vsel %vm1289_vm7, %v2378_v33, %v2489_v7  ;;  %v2145_v43 = vcombine.high %v2143_v4, %v2143_v4  ;;  %v7793_v46 = vrot.slane %v2144_v34, 9  ;;  %v7794_v47 = vrot.slane %v2143_v4, 9 }
 0x2a0   :  { %v2390_v49 = vrot.slane %v2298_v21, %v9945_v57  ;;  %v2491_v50 = vsel %vm1291_vm8, %v2382_v40, %v2490_v42  ;;  %v2315_v51 = vmax.f32 %v2136_v29, %v7792_v36  ;;  %v2015_v52 = vmax.f32 %v2007_v41, 0.0 }
 0x2a1   :  { %v2492_v53 = vsel %vm1293_vm9, %v2386_v32, %v2491_v50  ;;  %v7795_v55 = vrot.slane %v2145_v43, 9  ;;  %v2316_v56 = vmax.f32 %v2144_v34, %v7793_v46  ;;  %v2317_v59 = vmax.f32 %v2143_v4, %v7794_v47 }
 0x2a2   :  { %v2493_v60 = vsel %vm1295_vm10, %v2390_v49, %v2492_v53  ;;  %v2458_v61 = vrot.slane %v2315_v51, %v9945_v57  ;;  %v2095_v63 = vcombine.high %v2015_v52, %v2015_v52  ;;  %v2102_v0 = vrot.slane %v2015_v52, %v9939_v48  ;;  %v8704_v51 = vld [vmem:[#allocation15 + $0x144] ss:$8 sps:$4 sm:$0xff]  }
 0x2a3   :  { %2519 = vst [vmem:[#allocation3 + $0x1] sm:$0xff] %v2493_v60  ;;  %v2318_v1 = vmax.f32 %v2145_v43, %v7795_v55  ;;  %v2462_v2 = vrot.slane %v2316_v56, %v9945_v57  ;;  %v2466_v14 = vrot.slane %v2317_v59, %v9945_v57  ;;  %v1995_v3 = vadd.f32 %v8602_v37, %v10166_v5  ;;  %v8699_v43 = vld [vmem:[#allocation15 + $0x150] ss:$8 sps:$4 sm:$0xff]  }
 0x2a4   :  { %v2109_v6 = vrot.slane %v2095_v63, %v9939_v48  ;;  %v2110_v7 = vcombine.high %v2102_v0, %v2102_v0  ;;  %v7784_v9 = vrot.slane %v2102_v0, 9  ;;  %v1993_v10 = vadd.f32 %v1976_v45, %v10168_v62 }
 0x2a5   :  { %v2470_v54 = vrot.slane %v2318_v1, %v9945_v57  ;;  %v2508_v12 = vsel %vm1283_vm4, %v2462_v2, %v2458_v61  ;;  %v2010_v13 = vadd.f32 %v10158_v35, %v1995_v3  ;;  %v2549_v15 = vpack.c.bf16 %v2500_v30, %v2493_v60  ;;  %v8701_v30 = vld [vmem:[#allocation15 + $0x154] ss:$8 sps:$4 sm:$0xff]  }
 0x2a6   :  { %v2509_v17 = vsel %vm1285_vm5, %v2466_v14, %v2508_v12  ;;  %v2111_v18 = vcombine.high %v2109_v6, %v2109_v6  ;;  %v7785_v22 = vrot.slane %v2110_v7, 9  ;;  %v7786_v5 = vrot.slane %v2109_v6, 9  ;;  %v8702_v14 = vld [vmem:[#allocation15 + $0x140] ss:$8 sps:$4 sm:$0xff]  }
 0x2a7   :  { %v2307_v23 = vmax.f32 %v2102_v0, %v7784_v9  ;;  %v2018_v19 = vmax.f32 %v2010_v13, 0.0  ;;  %v2008_v24 = vadd.f32 %v10158_v35, %v1993_v10  ;;  %2681 = vmatmul.mubr.bf16.vlgmr.msra.gmra.mxu1 %v2549_v15  ;;  %v2510_v28 = vsel %vm1287_vm6, %v2470_v54, %v2509_v17  ;;  %v8707_v10 = vld [vmem:[#allocation15 + $0x134] ss:$8 sps:$4 sm:$0xff]  }
 0x2a8   :  { %v7787_v62 = vrot.slane %v2111_v18, 9  ;;  %v2308_v25 = vmax.f32 %v2110_v7, %v7785_v22  ;;  %v2309_v26 = vmax.f32 %v2109_v6, %v7786_v5  ;;  %2938 = vmatpush1.bf16.msra.mxu1 %v8693_v11  ;;  %2690 = vmatprep.mubr.bf16.mxu1 %v9768_v58 }
 0x2a9   :  { %v2146_v8 = vcombine.high %v2018_v19, %v2018_v19  ;;  %v2153_v27 = vrot.slane %v2018_v19, %v9939_v48  ;;  %v2016_v29 = vmax.f32 %v2008_v24, 0.0  ;;  %2939 = vmatprep.subr.bf16.mxu1 %v8698_v16  ;;  %v2426_v39 = vrot.slane %v2307_v23, %v9945_v57  ;;  %v8705_v19 = vld [vmem:[#allocation15 + $0x130] ss:$8 sps:$4 sm:$0xff]  }
 0x2aa   :  { %v2310_v38 = vmax.f32 %v2111_v18, %v7787_v62  ;;  %v2430_v35 = vrot.slane %v2308_v25, %v9945_v57  ;;  %v2434_v31 = vrot.slane %v2309_v26, %v9945_v57  ;;  %v2523_v33 = vld [vmem:[#allocation3] sm:$0xff]  ;;  %v2524_v4 = vld [vmem:[#allocation3 + $0x8] sm:$0xff] }
 0x2ab   :  { %v2160_v34 = vrot.slane %v2146_v8, %v9939_v48  ;;  %v2161_v36 = vcombine.high %v2153_v27, %v2153_v27  ;;  %v7796_v37 = vrot.slane %v2153_v27, 9  ;;  %v2112_v21 = vcombine.high %v2016_v29, %v2016_v29  ;;  %v8710_v25 = vld [vmem:[#allocation15 + $0x124] ss:$8 sps:$4 sm:$0xff]  }
 0x2ac   :  { %v2438_v40 = vrot.slane %v2310_v38, %v9945_v57  ;;  %v2501_v32 = vsel %vm1283_vm4, %v2430_v35, %v2426_v39  ;;  %v2119_v41 = vrot.slane %v2016_v29, %v9939_v48  ;;  %v2527_v42 = vpack.c.bf16 %v2524_v4, %v2523_v33  ;;  %2940 = vmatpush1.bf16.msra.mxu1 %v8696_v20  ;;  %v8711_v38 = vld [vmem:[#allocation15 + $0x110] ss:$8 sps:$4 sm:$0xff]   ;;  %v8716_v39 = vld [vmem:[#allocation15 + $0x104] ss:$8 sps:$4 sm:$0xff]   ;;  %v8714_v33 = vld [vmem:[#allocation15 + $0x100] ss:$8 sps:$4 sm:$0xff]  }
 0x2ad   :  { %v2502_v46 = vsel %vm1285_vm5, %v2434_v31, %v2501_v32  ;;  %v2162_v47 = vcombine.high %v2160_v34, %v2160_v34  ;;  %v7797_v49 = vrot.slane %v2161_v36, 9  ;;  %v7798_v50 = vrot.slane %v2160_v34, 9  ;;  %2941 = vmatprep.subr.bf16.mxu1 %v8701_v30  ;;  %v8713_v30 = vld [vmem:[#allocation15 + $0x114] ss:$8 sps:$4 sm:$0xff]  }
 0x2ae   :  { %v2319_v52 = vmax.f32 %v2153_v27, %v7796_v37  ;;  %v2126_v53 = vrot.slane %v2112_v21, %v9939_v48  ;;  %v2127_v55 = vcombine.high %v2119_v41, %v2119_v41  ;;  %v7788_v56 = vrot.slane %v2119_v41, 9  ;;  %2814 = vmatmul.mubr.bf16.vlgmr.msra.gmra.mxu0 %v2527_v42 }
 0x2af   :  { %v7799_v59 = vrot.slane %v2162_v47, 9  ;;  %v2320_v45 = vmax.f32 %v2161_v36, %v7797_v49  ;;  %v2321_v60 = vmax.f32 %v2160_v34, %v7798_v50  ;;  %v2503_v61 = vsel %vm1287_vm6, %v2438_v40, %v2502_v46  ;;  %2823 = vmatprep.mubr.bf16.mxu0 %v9768_v58  ;;  %v2834_v34 = vld [vmem:[#allocation3 + $0x2] sm:$0xff]  ;;  %v2835_v36 = vld [vmem:[#allocation3 + $0xa] sm:$0xff] }
 0x2b0   :  { %v2474_v63 = vrot.slane %v2319_v52, %v9945_v57  ;;  %v2128_v0 = vcombine.high %v2126_v53, %v2126_v53  ;;  %v7789_v1 = vrot.slane %v2127_v55, 9  ;;  %v7790_v2 = vrot.slane %v2126_v53, 9  ;;  %2942 = vmatpush1.bf16.msra.mxu1 %v8699_v43 }
 0x2b1   :  { %v2322_v3 = vmax.f32 %v2162_v47, %v7799_v59  ;;  %v2478_v6 = vrot.slane %v2320_v45, %v9945_v57  ;;  %v2482_v7 = vrot.slane %v2321_v60, %v9945_v57  ;;  %v2311_v9 = vmax.f32 %v2119_v41, %v7788_v56  ;;  %2943 = vmatprep.subr.bf16.mxu1 %v8704_v51 }
 0x2b2   :  { %v2511_v11 = vsel %vm1289_vm7, %v2474_v63, %v2510_v28  ;;  %v7791_v54 = vrot.slane %v2128_v0, 9  ;;  %v2312_v12 = vmax.f32 %v2127_v55, %v7789_v1  ;;  %v2313_v13 = vmax.f32 %v2126_v53, %v7790_v2  ;;  %v8708_v28 = vld [vmem:[#allocation15 + $0x120] ss:$8 sps:$4 sm:$0xff]  }
 0x2b3   :  { %v2486_v15 = vrot.slane %v2322_v3, %v9945_v57  ;;  %v2512_v16 = vsel %vm1291_vm8, %v2478_v6, %v2511_v11  ;;  %v2442_v17 = vrot.slane %v2311_v9, %v9945_v57  ;;  %v2838_v37 = vpack.c.bf16 %v2835_v36, %v2834_v34 }
 0x2b4   :  { %v2513_v18 = vsel %vm1293_vm9, %v2482_v7, %v2512_v16  ;;  %v2314_v22 = vmax.f32 %v2128_v0, %v7791_v54  ;;  %v2446_v5 = vrot.slane %v2312_v12, %v9945_v57  ;;  %v2450_v23 = vrot.slane %v2313_v13, %v9945_v57  ;;  %2944 = vmatpush1.bf16.msra.mxu1 %v8702_v14 }
 0x2b5   :  { %v2514_v24 = vsel %vm1295_vm10, %v2486_v15, %v2513_v18  ;;  %v2504_v62 = vsel %vm1289_vm7, %v2442_v17, %v2503_v61  ;;  %2945 = vmatprep.subr.bf16.mxu1 %v8707_v10 }
 0x2b6   :  { %2522 = vst [vmem:[#allocation3 + $0x21] sm:$0xff] %v2514_v24  ;;  %v2454_v26 = vrot.slane %v2314_v22, %v9945_v57  ;;  %v2505_v20 = vsel %vm1291_vm8, %v2446_v5, %v2504_v62 }
 0x2b7   :  { %v2506_v8 = vsel %vm1293_vm9, %v2450_v23, %v2505_v20 }
 0x2b8   :  { %v2507_v27 = vsel %vm1295_vm10, %v2454_v26, %v2506_v8  ;;  %2946 = vmatpush1.bf16.msra.mxu1 %v8705_v19 }
 0x2b9   :  { %2521 = vst [vmem:[#allocation3 + $0x19] sm:$0xff] %v2507_v27  ;;  %v2550_v29 = vpack.c.bf16 %v2514_v24, %v2507_v27  ;;  %2947 = vmatprep.subr.bf16.mxu1 %v8710_v25 }
 0x2bb   :  { %2691 = vmatmul.mubr.bf16.gmra.mxu1 %v2550_v29 }
 0x2bc   :  { %2948 = vmatpush1.bf16.msra.mxu1 %v8708_v28  ;;  %2969 = vmatprep.mubr.bf16.mxu1 %v9768_v58 }
 0x2bd   :  { %2949 = vmatprep.subr.bf16.mxu1 %v8713_v30  ;;  %v2837_v40 = vld [vmem:[#allocation3 + $0x22] sm:$0xff] }
 0x2c0   :  { %v2525_v35 = vld [vmem:[#allocation3 + $0x18] sm:$0xff]  ;;  %v2526_v31 = vld [vmem:[#allocation3 + $0x20] sm:$0xff]  ;;  %2950 = vmatpush1.bf16.msra.mxu1 %v8711_v38 }
 0x2c1   :  { %v2528_v4 = vpack.c.bf16 %v2526_v31, %v2525_v35  ;;  %2951 = vmatprep.subr.bf16.mxu1 %v8716_v39  ;;  %v2836_v21 = vld [vmem:[#allocation3 + $0x1a] sm:$0xff] }
 0x2c2   :  { %v2839_v32 = vpack.c.bf16 %v2837_v40, %v2836_v21 }
 0x2c3   :  { %2824 = vmatmul.mubr.bf16.gmra.mxu0 %v2528_v4 }
 0x2c4   :  { %2952 = vmatpush1.bf16.msra.mxu1 %v8714_v33 }
 0x2c7   :  { %2970 = vmatmul.mubr.bf16.vlgmr.msra.gmra.mxu1 %v2838_v37 }
 0x2c8   :  { %2979 = vmatprep.mubr.bf16.mxu1 %v9768_v58 }
 0x2cf   :  { %2980 = vmatmul.mubr.bf16.gmra.mxu1 %v2839_v32 }
 0x2d0   :  { %9717 = shalt.err (!%p9714_p7)  }
 0x2d1   :  { %160 = dma.hbm_to_vmem [thread:$0]  %s10506_s7, 65536, %s158_s20, [#allocation6] }
 0x2d2   :  { %s9726_s2 = scalar_lea.vmem %s170_s22, 4096  ;;  %p9731_p9 = scmp.lt.s32.totalorder %s170_s22, %s170_s22 }
 0x2d3   :  { %p9727_p8 = scmp.ne.s32.totalorder %s170_s22, %s9726_s2  ;;  %p9732_p10 = scmp.lt.s32.totalorder %s9726_s2, %s9726_s2 }
 0x2d5   :  { %p9733_p11 = por %p9732_p10, %p9731_p9 }
 0x2d7   :  { %p9734_p12 = pnand %p9733_p11, %p9727_p8 }
 0x2d9   :  { %9737 = shalt.err (!%p9734_p12)  }
 0x2da   :  { %172 = dma.hbm_to_vmem [thread:$0]  %s10508_s9, 4096, %s170_s22, [#allocation6 + $0x1]  ;;  %v2998_v53 = vld [vmem:[#allocation16] sm:$0x3]  ;;  %v3006_v56 = vsub.s32 1, %v9933_v44  ;;  %v9771_v9 = vmov 572653568  }
 0x2db   :  { %v10265_v60 = vrot.slane %v2998_v53, %v9945_v57  ;;  %v3203_v10 = vunpack.c.l.s4 %v9771_v9  ;;  %v9772_v16 = vmov 1935823168  }
 0x2dc   :  { %v10269_v2 = vrot.slane %v2998_v53, %v3006_v56  ;;  %v3343_v17 = vunpack.c.l.s4 %v9772_v16 }
 0x2dd   :  { %v3204_v24 = vunpack.c.0.s8 %v3203_v10 }
 0x2de   :  { %v3344_v29 = vunpack.c.0.s8 %v3343_v17 }
 0x2df   :  { %v10278_v4 = vsub.s32 %v3204_v24, %v9933_v44 }
 0x367   :  { %v2682_v58 = vpop.f32.mrf.mxu1 }
 0x369   :  { %v2684_v41 = vpop.f32.mrf.mxu1 }
 0x36b   :  { %v2686_v42 = vpop.f32.mrf.mxu1 }
 0x36d   :  { %v2688_v43 = vpop.f32.mrf.mxu1 }
 0x36e   :  { %v2815_v46 = vpop.f32.mrf.mxu0 }
 0x36f   :  { %v2816_v45 = vadd.f32 %v2815_v46, %v2682_v58 }
 0x370   :  { %v2817_v49 = vpop.f32.mrf.mxu0 }
 0x371   :  { %v2818_v63 = vadd.f32 %v2817_v49, %v2684_v41  ;;  %v10282_v41 = vsub.s32 %v3344_v29, %v9933_v44 }
 0x372   :  { %v2819_v51 = vpop.f32.mrf.mxu0 }
 0x373   :  { %v2820_v3 = vadd.f32 %v2819_v51, %v2686_v42 }
 0x374   :  { %v2821_v55 = vpop.f32.mrf.mxu0 }
 0x375   :  { %v2822_v54 = vadd.f32 %v2821_v55, %v2688_v43 }
 0x37b   :  { %v2692_v47 = vpop.f32.mrf.mxu1 }
 0x37d   :  { %v2694_v50 = vpop.f32.mrf.mxu1 }
 0x37f   :  { %v2696_v52 = vpop.f32.mrf.mxu1 }
 0x381   :  { %v2698_v59 = vpop.f32.mrf.mxu1 }
 0x383   :  { %v2825_v0 = vpop.f32.mrf.mxu0 }
 0x384   :  { %v2826_v19 = vadd.f32 %v2825_v0, %v2692_v47 }
 0x385   :  { %v2827_v12 = vpop.f32.mrf.mxu0 }
 0x386   :  { %v2828_v26 = vadd.f32 %v2827_v12, %v2694_v50 }
 0x387   :  { %v2971_v61 = vpop.f32.mrf.mxu1  ;;  %v2829_v20 = vpop.f32.mrf.mxu0 }
 0x388   :  { %v2990_v1 = vadd.f32 %v2971_v61, %v2816_v45  ;;  %v2830_v47 = vadd.f32 %v2829_v20, %v2696_v52 }
 0x389   :  { %v2973_v14 = vpop.f32.mrf.mxu1  ;;  %v2831_v37 = vpop.f32.mrf.mxu0 }
 0x38a   :  { %v3010_v6 = vadd.f32 %v10265_v60, %v2990_v1  ;;  %v2991_v7 = vadd.f32 %v2973_v14, %v2818_v63  ;;  %v2832_v53 = vadd.f32 %v2831_v37, %v2698_v59 }
 0x38b   :  { %v2975_v11 = vpop.f32.mrf.mxu1 }
 0x38c   :  { %v3011_v13 = vadd.f32 %v10269_v2, %v2991_v7  ;;  %v2992_v15 = vadd.f32 %v2975_v11, %v2820_v3  ;;  %v3018_v22 = vmax.f32 %v3010_v6, 0.0 }
 0x38d   :  { %v2977_v18 = vpop.f32.mrf.mxu1 }
 0x38e   :  { %v3019_v5 = vmax.f32 %v3011_v13, 0.0  ;;  %v2993_v23 = vadd.f32 %v2977_v18, %v2822_v54  ;;  %v3012_v62 = vadd.f32 %v10265_v60, %v2992_v15 }
 0x38f   :  { %v2981_v25 = vpop.f32.mrf.mxu1 }
 0x390   :  { %v3034_v8 = vcombine.low %v3018_v22, %v3019_v5  ;;  %v3035_v27 = vcombine.high %v3018_v22, %v3019_v5  ;;  %v3013_v28 = vadd.f32 %v10269_v2, %v2993_v23  ;;  %v2994_v30 = vadd.f32 %v2981_v25, %v2826_v19 }
 0x391   :  { %v2983_v38 = vpop.f32.mrf.mxu1  ;;  %v3020_v34 = vmax.f32 %v3012_v62, 0.0 }
 0x392   :  { %v3042_v39 = vrot.slane %v3034_v8, %v9939_v48  ;;  %v3049_v35 = vrot.slane %v3035_v27, %v9939_v48  ;;  %v3021_v31 = vmax.f32 %v3013_v28, 0.0  ;;  %v2995_v33 = vadd.f32 %v2983_v38, %v2828_v26 }
 0x393   :  { %v3014_v36 = vadd.f32 %v10265_v60, %v2994_v30  ;;  %v2985_v3 = vpop.f32.mrf.mxu1 }
 0x394   :  { %v3050_v21 = vcombine.high %v3042_v39, %v3042_v39  ;;  %v3051_v40 = vcombine.high %v3049_v35, %v3049_v35  ;;  %v7848_v32 = vrot.slane %v3042_v39, 9  ;;  %v7850_v58 = vrot.slane %v3049_v35, 9 }
 0x395   :  { %v3052_v42 = vcombine.low %v3020_v34, %v3021_v31  ;;  %v3053_v43 = vcombine.high %v3020_v34, %v3021_v31  ;;  %v3015_v46 = vadd.f32 %v10269_v2, %v2995_v33  ;;  %v3022_v14 = vmax.f32 %v3014_v36, 0.0  ;;  %v2987_v33 = vpop.f32.mrf.mxu1 }
 0x396   :  { %v7849_v49 = vrot.slane %v3050_v21, 9  ;;  %v7851_v50 = vrot.slane %v3051_v40, 9  ;;  %v3170_v51 = vmax.f32 %v3042_v39, %v7848_v32  ;;  %v3172_v0 = vmax.f32 %v3049_v35, %v7850_v58 }
 0x397   :  { %v3060_v55 = vrot.slane %v3052_v42, %v9939_v48  ;;  %v3067_v45 = vrot.slane %v3053_v43, %v9939_v48  ;;  %v3023_v61 = vmax.f32 %v3015_v46, 0.0  ;;  %v2996_v16 = vadd.f32 %v2985_v3, %v2830_v47 }
 0x398   :  { %v3171_v63 = vmax.f32 %v3050_v21, %v7849_v49  ;;  %v3173_v1 = vmax.f32 %v3051_v40, %v7851_v50  ;;  %v3208_v52 = vrot.slane %v3170_v51, %v10278_v4  ;;  %v3222_v17 = vrot.slane %v3172_v0, %v10278_v4 }
 0x399   :  { %v3068_v6 = vcombine.high %v3060_v55, %v3060_v55  ;;  %v3069_v7 = vcombine.high %v3067_v45, %v3067_v45  ;;  %v7852_v9 = vrot.slane %v3060_v55, 9  ;;  %v7854_v10 = vrot.slane %v3067_v45, 9 }
 0x39a   :  { %v3215_v11 = vrot.slane %v3171_v63, %v10278_v4  ;;  %v3070_v54 = vcombine.low %v3022_v14, %v3023_v61  ;;  %v3071_v59 = vcombine.high %v3022_v14, %v3023_v61  ;;  %v3229_v23 = vrot.slane %v3173_v1, %v10278_v4 }
 0x39b   :  { %v7853_v12 = vrot.slane %v3068_v6, 9  ;;  %v7855_v13 = vrot.slane %v3069_v7, 9  ;;  %v3174_v15 = vmax.f32 %v3060_v55, %v7852_v9  ;;  %v3176_v62 = vmax.f32 %v3067_v45, %v7854_v10 }
 0x39c   :  { %v3314_v18 = vsel %vm1283_vm4, %v3215_v11, %v3208_v52  ;;  %v3078_v22 = vrot.slane %v3070_v54, %v9939_v48  ;;  %v3085_v5 = vrot.slane %v3071_v59, %v9939_v48  ;;  %v3016_v47 = vadd.f32 %v10265_v60, %v2996_v16 }
 0x39d   :  { %v3315_v19 = vsel %vm1291_vm8, %v3215_v11, %v3314_v18  ;;  %v3175_v24 = vmax.f32 %v3068_v6, %v7853_v12  ;;  %v3177_v26 = vmax.f32 %v3069_v7, %v7855_v13  ;;  %v3236_v28 = vrot.slane %v3174_v15, %v10278_v4 }
 0x39e   :  { %v3316_v25 = vsel %vm1285_vm5, %v3222_v17, %v3315_v19  ;;  %v3086_v20 = vcombine.high %v3078_v22, %v3078_v22  ;;  %v3087_v8 = vcombine.high %v3085_v5, %v3085_v5  ;;  %v7856_v30 = vrot.slane %v3078_v22, 9 }
 0x39f   :  { %v3317_v27 = vsel %vm1293_vm9, %v3222_v17, %v3316_v25  ;;  %v3243_v29 = vrot.slane %v3175_v24, %v10278_v4  ;;  %v7858_v35 = vrot.slane %v3085_v5, 9  ;;  %v3250_v36 = vrot.slane %v3176_v62, %v10278_v4 }
 0x3a0   :  { %v3318_v38 = vsel %vm1287_vm6, %v3229_v23, %v3317_v27  ;;  %v7857_v39 = vrot.slane %v3086_v20, 9  ;;  %v7859_v31 = vrot.slane %v3087_v8, 9  ;;  %v3178_v21 = vmax.f32 %v3078_v22, %v7856_v30 }
 0x3a1   :  { %v3319_v34 = vsel %vm1295_vm10, %v3229_v23, %v3318_v38  ;;  %v3320_v37 = vsel %vm1283_vm4, %v3243_v29, %v3236_v28  ;;  %v3180_v42 = vmax.f32 %v3085_v5, %v7858_v35  ;;  %v3257_v43 = vrot.slane %v3177_v26, %v10278_v4 }
 0x3a2   :  { %v10304_v40 = vrot.slane %v3319_v34, %v10282_v41  ;;  %v3321_v32 = vsel %vm1291_vm8, %v3243_v29, %v3320_v37  ;;  %v3179_v58 = vmax.f32 %v3086_v20, %v7857_v39  ;;  %v2997_v49 = vadd.f32 %v2987_v33, %v2832_v53 }
 0x3a3   :  { %v3322_v46 = vsel %vm1285_vm5, %v3250_v36, %v3321_v32  ;;  %v3181_v51 = vmax.f32 %v3087_v8, %v7859_v31  ;;  %v3264_v55 = vrot.slane %v3178_v21, %v10278_v4  ;;  %v3278_v1 = vrot.slane %v3180_v42, %v10278_v4 }
 0x3a4   :  { %v3323_v50 = vsel %vm1293_vm9, %v3250_v36, %v3322_v46  ;;  %v3271_v45 = vrot.slane %v3179_v58, %v10278_v4  ;;  %v3017_v63 = vadd.f32 %v10269_v2, %v2997_v49  ;;  %v3024_v3 = vmax.f32 %v3016_v47, 0.0 }
 0x3a5   :  { %v3324_v61 = vsel %vm1287_vm6, %v3257_v43, %v3323_v50  ;;  %v3285_v7 = vrot.slane %v3181_v51, %v10278_v4 }
 0x3a6   :  { %v3325_v0 = vsel %vm1295_vm10, %v3257_v43, %v3324_v61  ;;  %v3326_v14 = vsel %vm1283_vm4, %v3271_v45, %v3264_v55  ;;  %v3025_v6 = vmax.f32 %v3017_v63, 0.0 }
 0x3a7   :  { %v10319_v60 = vrot.slane %v3325_v0, %v10282_v41  ;;  %v3327_v53 = vsel %vm1291_vm8, %v3271_v45, %v3326_v14 }
 0x3a8   :  { %v3328_v9 = vsel %vm1285_vm5, %v3278_v1, %v3327_v53  ;;  %v3088_v2 = vcombine.low %v3024_v3, %v3025_v6  ;;  %v3089_v52 = vcombine.high %v3024_v3, %v3025_v6 }
 0x3a9   :  { %v3329_v10 = vsel %vm1293_vm9, %v3278_v1, %v3328_v9 }
 0x3aa   :  { %v3330_v11 = vsel %vm1287_vm6, %v3285_v7, %v3329_v10  ;;  %v3096_v59 = vrot.slane %v3088_v2, %v9939_v48  ;;  %v3103_v12 = vrot.slane %v3089_v52, %v9939_v48 }
 0x3ab   :  { %v3331_v54 = vsel %vm1295_vm10, %v3285_v7, %v3330_v11 }
 0x3ac   :  { %v10330_v13 = vrot.slane %v3331_v54, %v10282_v41  ;;  %v3104_v15 = vcombine.high %v3096_v59, %v3096_v59  ;;  %v3105_v16 = vcombine.high %v3103_v12, %v3103_v12  ;;  %v7860_v17 = vrot.slane %v3096_v59, 9 }
 0x3ad   :  { %v7862_v18 = vrot.slane %v3103_v12, 9 }
 0x3ae   :  { %v7861_v22 = vrot.slane %v3104_v15, 9  ;;  %v7863_v5 = vrot.slane %v3105_v16, 9  ;;  %v3182_v23 = vmax.f32 %v3096_v59, %v7860_v17 }
 0x3af   :  { %v3184_v24 = vmax.f32 %v3103_v12, %v7862_v18 }
 0x3b0   :  { %v3183_v19 = vmax.f32 %v3104_v15, %v7861_v22  ;;  %v3185_v62 = vmax.f32 %v3105_v16, %v7863_v5  ;;  %v3292_v25 = vrot.slane %v3182_v23, %v10278_v4 }
 0x3b1   :  { %v3306_v20 = vrot.slane %v3184_v24, %v10278_v4 }
 0x3b2   :  { %v3299_v26 = vrot.slane %v3183_v19, %v10278_v4  ;;  %v3313_v27 = vrot.slane %v3185_v62, %v10278_v4 }
 0x3b4   :  { %v3332_v48 = vsel %vm1283_vm4, %v3299_v26, %v3292_v25 }
 0x3b5   :  { %v3333_v8 = vsel %vm1291_vm8, %v3299_v26, %v3332_v48 }
 0x3b6   :  { %v3334_v28 = vsel %vm1285_vm5, %v3306_v20, %v3333_v8 }
 0x3b7   :  { %v3335_v29 = vsel %vm1293_vm9, %v3306_v20, %v3334_v28 }
 0x3b8   :  { %v3336_v30 = vsel %vm1287_vm6, %v3313_v27, %v3335_v29 }
 0x3b9   :  { %v3337_v38 = vsel %vm1295_vm10, %v3313_v27, %v3336_v30 }
 0x3ba   :  { %v10343_v39 = vrot.slane %v3337_v38, %v10282_v41 }
 0x3bb   :  { %9748 = dma.done.wait [#allocation6], 65536 }
 0x3bc   :  { %9749 = vsyncadd [#allocation6], 4294901760  ;;  %v9773_v35 = vmov 1966171168   ;;  %v3378_v33 = vcombine.low %v10304_v40, %v10330_v13  ;;  %v8717_v36 = vld [vmem:[#allocation4 + $0xe4] ss:$16 sps:$4 sm:$0xff]  }
 0x3bd   :  { %v3381_v31 = vunpack.c.l.s4 %v9773_v35  ;;  %v8719_v21 = vld [vmem:[#allocation4 + $0x2e4] ss:$16 sps:$4 sm:$0xff]   ;;  %6604 = vmatprep.subr.bf16.mxu0 %v8717_v36  ;;  %v8721_v32 = vld [vmem:[#allocation4 + $0xe0] ss:$16 sps:$4 sm:$0xff]   ;;  %v3379_v36 = vcombine.high %v10304_v40, %v10330_v13 }
 0x3be   :  { %v8722_v41 = vld [vmem:[#allocation4 + $0x2e0] ss:$16 sps:$4 sm:$0xff]   ;;  %6645 = vmatprep.subr.bf16.mxu1 %v8719_v21  ;;  %v8723_v42 = vld [vmem:[#allocation4 + $0xc4] ss:$16 sps:$4 sm:$0xff]   ;;  %6605 = vmatpush1.bf16.msra.mxu0 %v8721_v32 }
 0x3bf   :  { %v3382_v34 = vunpack.c.0.s8 %v3381_v31  ;;  %6646 = vmatpush1.bf16.msra.mxu1 %v8722_v41  ;;  %v8725_v43 = vld [vmem:[#allocation4 + $0x2c4] ss:$16 sps:$4 sm:$0xff]   ;;  %v8727_v46 = vld [vmem:[#allocation4 + $0xc0] ss:$16 sps:$4 sm:$0xff]   ;;  %6606 = vmatprep.subr.bf16.mxu0 %v8723_v42 }
 0x3c0   :  { %v8728_v49 = vld [vmem:[#allocation4 + $0x2c0] ss:$16 sps:$4 sm:$0xff]   ;;  %6647 = vmatprep.subr.bf16.mxu1 %v8725_v43  ;;  %v8729_v50 = vld [vmem:[#allocation4 + $0xa4] ss:$16 sps:$4 sm:$0xff]  }
 0x3c1   :  { %v10348_v4 = vsub.s32 %v3382_v34, %v9933_v44  ;;  %v8731_v45 = vld [vmem:[#allocation4 + $0x2a4] ss:$16 sps:$4 sm:$0xff]   ;;  %v8733_v61 = vld [vmem:[#allocation4 + $0xa0] ss:$16 sps:$4 sm:$0xff]  }
 0x3c2   :  { %v8734_v63 = vld [vmem:[#allocation4 + $0x2a0] ss:$16 sps:$4 sm:$0xff]   ;;  %6607 = vmatpush1.bf16.msra.mxu0 %v8727_v46  ;;  %v8735_v0 = vld [vmem:[#allocation4 + $0x84] ss:$16 sps:$4 sm:$0xff]  }
 0x3c3   :  { %v10351_v37 = vrot.slane %v3378_v33, %v10348_v4  ;;  %6648 = vmatpush1.bf16.msra.mxu1 %v8728_v49  ;;  %6608 = vmatprep.subr.bf16.mxu0 %v8729_v50  ;;  %v8737_v14 = vld [vmem:[#allocation4 + $0x284] ss:$16 sps:$4 sm:$0xff]   ;;  %v8739_v53 = vld [vmem:[#allocation4 + $0x80] ss:$16 sps:$4 sm:$0xff]   ;;  %v10365_v42 = vrot.slane %v3379_v36, %v10348_v4 }
 0x3c4   :  { %6649 = vmatprep.subr.bf16.mxu1 %v8731_v45  ;;  %v8740_v3 = vld [vmem:[#allocation4 + $0x280] ss:$16 sps:$4 sm:$0xff]   ;;  %v8741_v6 = vld [vmem:[#allocation4 + $0x64] ss:$16 sps:$4 sm:$0xff]  }
 0x3c5   :  { %v3394_v58 = vcombine.high %v10351_v37, %v10351_v37  ;;  %v8743_v7 = vld [vmem:[#allocation4 + $0x264] ss:$16 sps:$4 sm:$0xff]   ;;  %v8745_v9 = vld [vmem:[#allocation4 + $0x60] ss:$16 sps:$4 sm:$0xff]   ;;  %v3395_v40 = vcombine.high %v10365_v42, %v10365_v42 }
 0x3c6   :  { %6609 = vmatpush1.bf16.msra.mxu0 %v8733_v61  ;;  %v8746_v10 = vld [vmem:[#allocation4 + $0x260] ss:$16 sps:$4 sm:$0xff]   ;;  %v8747_v2 = vld [vmem:[#allocation4 + $0x44] ss:$16 sps:$4 sm:$0xff]  }
 0x3c7   :  { %v3416_v47 = vrot.slane %v3394_v58, %v10348_v4  ;;  %6650 = vmatpush1.bf16.msra.mxu1 %v8734_v63  ;;  %6610 = vmatprep.subr.bf16.mxu0 %v8735_v0  ;;  %v8749_v52 = vld [vmem:[#allocation4 + $0x244] ss:$16 sps:$4 sm:$0xff]   ;;  %v8751_v11 = vld [vmem:[#allocation4 + $0x40] ss:$16 sps:$4 sm:$0xff]   ;;  %v3423_v63 = vrot.slane %v3395_v40, %v10348_v4 }
 0x3c8   :  { %6651 = vmatprep.subr.bf16.mxu1 %v8737_v14  ;;  %v8752_v54 = vld [vmem:[#allocation4 + $0x240] ss:$16 sps:$4 sm:$0xff]   ;;  %v8753_v59 = vld [vmem:[#allocation4 + $0x24] ss:$16 sps:$4 sm:$0xff]  }
 0x3c9   :  { %v10356_v51 = vpack.c.bf16 %v3416_v47, %v3416_v47  ;;  %v3426_v55 = vcombine.high %v3416_v47, %v3416_v47  ;;  %v8755_v12 = vld [vmem:[#allocation4 + $0x224] ss:$16 sps:$4 sm:$0xff]   ;;  %v8757_v15 = vld [vmem:[#allocation4 + $0x20] ss:$16 sps:$4 sm:$0xff]  }
 0x3ca   :  { %6611 = vmatpush1.bf16.msra.mxu0 %v8739_v53  ;;  %v8758_v16 = vld [vmem:[#allocation4 + $0x220] ss:$16 sps:$4 sm:$0xff]   ;;  %v8759_v17 = vld [vmem:[#allocation4 + $0x4] ss:$16 sps:$4 sm:$0xff]  }
 0x3cb   :  { %v10358_v1 = vpack.c.bf16 %v3426_v55, %v3426_v55  ;;  %6636 = vmatprep.mubr.bf16.mxu0 %v10356_v51  ;;  %6652 = vmatpush1.bf16.msra.mxu1 %v8740_v3  ;;  %v8761_v18 = vld [vmem:[#allocation4 + $0x204] ss:$16 sps:$4 sm:$0xff]   ;;  %v8763_v22 = vld [vmem:[#allocation4] ss:$16 sps:$4 sm:$0xff]   ;;  %v3402_v55 = vrot.slane %v10351_v37, %v10348_v4 }
 0x3cc   :  { %6612 = vmatprep.subr.bf16.mxu0 %v8741_v6  ;;  %6653 = vmatprep.subr.bf16.mxu1 %v8743_v7  ;;  %v8764_v5 = vld [vmem:[#allocation4 + $0x200] ss:$16 sps:$4 sm:$0xff]   ;;  %v8765_v23 = vld [vmem:[#allocation4 + $0x1e4] ss:$16 sps:$4 sm:$0xff]   ;;  %v3427_v7 = vcombine.high %v3423_v63, %v3423_v63 }
 0x3cd   :  { %6677 = vmatprep.mubr.bf16.mxu1 %v10358_v1  ;;  %v8767_v19 = vld [vmem:[#allocation4 + $0x3e4] ss:$16 sps:$4 sm:$0xff]   ;;  %v8769_v24 = vld [vmem:[#allocation4 + $0x1e0] ss:$16 sps:$4 sm:$0xff]   ;;  %v3424_v53 = vcombine.high %v3402_v55, %v3402_v55 }
 0x3ce   :  { %6613 = vmatpush1.bf16.msra.mxu0 %v8745_v9  ;;  %v8770_v62 = vld [vmem:[#allocation4 + $0x3e0] ss:$16 sps:$4 sm:$0xff]   ;;  %v8771_v25 = vld [vmem:[#allocation4 + $0x1c4] ss:$16 sps:$4 sm:$0xff]   ;;  %v10372_v9 = vpack.c.bf16 %v3402_v55, %v3402_v55 }
 0x3cf   :  { %6654 = vmatpush1.bf16.msra.mxu1 %v8746_v10  ;;  %6614 = vmatprep.subr.bf16.mxu0 %v8747_v2  ;;  %v8773_v26 = vld [vmem:[#allocation4 + $0x3c4] ss:$16 sps:$4 sm:$0xff]   ;;  %v8775_v20 = vld [vmem:[#allocation4 + $0x1c0] ss:$16 sps:$4 sm:$0xff]   ;;  %v10374_v37 = vpack.c.bf16 %v3424_v53, %v3424_v53 }
 0x3d0   :  { %6655 = vmatprep.subr.bf16.mxu1 %v8749_v52  ;;  %v8776_v48 = vld [vmem:[#allocation4 + $0x3c0] ss:$16 sps:$4 sm:$0xff]   ;;  %v8777_v8 = vld [vmem:[#allocation4 + $0x1a4] ss:$16 sps:$4 sm:$0xff]  }
 0x3d1   :  { %v8779_v27 = vld [vmem:[#allocation4 + $0x3a4] ss:$16 sps:$4 sm:$0xff]   ;;  %v8781_v28 = vld [vmem:[#allocation4 + $0x1a0] ss:$16 sps:$4 sm:$0xff]  }
 0x3d2   :  { %6615 = vmatpush1.bf16.msra.mxu0 %v8751_v11  ;;  %v8782_v29 = vld [vmem:[#allocation4 + $0x3a0] ss:$16 sps:$4 sm:$0xff]   ;;  %v8783_v30 = vld [vmem:[#allocation4 + $0x184] ss:$16 sps:$4 sm:$0xff]  }
 0x3d3   :  { %6656 = vmatpush1.bf16.msra.mxu1 %v8752_v54  ;;  %6616 = vmatprep.subr.bf16.mxu0 %v8753_v59  ;;  %v8785_v38 = vld [vmem:[#allocation4 + $0x384] ss:$16 sps:$4 sm:$0xff]   ;;  %v8787_v35 = vld [vmem:[#allocation4 + $0x180] ss:$16 sps:$4 sm:$0xff]   ;;  %v10376_v54 = vpack.c.bf16 %v3423_v63, %v3423_v63  ;;  %v10378_v59 = vpack.c.bf16 %v3427_v7, %v3427_v7 }
 0x3d4   :  { %6657 = vmatprep.subr.bf16.mxu1 %v8755_v12  ;;  %v8788_v31 = vld [vmem:[#allocation4 + $0x380] ss:$16 sps:$4 sm:$0xff]   ;;  %v8789_v33 = vld [vmem:[#allocation4 + $0x164] ss:$16 sps:$4 sm:$0xff]  }
 0x3d5   :  { %v8791_v34 = vld [vmem:[#allocation4 + $0x364] ss:$16 sps:$4 sm:$0xff]   ;;  %v8793_v21 = vld [vmem:[#allocation4 + $0x160] ss:$16 sps:$4 sm:$0xff]  }
 0x3d6   :  { %6617 = vmatpush1.bf16.msra.mxu0 %v8757_v15  ;;  %v8794_v32 = vld [vmem:[#allocation4 + $0x360] ss:$16 sps:$4 sm:$0xff]   ;;  %v8795_v41 = vld [vmem:[#allocation4 + $0x144] ss:$16 sps:$4 sm:$0xff]  }
 0x3d7   :  { %6658 = vmatpush1.bf16.msra.mxu1 %v8758_v16  ;;  %6618 = vmatprep.subr.bf16.mxu0 %v8759_v17  ;;  %v8797_v58 = vld [vmem:[#allocation4 + $0x344] ss:$16 sps:$4 sm:$0xff]   ;;  %v8799_v43 = vld [vmem:[#allocation4 + $0x140] ss:$16 sps:$4 sm:$0xff]  }
 0x3d8   :  { %6659 = vmatprep.subr.bf16.mxu1 %v8761_v18  ;;  %v8800_v46 = vld [vmem:[#allocation4 + $0x340] ss:$16 sps:$4 sm:$0xff]   ;;  %v8801_v47 = vld [vmem:[#allocation4 + $0x124] ss:$16 sps:$4 sm:$0xff]  }
 0x3d9   :  { %v8803_v49 = vld [vmem:[#allocation4 + $0x324] ss:$16 sps:$4 sm:$0xff]   ;;  %v8805_v13 = vld [vmem:[#allocation4 + $0x120] ss:$16 sps:$4 sm:$0xff]  }
 0x3da   :  { %6619 = vmatpush1.bf16.msra.mxu0 %v8763_v22  ;;  %v8806_v50 = vld [vmem:[#allocation4 + $0x320] ss:$16 sps:$4 sm:$0xff]   ;;  %v8807_v45 = vld [vmem:[#allocation4 + $0x104] ss:$16 sps:$4 sm:$0xff]  }
 0x3db   :  { %6660 = vmatpush1.bf16.msra.mxu1 %v8764_v5  ;;  %6620 = vmatprep.subr.bf16.mxu0 %v8765_v23  ;;  %v8809_v61 = vld [vmem:[#allocation4 + $0x304] ss:$16 sps:$4 sm:$0xff]   ;;  %v8811_v0 = vld [vmem:[#allocation4 + $0x100] ss:$16 sps:$4 sm:$0xff]  }
 0x3dc   :  { %6661 = vmatprep.subr.bf16.mxu1 %v8767_v19  ;;  %v8812_v14 = vld [vmem:[#allocation4 + $0x300] ss:$16 sps:$4 sm:$0xff]   ;;  %v8815_v3 = vld [vmem:[#allocation4 + $0x4e4] ss:$16 sps:$4 sm:$0xff]  }
 0x3dd   :  { %v8818_v6 = vld [vmem:[#allocation4 + $0x6e4] ss:$16 sps:$4 sm:$0xff]   ;;  %v8813_v10 = vld [vmem:[#allocation4 + $0x4e0] ss:$16 sps:$4 sm:$0xff]  }
 0x3de   :  { %6621 = vmatpush2.bf16.msra.mxu0 %v8769_v24  ;;  %v8816_v2 = vld [vmem:[#allocation4 + $0x6e0] ss:$16 sps:$4 sm:$0xff]   ;;  %v8821_v52 = vld [vmem:[#allocation4 + $0x4c4] ss:$16 sps:$4 sm:$0xff]  }
 0x3df   :  { %6662 = vmatpush2.bf16.msra.mxu1 %v8770_v62  ;;  %6622 = vmatprep.subr.bf16.mxu0 %v8771_v25  ;;  %v8824_v11 = vld [vmem:[#allocation4 + $0x6c4] ss:$16 sps:$4 sm:$0xff]   ;;  %v8819_v12 = vld [vmem:[#allocation4 + $0x4c0] ss:$16 sps:$4 sm:$0xff]  }
 0x3e0   :  { %6663 = vmatprep.subr.bf16.mxu1 %v8773_v26  ;;  %v8822_v15 = vld [vmem:[#allocation4 + $0x6c0] ss:$16 sps:$4 sm:$0xff]   ;;  %v8827_v16 = vld [vmem:[#allocation4 + $0x4a4] ss:$16 sps:$4 sm:$0xff]  }
 0x3e1   :  { %v8830_v17 = vld [vmem:[#allocation4 + $0x6a4] ss:$16 sps:$4 sm:$0xff]   ;;  %v8825_v18 = vld [vmem:[#allocation4 + $0x4a0] ss:$16 sps:$4 sm:$0xff]  }
 0x3e2   :  { %6623 = vmatpush2.bf16.msra.mxu0 %v8775_v20  ;;  %v8828_v22 = vld [vmem:[#allocation4 + $0x6a0] ss:$16 sps:$4 sm:$0xff]   ;;  %v8833_v5 = vld [vmem:[#allocation4 + $0x484] ss:$16 sps:$4 sm:$0xff]  }
 0x3e3   :  { %6664 = vmatpush2.bf16.msra.mxu1 %v8776_v48  ;;  %6624 = vmatprep.subr.bf16.mxu0 %v8777_v8  ;;  %v8836_v23 = vld [vmem:[#allocation4 + $0x684] ss:$16 sps:$4 sm:$0xff]   ;;  %v8831_v19 = vld [vmem:[#allocation4 + $0x480] ss:$16 sps:$4 sm:$0xff]  }
 0x3e4   :  { %6665 = vmatprep.subr.bf16.mxu1 %v8779_v27  ;;  %v8834_v24 = vld [vmem:[#allocation4 + $0x680] ss:$16 sps:$4 sm:$0xff]   ;;  %v8839_v62 = vld [vmem:[#allocation4 + $0x464] ss:$16 sps:$4 sm:$0xff]  }
 0x3e5   :  { %v8842_v25 = vld [vmem:[#allocation4 + $0x664] ss:$16 sps:$4 sm:$0xff]   ;;  %v8837_v26 = vld [vmem:[#allocation4 + $0x460] ss:$16 sps:$4 sm:$0xff]  }
 0x3e6   :  { %6625 = vmatpush2.bf16.msra.mxu0 %v8781_v28  ;;  %v8840_v20 = vld [vmem:[#allocation4 + $0x660] ss:$16 sps:$4 sm:$0xff]   ;;  %v8845_v48 = vld [vmem:[#allocation4 + $0x444] ss:$16 sps:$4 sm:$0xff]  }
 0x3e7   :  { %6666 = vmatpush2.bf16.msra.mxu1 %v8782_v29  ;;  %6626 = vmatprep.subr.bf16.mxu0 %v8783_v30  ;;  %v8848_v8 = vld [vmem:[#allocation4 + $0x644] ss:$16 sps:$4 sm:$0xff]   ;;  %v8843_v27 = vld [vmem:[#allocation4 + $0x440] ss:$16 sps:$4 sm:$0xff]  }
 0x3e8   :  { %6667 = vmatprep.subr.bf16.mxu1 %v8785_v38  ;;  %v8846_v28 = vld [vmem:[#allocation4 + $0x640] ss:$16 sps:$4 sm:$0xff]   ;;  %v8851_v29 = vld [vmem:[#allocation4 + $0x424] ss:$16 sps:$4 sm:$0xff]  }
 0x3e9   :  { %v8854_v30 = vld [vmem:[#allocation4 + $0x624] ss:$16 sps:$4 sm:$0xff]   ;;  %v8849_v38 = vld [vmem:[#allocation4 + $0x420] ss:$16 sps:$4 sm:$0xff]  }
 0x3ea   :  { %6627 = vmatpush2.bf16.msra.mxu0 %v8787_v35  ;;  %v8852_v35 = vld [vmem:[#allocation4 + $0x620] ss:$16 sps:$4 sm:$0xff]   ;;  %v8875_v40 = vld [vmem:[#allocation4 + $0x5a4] ss:$16 sps:$4 sm:$0xff]  }
 0x3eb   :  { %6668 = vmatpush2.bf16.msra.mxu1 %v8788_v31  ;;  %6628 = vmatprep.subr.bf16.mxu0 %v8789_v33  ;;  %v8857_v31 = vld [vmem:[#allocation4 + $0x404] ss:$16 sps:$4 sm:$0xff]   ;;  %v8858_v36 = vld [vmem:[#allocation4 + $0x600] ss:$16 sps:$4 sm:$0xff]  }
 0x3ec   :  { %6669 = vmatprep.subr.bf16.mxu1 %v8791_v34  ;;  %v8860_v33 = vld [vmem:[#allocation4 + $0x604] ss:$16 sps:$4 sm:$0xff]   ;;  %v8855_v34 = vld [vmem:[#allocation4 + $0x400] ss:$16 sps:$4 sm:$0xff]  }
 0x3ed   :  { %v8876_v55 = vld [vmem:[#allocation4 + $0x7a0] ss:$16 sps:$4 sm:$0xff]   ;;  %v8890_v53 = vld [vmem:[#allocation4 + $0x764] ss:$16 sps:$4 sm:$0xff]  }
 0x3ee   :  { %6629 = vmatpush2.bf16.msra.mxu0 %v8793_v21  ;;  %v8863_v21 = vld [vmem:[#allocation4 + $0x5e4] ss:$16 sps:$4 sm:$0xff]   ;;  %v8879_v63 = vld [vmem:[#allocation4 + $0x580] ss:$16 sps:$4 sm:$0xff]  }
 0x3ef   :  { %6670 = vmatpush2.bf16.msra.mxu1 %v8794_v32  ;;  %6630 = vmatprep.subr.bf16.mxu0 %v8795_v41  ;;  %v8866_v32 = vld [vmem:[#allocation4 + $0x7e4] ss:$16 sps:$4 sm:$0xff]   ;;  %v8861_v41 = vld [vmem:[#allocation4 + $0x5e0] ss:$16 sps:$4 sm:$0xff]  }
 0x3f0   :  { %6671 = vmatprep.subr.bf16.mxu1 %v8797_v58  ;;  %v8864_v58 = vld [vmem:[#allocation4 + $0x7e0] ss:$16 sps:$4 sm:$0xff]  }
 0x3f1   :  { %v8888_v7 = vld [vmem:[#allocation4 + $0x760] ss:$16 sps:$4 sm:$0xff]  }
 0x3f2   :  { %6631 = vmatpush2.bf16.msra.mxu0 %v8799_v43  ;;  %v8869_v43 = vld [vmem:[#allocation4 + $0x5c4] ss:$16 sps:$4 sm:$0xff]  }
 0x3f3   :  { %6672 = vmatpush2.bf16.msra.mxu1 %v8800_v46  ;;  %6632 = vmatprep.subr.bf16.mxu0 %v8801_v47  ;;  %v8872_v46 = vld [vmem:[#allocation4 + $0x7c4] ss:$16 sps:$4 sm:$0xff]   ;;  %v8867_v47 = vld [vmem:[#allocation4 + $0x5c0] ss:$16 sps:$4 sm:$0xff]  }
 0x3f4   :  { %6673 = vmatprep.subr.bf16.mxu1 %v8803_v49  ;;  %v8870_v49 = vld [vmem:[#allocation4 + $0x7c0] ss:$16 sps:$4 sm:$0xff]  }
 0x3f6   :  { %6633 = vmatpush2.bf16.msra.mxu0 %v8805_v13  ;;  %v8878_v13 = vld [vmem:[#allocation4 + $0x7a4] ss:$16 sps:$4 sm:$0xff]  }
 0x3f7   :  { %6674 = vmatpush2.bf16.msra.mxu1 %v8806_v50  ;;  %6634 = vmatprep.subr.bf16.mxu0 %v8807_v45  ;;  %v8873_v50 = vld [vmem:[#allocation4 + $0x5a0] ss:$16 sps:$4 sm:$0xff]   ;;  %v8881_v45 = vld [vmem:[#allocation4 + $0x584] ss:$16 sps:$4 sm:$0xff]  }
 0x3f8   :  { %6675 = vmatprep.subr.bf16.mxu1 %v8809_v61  ;;  %v8884_v61 = vld [vmem:[#allocation4 + $0x784] ss:$16 sps:$4 sm:$0xff]  }
 0x3fa   :  { %6635 = vmatpush2.bf16.msra.mxu0 %v8811_v0  ;;  %v8882_v0 = vld [vmem:[#allocation4 + $0x780] ss:$16 sps:$4 sm:$0xff]  }
 0x3fb   :  { %6676 = vmatpush2.bf16.msra.mxu1 %v8812_v14  ;;  %6686 = vmatprep.subr.bf16.mxu0 %v8815_v3  ;;  %v8887_v14 = vld [vmem:[#allocation4 + $0x564] ss:$16 sps:$4 sm:$0xff]   ;;  %v3428_v3 = vcombine.low %v10319_v60, %v10343_v39 }
 0x3fc   :  { %6727 = vmatprep.subr.bf16.mxu1 %v8818_v6  ;;  %v8885_v6 = vld [vmem:[#allocation4 + $0x560] ss:$16 sps:$4 sm:$0xff]  }
 0x3fd   :  { %6637 = vmatmul.mubr.bf16.vlgmr.msra.gmra.mxu0 %v10372_v9 }
 0x3fe   :  { %6678 = vmatmul.mubr.bf16.vlgmr.msra.gmra.mxu1 %v10374_v37  ;;  %6687 = vmatpush1.bf16.msra.mxu0 %v8813_v10  ;;  %v8893_v10 = vld [vmem:[#allocation4 + $0x544] ss:$16 sps:$4 sm:$0xff]  }
 0x3ff   :  { %6728 = vmatpush1.bf16.msra.mxu1 %v8816_v2  ;;  %6688 = vmatprep.subr.bf16.mxu0 %v8821_v52  ;;  %v8896_v2 = vld [vmem:[#allocation4 + $0x744] ss:$16 sps:$4 sm:$0xff]   ;;  %v10387_v52 = vrot.slane %v3428_v3, %v10348_v4  ;;  %v8948_v3 = vld [vmem:[#allocation4 + $0xa20] ss:$16 sps:$4 sm:$0xff]  }
 0x400   :  { %6729 = vmatprep.subr.bf16.mxu1 %v8824_v11  ;;  %6718 = vmatprep.mubr.bf16.mxu0 %v10376_v54  ;;  %v8891_v11 = vld [vmem:[#allocation4 + $0x540] ss:$16 sps:$4 sm:$0xff]  }
 0x401   :  { %6759 = vmatprep.mubr.bf16.mxu1 %v10378_v59 }
 0x402   :  { %6689 = vmatpush1.bf16.msra.mxu0 %v8819_v12  ;;  %v8894_v12 = vld [vmem:[#allocation4 + $0x740] ss:$16 sps:$4 sm:$0xff]  }
 0x403   :  { %6730 = vmatpush1.bf16.msra.mxu1 %v8822_v15  ;;  %6690 = vmatprep.subr.bf16.mxu0 %v8827_v16  ;;  %v8899_v15 = vld [vmem:[#allocation4 + $0x524] ss:$16 sps:$4 sm:$0xff]  }
 0x404   :  { %6731 = vmatprep.subr.bf16.mxu1 %v8830_v17  ;;  %v8902_v16 = vld [vmem:[#allocation4 + $0x724] ss:$16 sps:$4 sm:$0xff]   ;;  %v3444_v17 = vcombine.high %v10387_v52, %v10387_v52 }
 0x406   :  { %6691 = vmatpush1.bf16.msra.mxu0 %v8825_v18  ;;  %v8897_v18 = vld [vmem:[#allocation4 + $0x520] ss:$16 sps:$4 sm:$0xff]  }
 0x407   :  { %6732 = vmatpush1.bf16.msra.mxu1 %v8828_v22  ;;  %6692 = vmatprep.subr.bf16.mxu0 %v8833_v5  ;;  %v8900_v22 = vld [vmem:[#allocation4 + $0x720] ss:$16 sps:$4 sm:$0xff]   ;;  %v3409_v5 = vrot.slane %v10365_v42, %v10348_v4 }
 0x408   :  { %6733 = vmatprep.subr.bf16.mxu1 %v8836_v23  ;;  %v8905_v23 = vld [vmem:[#allocation4 + $0x504] ss:$16 sps:$4 sm:$0xff]  }
 0x40a   :  { %6693 = vmatpush1.bf16.msra.mxu0 %v8831_v19  ;;  %v8908_v19 = vld [vmem:[#allocation4 + $0x704] ss:$16 sps:$4 sm:$0xff]  }
 0x40b   :  { %6734 = vmatpush1.bf16.msra.mxu1 %v8834_v24  ;;  %6694 = vmatprep.subr.bf16.mxu0 %v8839_v62  ;;  %v3466_v24 = vrot.slane %v3444_v17, %v10348_v4  ;;  %v8903_v62 = vld [vmem:[#allocation4 + $0x500] ss:$16 sps:$4 sm:$0xff]   ;;  %v8965_v17 = vld [vmem:[#allocation4 + $0x9c4] ss:$16 sps:$4 sm:$0xff]  }
 0x40c   :  { %6735 = vmatprep.subr.bf16.mxu1 %v8842_v25  ;;  %v8906_v25 = vld [vmem:[#allocation4 + $0x700] ss:$16 sps:$4 sm:$0xff]  }
 0x40e   :  { %6695 = vmatpush1.bf16.msra.mxu0 %v8837_v26  ;;  %v3425_v26 = vcombine.high %v3409_v5, %v3409_v5 }
 0x40f   :  { %6736 = vmatpush1.bf16.msra.mxu1 %v8840_v20  ;;  %6696 = vmatprep.subr.bf16.mxu0 %v8845_v48  ;;  %v8911_v20 = vld [vmem:[#allocation4 + $0x8e4] ss:$16 sps:$4 sm:$0xff]  }
 0x410   :  { %6737 = vmatprep.subr.bf16.mxu1 %v8848_v8  ;;  %v8914_v48 = vld [vmem:[#allocation4 + $0xae4] ss:$16 sps:$4 sm:$0xff]   ;;  %v3476_v8 = vcombine.high %v3466_v24, %v3466_v24  ;;  %v10396_v42 = vpack.c.bf16 %v3425_v26, %v3425_v26 }
 0x411   :  { %v8980_v26 = vld [vmem:[#allocation4 + $0xb84] ss:$16 sps:$4 sm:$0xff]  }
 0x412   :  { %6697 = vmatpush1.bf16.msra.mxu0 %v8843_v27  ;;  %v10394_v27 = vpack.c.bf16 %v3409_v5, %v3409_v5  ;;  %v8966_v5 = vld [vmem:[#allocation4 + $0xbc0] ss:$16 sps:$4 sm:$0xff]  }
 0x413   :  { %6738 = vmatpush1.bf16.msra.mxu1 %v8846_v28  ;;  %6698 = vmatprep.subr.bf16.mxu0 %v8851_v29  ;;  %v8909_v28 = vld [vmem:[#allocation4 + $0x8e0] ss:$16 sps:$4 sm:$0xff]  }
 0x414   :  { %6739 = vmatprep.subr.bf16.mxu1 %v8854_v30  ;;  %v8912_v29 = vld [vmem:[#allocation4 + $0xae0] ss:$16 sps:$4 sm:$0xff]   ;;  %v8917_v30 = vld [vmem:[#allocation4 + $0x8c4] ss:$16 sps:$4 sm:$0xff]  }
 0x416   :  { %6699 = vmatpush1.bf16.msra.mxu0 %v8849_v38  ;;  %v8920_v38 = vld [vmem:[#allocation4 + $0xac4] ss:$16 sps:$4 sm:$0xff]  }
 0x417   :  { %6740 = vmatpush1.bf16.msra.mxu1 %v8852_v35  ;;  %6700 = vmatprep.subr.bf16.mxu0 %v8857_v31  ;;  %v10398_v35 = vpack.c.bf16 %v3466_v24, %v3466_v24  ;;  %v10400_v31 = vpack.c.bf16 %v3476_v8, %v3476_v8  ;;  %v8969_v24 = vld [vmem:[#allocation4 + $0x9a0] ss:$16 sps:$4 sm:$0xff]   ;;  %v8983_v8 = vld [vmem:[#allocation4 + $0x964] ss:$16 sps:$4 sm:$0xff]  }
 0x418   :  { %6741 = vmatprep.subr.bf16.mxu1 %v8860_v33  ;;  %v8915_v33 = vld [vmem:[#allocation4 + $0x8c0] ss:$16 sps:$4 sm:$0xff]  }
 0x41a   :  { %6701 = vmatpush1.bf16.msra.mxu0 %v8855_v34  ;;  %v8918_v34 = vld [vmem:[#allocation4 + $0xac0] ss:$16 sps:$4 sm:$0xff]  }
 0x41b   :  { %6742 = vmatpush1.bf16.msra.mxu1 %v8858_v36  ;;  %6702 = vmatprep.subr.bf16.mxu0 %v8863_v21  ;;  %v8923_v36 = vld [vmem:[#allocation4 + $0x8a4] ss:$16 sps:$4 sm:$0xff]  }
 0x41c   :  { %6743 = vmatprep.subr.bf16.mxu1 %v8866_v32  ;;  %v8926_v21 = vld [vmem:[#allocation4 + $0xaa4] ss:$16 sps:$4 sm:$0xff]   ;;  %v8921_v32 = vld [vmem:[#allocation4 + $0x8a0] ss:$16 sps:$4 sm:$0xff]  }
 0x41e   :  { %6703 = vmatpush2.bf16.msra.mxu0 %v8861_v41  ;;  %v8924_v41 = vld [vmem:[#allocation4 + $0xaa0] ss:$16 sps:$4 sm:$0xff]  }
 0x41f   :  { %6744 = vmatpush2.bf16.msra.mxu1 %v8864_v58  ;;  %6704 = vmatprep.subr.bf16.mxu0 %v8869_v43  ;;  %v8929_v58 = vld [vmem:[#allocation4 + $0x884] ss:$16 sps:$4 sm:$0xff]  }
 0x420   :  { %6745 = vmatprep.subr.bf16.mxu1 %v8872_v46  ;;  %v8932_v43 = vld [vmem:[#allocation4 + $0xa84] ss:$16 sps:$4 sm:$0xff]   ;;  %v8927_v46 = vld [vmem:[#allocation4 + $0x880] ss:$16 sps:$4 sm:$0xff]  }
 0x422   :  { %6705 = vmatpush2.bf16.msra.mxu0 %v8867_v47  ;;  %v8930_v47 = vld [vmem:[#allocation4 + $0xa80] ss:$16 sps:$4 sm:$0xff]  }
 0x423   :  { %6746 = vmatpush2.bf16.msra.mxu1 %v8870_v49  ;;  %6706 = vmatprep.subr.bf16.mxu0 %v8875_v40  ;;  %v8935_v49 = vld [vmem:[#allocation4 + $0x864] ss:$16 sps:$4 sm:$0xff]  }
 0x424   :  { %6747 = vmatprep.subr.bf16.mxu1 %v8878_v13  ;;  %v8938_v40 = vld [vmem:[#allocation4 + $0xa64] ss:$16 sps:$4 sm:$0xff]   ;;  %v8933_v13 = vld [vmem:[#allocation4 + $0x860] ss:$16 sps:$4 sm:$0xff]  }
 0x426   :  { %6707 = vmatpush2.bf16.msra.mxu0 %v8873_v50  ;;  %v8936_v50 = vld [vmem:[#allocation4 + $0xa60] ss:$16 sps:$4 sm:$0xff]  }
 0x427   :  { %6748 = vmatpush2.bf16.msra.mxu1 %v8876_v55  ;;  %6708 = vmatprep.subr.bf16.mxu0 %v8881_v45  ;;  %v8941_v55 = vld [vmem:[#allocation4 + $0x844] ss:$16 sps:$4 sm:$0xff]  }
 0x428   :  { %6749 = vmatprep.subr.bf16.mxu1 %v8884_v61  ;;  %v8944_v45 = vld [vmem:[#allocation4 + $0xa44] ss:$16 sps:$4 sm:$0xff]   ;;  %v8939_v61 = vld [vmem:[#allocation4 + $0x840] ss:$16 sps:$4 sm:$0xff]  }
 0x42a   :  { %6709 = vmatpush2.bf16.msra.mxu0 %v8879_v63  ;;  %v8942_v63 = vld [vmem:[#allocation4 + $0xa40] ss:$16 sps:$4 sm:$0xff]  }
 0x42b   :  { %6750 = vmatpush2.bf16.msra.mxu1 %v8882_v0  ;;  %6710 = vmatprep.subr.bf16.mxu0 %v8887_v14  ;;  %v8947_v0 = vld [vmem:[#allocation4 + $0x824] ss:$16 sps:$4 sm:$0xff]  }
 0x42c   :  { %6751 = vmatprep.subr.bf16.mxu1 %v8890_v53  ;;  %v8950_v14 = vld [vmem:[#allocation4 + $0xa24] ss:$16 sps:$4 sm:$0xff]   ;;  %v8945_v53 = vld [vmem:[#allocation4 + $0x820] ss:$16 sps:$4 sm:$0xff]  }
 0x42e   :  { %6711 = vmatpush2.bf16.msra.mxu0 %v8885_v6  ;;  %v8953_v6 = vld [vmem:[#allocation4 + $0x804] ss:$16 sps:$4 sm:$0xff]  }
 0x42f   :  { %6752 = vmatpush2.bf16.msra.mxu1 %v8888_v7  ;;  %6712 = vmatprep.subr.bf16.mxu0 %v8893_v10  ;;  %v8956_v7 = vld [vmem:[#allocation4 + $0xa04] ss:$16 sps:$4 sm:$0xff]   ;;  %v8951_v10 = vld [vmem:[#allocation4 + $0x800] ss:$16 sps:$4 sm:$0xff]  }
 0x430   :  { %6753 = vmatprep.subr.bf16.mxu1 %v8896_v2  ;;  %v8954_v2 = vld [vmem:[#allocation4 + $0xa00] ss:$16 sps:$4 sm:$0xff]  }
 0x432   :  { %6713 = vmatpush2.bf16.msra.mxu0 %v8891_v11  ;;  %v8959_v11 = vld [vmem:[#allocation4 + $0x9e4] ss:$16 sps:$4 sm:$0xff]  }
 0x433   :  { %6754 = vmatpush2.bf16.msra.mxu1 %v8894_v12  ;;  %6714 = vmatprep.subr.bf16.mxu0 %v8899_v15  ;;  %v8962_v12 = vld [vmem:[#allocation4 + $0xbe4] ss:$16 sps:$4 sm:$0xff]   ;;  %v8957_v15 = vld [vmem:[#allocation4 + $0x9e0] ss:$16 sps:$4 sm:$0xff]  }
 0x434   :  { %6755 = vmatprep.subr.bf16.mxu1 %v8902_v16  ;;  %v8960_v16 = vld [vmem:[#allocation4 + $0xbe0] ss:$16 sps:$4 sm:$0xff]  }
 0x436   :  { %6715 = vmatpush2.bf16.msra.mxu0 %v8897_v18  ;;  %v8968_v18 = vld [vmem:[#allocation4 + $0xbc4] ss:$16 sps:$4 sm:$0xff]  }
 0x437   :  { %6756 = vmatpush2.bf16.msra.mxu1 %v8900_v22  ;;  %6716 = vmatprep.subr.bf16.mxu0 %v8905_v23  ;;  %v8963_v22 = vld [vmem:[#allocation4 + $0x9c0] ss:$16 sps:$4 sm:$0xff]   ;;  %v8971_v23 = vld [vmem:[#allocation4 + $0x9a4] ss:$16 sps:$4 sm:$0xff]  }
 0x438   :  { %6757 = vmatprep.subr.bf16.mxu1 %v8908_v19  ;;  %v8974_v19 = vld [vmem:[#allocation4 + $0xba4] ss:$16 sps:$4 sm:$0xff]  }
 0x43a   :  { %6717 = vmatpush2.bf16.msra.mxu0 %v8903_v62  ;;  %v8972_v62 = vld [vmem:[#allocation4 + $0xba0] ss:$16 sps:$4 sm:$0xff]  }
 0x43b   :  { %6758 = vmatpush2.bf16.msra.mxu1 %v8906_v25  ;;  %6768 = vmatprep.subr.bf16.mxu0 %v8911_v20  ;;  %v8977_v25 = vld [vmem:[#allocation4 + $0x984] ss:$16 sps:$4 sm:$0xff]   ;;  %v8975_v20 = vld [vmem:[#allocation4 + $0x980] ss:$16 sps:$4 sm:$0xff]  }
 0x43c   :  { %6809 = vmatprep.subr.bf16.mxu1 %v8914_v48  ;;  %v8978_v48 = vld [vmem:[#allocation4 + $0xb80] ss:$16 sps:$4 sm:$0xff]  }
 0x43d   :  { %6719 = vmatmul.mubr.bf16.vlgmr.msra.gmra.mxu0 %v10394_v27 }
 0x43e   :  { %6760 = vmatmul.mubr.bf16.vlgmr.msra.gmra.mxu1 %v10396_v42  ;;  %6769 = vmatpush1.bf16.msra.mxu0 %v8909_v28  ;;  %v8986_v28 = vld [vmem:[#allocation4 + $0xb64] ss:$16 sps:$4 sm:$0xff]  }
 0x43f   :  { %6810 = vmatpush1.bf16.msra.mxu1 %v8912_v29  ;;  %6770 = vmatprep.subr.bf16.mxu0 %v8917_v30  ;;  %v3429_v29 = vcombine.high %v10319_v60, %v10343_v39  ;;  %v8981_v30 = vld [vmem:[#allocation4 + $0x960] ss:$16 sps:$4 sm:$0xff]  }
 0x440   :  { %6811 = vmatprep.subr.bf16.mxu1 %v8920_v38  ;;  %6800 = vmatprep.mubr.bf16.mxu0 %v10398_v35  ;;  %v8984_v38 = vld [vmem:[#allocation4 + $0xb60] ss:$16 sps:$4 sm:$0xff]  }
 0x441   :  { %6841 = vmatprep.mubr.bf16.mxu1 %v10400_v31  ;;  %v8993_v39 = vld [vmem:[#allocation4 + $0x920] ss:$16 sps:$4 sm:$0xff]  }
 0x442   :  { %6771 = vmatpush1.bf16.msra.mxu0 %v8915_v33  ;;  %v8989_v33 = vld [vmem:[#allocation4 + $0x944] ss:$16 sps:$4 sm:$0xff]  }
 0x443   :  { %6812 = vmatpush1.bf16.msra.mxu1 %v8918_v34  ;;  %6772 = vmatprep.subr.bf16.mxu0 %v8923_v36  ;;  %v8992_v34 = vld [vmem:[#allocation4 + $0xb44] ss:$16 sps:$4 sm:$0xff]   ;;  %v10409_v36 = vrot.slane %v3429_v29, %v10348_v4 }
 0x444   :  { %6813 = vmatprep.subr.bf16.mxu1 %v8926_v21  ;;  %v8987_v21 = vld [vmem:[#allocation4 + $0x940] ss:$16 sps:$4 sm:$0xff]   ;;  %v9046_v29 = vld [vmem:[#allocation4 + $0xe24] ss:$16 sps:$4 sm:$0xff]  }
 0x445   :  { %v3445_v60 = vcombine.high %v10409_v36, %v10409_v36 }
 0x446   :  { %6773 = vmatpush1.bf16.msra.mxu0 %v8921_v32  ;;  %v8990_v32 = vld [vmem:[#allocation4 + $0xb40] ss:$16 sps:$4 sm:$0xff]  }
 0x447   :  { %6814 = vmatpush1.bf16.msra.mxu1 %v8924_v41  ;;  %6774 = vmatprep.subr.bf16.mxu0 %v8929_v58  ;;  %v8995_v41 = vld [vmem:[#allocation4 + $0x924] ss:$16 sps:$4 sm:$0xff]  }
 0x448   :  { %6815 = vmatprep.subr.bf16.mxu1 %v8932_v43  ;;  %v8998_v58 = vld [vmem:[#allocation4 + $0xb24] ss:$16 sps:$4 sm:$0xff]   ;;  %v3452_v43 = vrot.slane %v10387_v52, %v10348_v4 }
 0x44a   :  { %6775 = vmatpush1.bf16.msra.mxu0 %v8927_v46  ;;  %v8996_v46 = vld [vmem:[#allocation4 + $0xb20] ss:$16 sps:$4 sm:$0xff]   ;;  %v10416_v52 = vpack.c.bf16 %v3452_v43, %v3452_v43 }
 0x44b   :  { %6816 = vmatpush1.bf16.msra.mxu1 %v8930_v47  ;;  %6776 = vmatprep.subr.bf16.mxu0 %v8935_v49  ;;  %v9001_v47 = vld [vmem:[#allocation4 + $0x904] ss:$16 sps:$4 sm:$0xff]  }
 0x44c   :  { %6817 = vmatprep.subr.bf16.mxu1 %v8938_v40  ;;  %v9004_v49 = vld [vmem:[#allocation4 + $0xb04] ss:$16 sps:$4 sm:$0xff]   ;;  %v3473_v40 = vrot.slane %v3445_v60, %v10348_v4  ;;  %v9053_v60 = vld [vmem:[#allocation4 + $0xde0] ss:$16 sps:$4 sm:$0xff]  }
 0x44e   :  { %6777 = vmatpush1.bf16.msra.mxu0 %v8933_v13  ;;  %v8999_v13 = vld [vmem:[#allocation4 + $0x900] ss:$16 sps:$4 sm:$0xff]  }
 0x44f   :  { %6818 = vmatpush1.bf16.msra.mxu1 %v8936_v50  ;;  %6778 = vmatprep.subr.bf16.mxu0 %v8941_v55  ;;  %v3474_v50 = vcombine.high %v3452_v43, %v3452_v43  ;;  %v9002_v55 = vld [vmem:[#allocation4 + $0xb00] ss:$16 sps:$4 sm:$0xff]   ;;  %v9061_v43 = vld [vmem:[#allocation4 + $0xdc4] ss:$16 sps:$4 sm:$0xff]  }
 0x450   :  { %6819 = vmatprep.subr.bf16.mxu1 %v8944_v45  ;;  %v9007_v45 = vld [vmem:[#allocation4 + $0xce4] ss:$16 sps:$4 sm:$0xff]  }
 0x452   :  { %6779 = vmatpush1.bf16.msra.mxu0 %v8939_v61  ;;  %v9010_v61 = vld [vmem:[#allocation4 + $0xee4] ss:$16 sps:$4 sm:$0xff]  }
 0x453   :  { %6820 = vmatpush1.bf16.msra.mxu1 %v8942_v63  ;;  %6780 = vmatprep.subr.bf16.mxu0 %v8947_v0  ;;  %v3477_v63 = vcombine.high %v3473_v40, %v3473_v40  ;;  %v10418_v0 = vpack.c.bf16 %v3474_v50, %v3474_v50  ;;  %v9065_v50 = vld [vmem:[#allocation4 + $0xda0] ss:$16 sps:$4 sm:$0xff]  }
 0x454   :  { %6821 = vmatprep.subr.bf16.mxu1 %v8950_v14  ;;  %v9005_v14 = vld [vmem:[#allocation4 + $0xce0] ss:$16 sps:$4 sm:$0xff]  }
 0x456   :  { %6781 = vmatpush1.bf16.msra.mxu0 %v8945_v53  ;;  %v9008_v53 = vld [vmem:[#allocation4 + $0xee0] ss:$16 sps:$4 sm:$0xff]  }
 0x457   :  { %6822 = vmatpush1.bf16.msra.mxu1 %v8948_v3  ;;  %6782 = vmatprep.subr.bf16.mxu0 %v8953_v6  ;;  %v9013_v3 = vld [vmem:[#allocation4 + $0xcc4] ss:$16 sps:$4 sm:$0xff]  }
 0x458   :  { %6823 = vmatprep.subr.bf16.mxu1 %v8956_v7  ;;  %v9016_v6 = vld [vmem:[#allocation4 + $0xec4] ss:$16 sps:$4 sm:$0xff]   ;;  %v10420_v7 = vpack.c.bf16 %v3473_v40, %v3473_v40 }
 0x459   :  { %v9067_v40 = vld [vmem:[#allocation4 + $0xda4] ss:$16 sps:$4 sm:$0xff]  }
 0x45a   :  { %6783 = vmatpush1.bf16.msra.mxu0 %v8951_v10  ;;  %v10422_v10 = vpack.c.bf16 %v3477_v63, %v3477_v63  ;;  %v9071_v63 = vld [vmem:[#allocation4 + $0xd80] ss:$16 sps:$4 sm:$0xff]  }
 0x45b   :  { %6824 = vmatpush1.bf16.msra.mxu1 %v8954_v2  ;;  %6784 = vmatprep.subr.bf16.mxu0 %v8959_v11  ;;  %v9011_v2 = vld [vmem:[#allocation4 + $0xcc0] ss:$16 sps:$4 sm:$0xff]  }
 0x45c   :  { %6825 = vmatprep.subr.bf16.mxu1 %v8962_v12  ;;  %v9014_v11 = vld [vmem:[#allocation4 + $0xec0] ss:$16 sps:$4 sm:$0xff]   ;;  %v9019_v12 = vld [vmem:[#allocation4 + $0xca4] ss:$16 sps:$4 sm:$0xff]  }
 0x45e   :  { %6785 = vmatpush2.bf16.msra.mxu0 %v8957_v15  ;;  %v9022_v15 = vld [vmem:[#allocation4 + $0xea4] ss:$16 sps:$4 sm:$0xff]  }
 0x45f   :  { %6826 = vmatpush2.bf16.msra.mxu1 %v8960_v16  ;;  %6786 = vmatprep.subr.bf16.mxu0 %v8965_v17  ;;  %v9017_v16 = vld [vmem:[#allocation4 + $0xca0] ss:$16 sps:$4 sm:$0xff]  }
 0x460   :  { %6827 = vmatprep.subr.bf16.mxu1 %v8968_v18  ;;  %v9020_v17 = vld [vmem:[#allocation4 + $0xea0] ss:$16 sps:$4 sm:$0xff]   ;;  %v9025_v18 = vld [vmem:[#allocation4 + $0xc84] ss:$16 sps:$4 sm:$0xff]  }
 0x462   :  { %6787 = vmatpush2.bf16.msra.mxu0 %v8963_v22  ;;  %v9028_v22 = vld [vmem:[#allocation4 + $0xe84] ss:$16 sps:$4 sm:$0xff]  }
 0x463   :  { %6828 = vmatpush2.bf16.msra.mxu1 %v8966_v5  ;;  %6788 = vmatprep.subr.bf16.mxu0 %v8971_v23  ;;  %v9023_v5 = vld [vmem:[#allocation4 + $0xc80] ss:$16 sps:$4 sm:$0xff]  }
 0x464   :  { %6829 = vmatprep.subr.bf16.mxu1 %v8974_v19  ;;  %v9026_v23 = vld [vmem:[#allocation4 + $0xe80] ss:$16 sps:$4 sm:$0xff]   ;;  %v9031_v19 = vld [vmem:[#allocation4 + $0xc64] ss:$16 sps:$4 sm:$0xff]  }
 0x466   :  { %6789 = vmatpush2.bf16.msra.mxu0 %v8969_v24  ;;  %v9034_v24 = vld [vmem:[#allocation4 + $0xe64] ss:$16 sps:$4 sm:$0xff]  }
 0x467   :  { %6830 = vmatpush2.bf16.msra.mxu1 %v8972_v62  ;;  %6790 = vmatprep.subr.bf16.mxu0 %v8977_v25  ;;  %v9029_v62 = vld [vmem:[#allocation4 + $0xc60] ss:$16 sps:$4 sm:$0xff]  }
 0x468   :  { %6831 = vmatprep.subr.bf16.mxu1 %v8980_v26  ;;  %v9032_v25 = vld [vmem:[#allocation4 + $0xe60] ss:$16 sps:$4 sm:$0xff]   ;;  %v9037_v26 = vld [vmem:[#allocation4 + $0xc44] ss:$16 sps:$4 sm:$0xff]  }
 0x46a   :  { %6791 = vmatpush2.bf16.msra.mxu0 %v8975_v20  ;;  %v9040_v20 = vld [vmem:[#allocation4 + $0xe44] ss:$16 sps:$4 sm:$0xff]  }
 0x46b   :  { %6832 = vmatpush2.bf16.msra.mxu1 %v8978_v48  ;;  %6792 = vmatprep.subr.bf16.mxu0 %v8983_v8  ;;  %v9035_v48 = vld [vmem:[#allocation4 + $0xc40] ss:$16 sps:$4 sm:$0xff]  }
 0x46c   :  { %6833 = vmatprep.subr.bf16.mxu1 %v8986_v28  ;;  %v9038_v8 = vld [vmem:[#allocation4 + $0xe40] ss:$16 sps:$4 sm:$0xff]   ;;  %v9043_v28 = vld [vmem:[#allocation4 + $0xc24] ss:$16 sps:$4 sm:$0xff]  }
 0x46e   :  { %6793 = vmatpush2.bf16.msra.mxu0 %v8981_v30  ;;  %v9041_v30 = vld [vmem:[#allocation4 + $0xc20] ss:$16 sps:$4 sm:$0xff]  }
 0x46f   :  { %6834 = vmatpush2.bf16.msra.mxu1 %v8984_v38  ;;  %6794 = vmatprep.subr.bf16.mxu0 %v8989_v33  ;;  %v9044_v38 = vld [vmem:[#allocation4 + $0xe20] ss:$16 sps:$4 sm:$0xff]   ;;  %v9049_v33 = vld [vmem:[#allocation4 + $0xc04] ss:$16 sps:$4 sm:$0xff]  }
 0x470   :  { %6835 = vmatprep.subr.bf16.mxu1 %v8992_v34  ;;  %v9052_v34 = vld [vmem:[#allocation4 + $0xe04] ss:$16 sps:$4 sm:$0xff]  }
 0x472   :  { %6795 = vmatpush2.bf16.msra.mxu0 %v8987_v21  ;;  %v9047_v21 = vld [vmem:[#allocation4 + $0xc00] ss:$16 sps:$4 sm:$0xff]  }
 0x473   :  { %6836 = vmatpush2.bf16.msra.mxu1 %v8990_v32  ;;  %6796 = vmatprep.subr.bf16.mxu0 %v8995_v41  ;;  %v9050_v32 = vld [vmem:[#allocation4 + $0xe00] ss:$16 sps:$4 sm:$0xff]   ;;  %v9055_v41 = vld [vmem:[#allocation4 + $0xde4] ss:$16 sps:$4 sm:$0xff]  }
 0x474   :  { %6837 = vmatprep.subr.bf16.mxu1 %v8998_v58  ;;  %v9058_v58 = vld [vmem:[#allocation4 + $0xfe4] ss:$16 sps:$4 sm:$0xff]  }
 0x476   :  { %6797 = vmatpush2.bf16.msra.mxu0 %v8993_v39  ;;  %v9056_v39 = vld [vmem:[#allocation4 + $0xfe0] ss:$16 sps:$4 sm:$0xff]  }
 0x477   :  { %6838 = vmatpush2.bf16.msra.mxu1 %v8996_v46  ;;  %6798 = vmatprep.subr.bf16.mxu0 %v9001_v47  ;;  %v9064_v46 = vld [vmem:[#allocation4 + $0xfc4] ss:$16 sps:$4 sm:$0xff]   ;;  %v9059_v47 = vld [vmem:[#allocation4 + $0xdc0] ss:$16 sps:$4 sm:$0xff]  }
 0x478   :  { %6839 = vmatprep.subr.bf16.mxu1 %v9004_v49  ;;  %v9062_v49 = vld [vmem:[#allocation4 + $0xfc0] ss:$16 sps:$4 sm:$0xff]  }
 0x47a   :  { %6799 = vmatpush2.bf16.msra.mxu0 %v8999_v13  ;;  %v9070_v13 = vld [vmem:[#allocation4 + $0xfa4] ss:$16 sps:$4 sm:$0xff]  }
 0x47b   :  { %6840 = vmatpush2.bf16.msra.mxu1 %v9002_v55  ;;  %6850 = vmatprep.subr.bf16.mxu0 %v9007_v45  ;;  %v9068_v55 = vld [vmem:[#allocation4 + $0xfa0] ss:$16 sps:$4 sm:$0xff]   ;;  %v9073_v45 = vld [vmem:[#allocation4 + $0xd84] ss:$16 sps:$4 sm:$0xff]  }
 0x47c   :  { %6891 = vmatprep.subr.bf16.mxu1 %v9010_v61  ;;  %v9076_v61 = vld [vmem:[#allocation4 + $0xf84] ss:$16 sps:$4 sm:$0xff]  }
 0x47d   :  { %6801 = vmatmul.mubr.bf16.vlgmr.msra.gmra.mxu0 %v10416_v52 }
 0x47e   :  { %6842 = vmatmul.mubr.bf16.vlgmr.msra.gmra.mxu1 %v10418_v0  ;;  %6851 = vmatpush1.bf16.msra.mxu0 %v9005_v14  ;;  %v9074_v14 = vld [vmem:[#allocation4 + $0xf80] ss:$16 sps:$4 sm:$0xff]  }
 0x47f   :  { %6892 = vmatpush1.bf16.msra.mxu1 %v9008_v53  ;;  %6852 = vmatprep.subr.bf16.mxu0 %v9013_v3  ;;  %v9079_v53 = vld [vmem:[#allocation4 + $0xd64] ss:$16 sps:$4 sm:$0xff]  }
 0x480   :  { %6893 = vmatprep.subr.bf16.mxu1 %v9016_v6  ;;  %6882 = vmatprep.mubr.bf16.mxu0 %v10420_v7  ;;  %v9082_v3 = vld [vmem:[#allocation4 + $0xf64] ss:$16 sps:$4 sm:$0xff]   ;;  %v9077_v6 = vld [vmem:[#allocation4 + $0xd60] ss:$16 sps:$4 sm:$0xff]  }
 0x481   :  { %6923 = vmatprep.mubr.bf16.mxu1 %v10422_v10 }
 0x482   :  { %6853 = vmatpush1.bf16.msra.mxu0 %v9011_v2  ;;  %v9080_v2 = vld [vmem:[#allocation4 + $0xf60] ss:$16 sps:$4 sm:$0xff]  }
 0x483   :  { %6894 = vmatpush1.bf16.msra.mxu1 %v9014_v11  ;;  %6854 = vmatprep.subr.bf16.mxu0 %v9019_v12  ;;  %v9085_v11 = vld [vmem:[#allocation4 + $0xd44] ss:$16 sps:$4 sm:$0xff]  }
 0x484   :  { %6895 = vmatprep.subr.bf16.mxu1 %v9022_v15  ;;  %v9088_v12 = vld [vmem:[#allocation4 + $0xf44] ss:$16 sps:$4 sm:$0xff]   ;;  %v9083_v15 = vld [vmem:[#allocation4 + $0xd40] ss:$16 sps:$4 sm:$0xff]  }
 0x486   :  { %6855 = vmatpush1.bf16.msra.mxu0 %v9017_v16  ;;  %v9086_v16 = vld [vmem:[#allocation4 + $0xf40] ss:$16 sps:$4 sm:$0xff]  }
 0x487   :  { %6896 = vmatpush1.bf16.msra.mxu1 %v9020_v17  ;;  %6856 = vmatprep.subr.bf16.mxu0 %v9025_v18  ;;  %v9091_v17 = vld [vmem:[#allocation4 + $0xd24] ss:$16 sps:$4 sm:$0xff]  }
 0x488   :  { %6897 = vmatprep.subr.bf16.mxu1 %v9028_v22  ;;  %v9094_v18 = vld [vmem:[#allocation4 + $0xf24] ss:$16 sps:$4 sm:$0xff]   ;;  %v9089_v22 = vld [vmem:[#allocation4 + $0xd20] ss:$16 sps:$4 sm:$0xff]  }
 0x48a   :  { %6857 = vmatpush1.bf16.msra.mxu0 %v9023_v5  ;;  %v3459_v5 = vrot.slane %v10409_v36, %v10348_v4  ;;  %v9104_v36 = vld [vmem:[#allocation4 + $0x2e8] ss:$16 sps:$4 sm:$0xff]  }
 0x48b   :  { %6898 = vmatpush1.bf16.msra.mxu1 %v9026_v23  ;;  %6858 = vmatprep.subr.bf16.mxu0 %v9031_v19  ;;  %v9092_v23 = vld [vmem:[#allocation4 + $0xf20] ss:$16 sps:$4 sm:$0xff]   ;;  %v9097_v19 = vld [vmem:[#allocation4 + $0xd04] ss:$16 sps:$4 sm:$0xff]  }
 0x48c   :  { %6899 = vmatprep.subr.bf16.mxu1 %v9034_v24  ;;  %v9100_v24 = vld [vmem:[#allocation4 + $0xf04] ss:$16 sps:$4 sm:$0xff]  }
 0x48e   :  { %6859 = vmatpush1.bf16.msra.mxu0 %v9029_v62  ;;  %v9095_v62 = vld [vmem:[#allocation4 + $0xd00] ss:$16 sps:$4 sm:$0xff]  }
 0x48f   :  { %6900 = vmatpush1.bf16.msra.mxu1 %v9032_v25  ;;  %6860 = vmatprep.subr.bf16.mxu0 %v9037_v26  ;;  %v9098_v25 = vld [vmem:[#allocation4 + $0xf00] ss:$16 sps:$4 sm:$0xff]   ;;  %v3475_v26 = vcombine.high %v3459_v5, %v3459_v5 }
 0x490   :  { %6901 = vmatprep.subr.bf16.mxu1 %v9040_v20  ;;  %v4022_v20 = vld [vmem:[#allocation18] sm:$0xf] }
 0x491   :  { %v10432_v4 = vpack.c.bf16 %v3475_v26, %v3475_v26  ;;  %v9154_v26 = vld [vmem:[#allocation4 + $0x3ec] ss:$16 sps:$4 sm:$0xff]  }
 0x492   :  { %6861 = vmatpush1.bf16.msra.mxu0 %v9035_v48  ;;  %v9103_v48 = vld [vmem:[#allocation4 + $0xec] ss:$16 sps:$4 sm:$0xff]  }
 0x493   :  { %6902 = vmatpush1.bf16.msra.mxu1 %v9038_v8  ;;  %6862 = vmatprep.subr.bf16.mxu0 %v9043_v28  ;;  %v9106_v8 = vld [vmem:[#allocation4 + $0x2ec] ss:$16 sps:$4 sm:$0xff]   ;;  %v9101_v28 = vld [vmem:[#allocation4 + $0xe8] ss:$16 sps:$4 sm:$0xff]  }
 0x494   :  { %6903 = vmatprep.subr.bf16.mxu1 %v9046_v29  ;;  %v10430_v29 = vpack.c.bf16 %v3459_v5, %v3459_v5  ;;  %v9140_v5 = vld [vmem:[#allocation4 + $0x228] ss:$16 sps:$4 sm:$0xff]  }
 0x496   :  { %6863 = vmatpush1.bf16.msra.mxu0 %v9041_v30  ;;  %v4027_v30 = vrot.slane %v4022_v20, %v9945_v57 }
 0x497   :  { %6904 = vmatpush1.bf16.msra.mxu1 %v9044_v38  ;;  %6864 = vmatprep.subr.bf16.mxu0 %v9049_v33  ;;  %v9109_v38 = vld [vmem:[#allocation4 + $0xcc] ss:$16 sps:$4 sm:$0xff]  }
 0x498   :  { %6905 = vmatprep.subr.bf16.mxu1 %v9052_v34  ;;  %v9112_v33 = vld [vmem:[#allocation4 + $0x2cc] ss:$16 sps:$4 sm:$0xff]   ;;  %v4031_v34 = vrot.slane %v4022_v20, %v3006_v56  ;;  %v9149_v20 = vld [vmem:[#allocation4 + $0x1e8] ss:$16 sps:$4 sm:$0xff]  }
 0x49a   :  { %6865 = vmatpush1.bf16.msra.mxu0 %v9047_v21  ;;  %v9107_v21 = vld [vmem:[#allocation4 + $0xc8] ss:$16 sps:$4 sm:$0xff]  }
 0x49b   :  { %6906 = vmatpush1.bf16.msra.mxu1 %v9050_v32  ;;  %6866 = vmatprep.subr.bf16.mxu0 %v9055_v41  ;;  %v9110_v32 = vld [vmem:[#allocation4 + $0x2c8] ss:$16 sps:$4 sm:$0xff]  }
 0x49c   :  { %6907 = vmatprep.subr.bf16.mxu1 %v9058_v58 }
 0x49e   :  { %6867 = vmatpush2.bf16.msra.mxu0 %v9053_v60 }
 0x49f   :  { %6908 = vmatpush2.bf16.msra.mxu1 %v9056_v39  ;;  %6868 = vmatprep.subr.bf16.mxu0 %v9061_v43  ;;  %v9115_v43 = vld [vmem:[#allocation4 + $0xac] ss:$16 sps:$4 sm:$0xff]  }
 0x4a0   :  { %6909 = vmatprep.subr.bf16.mxu1 %v9064_v46  ;;  %v9118_v46 = vld [vmem:[#allocation4 + $0x2ac] ss:$16 sps:$4 sm:$0xff]  }
 0x4a2   :  { %6869 = vmatpush2.bf16.msra.mxu0 %v9059_v47 }
 0x4a3   :  { %6910 = vmatpush2.bf16.msra.mxu1 %v9062_v49  ;;  %6870 = vmatprep.subr.bf16.mxu0 %v9067_v40  ;;  %v9113_v49 = vld [vmem:[#allocation4 + $0xa8] ss:$16 sps:$4 sm:$0xff]  }
 0x4a4   :  { %6911 = vmatprep.subr.bf16.mxu1 %v9070_v13  ;;  %v9116_v40 = vld [vmem:[#allocation4 + $0x2a8] ss:$16 sps:$4 sm:$0xff]  }
 0x4a6   :  { %6871 = vmatpush2.bf16.msra.mxu0 %v9065_v50 }
 0x4a7   :  { %6912 = vmatpush2.bf16.msra.mxu1 %v9068_v55  ;;  %6872 = vmatprep.subr.bf16.mxu0 %v9073_v45 }
 0x4a8   :  { %6913 = vmatprep.subr.bf16.mxu1 %v9076_v61 }
 0x4aa   :  { %6873 = vmatpush2.bf16.msra.mxu0 %v9071_v63  ;;  %v9121_v63 = vld [vmem:[#allocation4 + $0x8c] ss:$16 sps:$4 sm:$0xff]  }
 0x4ab   :  { %6914 = vmatpush2.bf16.msra.mxu1 %v9074_v14  ;;  %6874 = vmatprep.subr.bf16.mxu0 %v9079_v53  ;;  %v9124_v14 = vld [vmem:[#allocation4 + $0x28c] ss:$16 sps:$4 sm:$0xff]   ;;  %v9119_v53 = vld [vmem:[#allocation4 + $0x88] ss:$16 sps:$4 sm:$0xff]  }
 0x4ac   :  { %6915 = vmatprep.subr.bf16.mxu1 %v9082_v3  ;;  %v9122_v3 = vld [vmem:[#allocation4 + $0x288] ss:$16 sps:$4 sm:$0xff]  }
 0x4ae   :  { %6875 = vmatpush2.bf16.msra.mxu0 %v9077_v6  ;;  %v9125_v6 = vld [vmem:[#allocation4 + $0x68] ss:$16 sps:$4 sm:$0xff]  }
 0x4af   :  { %6916 = vmatpush2.bf16.msra.mxu1 %v9080_v2  ;;  %6876 = vmatprep.subr.bf16.mxu0 %v9085_v11  ;;  %v9128_v2 = vld [vmem:[#allocation4 + $0x268] ss:$16 sps:$4 sm:$0xff]   ;;  %v9133_v11 = vld [vmem:[#allocation4 + $0x4c] ss:$16 sps:$4 sm:$0xff]  }
 0x4b0   :  { %6917 = vmatprep.subr.bf16.mxu1 %v9088_v12  ;;  %v9136_v12 = vld [vmem:[#allocation4 + $0x24c] ss:$16 sps:$4 sm:$0xff]  }
 0x4b2   :  { %6877 = vmatpush2.bf16.msra.mxu0 %v9083_v15  ;;  %v9131_v15 = vld [vmem:[#allocation4 + $0x48] ss:$16 sps:$4 sm:$0xff]  }
 0x4b3   :  { %6918 = vmatpush2.bf16.msra.mxu1 %v9086_v16  ;;  %6878 = vmatprep.subr.bf16.mxu0 %v9091_v17  ;;  %v9134_v16 = vld [vmem:[#allocation4 + $0x248] ss:$16 sps:$4 sm:$0xff]   ;;  %v9139_v17 = vld [vmem:[#allocation4 + $0x2c] ss:$16 sps:$4 sm:$0xff]  }
 0x4b4   :  { %6919 = vmatprep.subr.bf16.mxu1 %v9094_v18  ;;  %v9142_v18 = vld [vmem:[#allocation4 + $0x22c] ss:$16 sps:$4 sm:$0xff]  }
 0x4b6   :  { %6879 = vmatpush2.bf16.msra.mxu0 %v9089_v22  ;;  %v9137_v22 = vld [vmem:[#allocation4 + $0x28] ss:$16 sps:$4 sm:$0xff]  }
 0x4b7   :  { %6920 = vmatpush2.bf16.msra.mxu1 %v9092_v23  ;;  %6880 = vmatprep.subr.bf16.mxu0 %v9097_v19  ;;  %v9145_v23 = vld [vmem:[#allocation4 + $0xc] ss:$16 sps:$4 sm:$0xff]  }
 0x4b8   :  { %6921 = vmatprep.subr.bf16.mxu1 %v9100_v24  ;;  %v9148_v19 = vld [vmem:[#allocation4 + $0x20c] ss:$16 sps:$4 sm:$0xff]   ;;  %v9143_v24 = vld [vmem:[#allocation4 + $0x8] ss:$16 sps:$4 sm:$0xff]  }
 0x4ba   :  { %6881 = vmatpush2.bf16.msra.mxu0 %v9095_v62  ;;  %v9146_v62 = vld [vmem:[#allocation4 + $0x208] ss:$16 sps:$4 sm:$0xff]  }
 0x4bb   :  { %6922 = vmatpush2.bf16.msra.mxu1 %v9098_v25  ;;  %6932 = vmatprep.subr.bf16.mxu0 %v9103_v48  ;;  %v9151_v25 = vld [vmem:[#allocation4 + $0x1ec] ss:$16 sps:$4 sm:$0xff]   ;;  %v9152_v48 = vld [vmem:[#allocation4 + $0x3e8] ss:$16 sps:$4 sm:$0xff]  }
 0x4bc   :  { %6973 = vmatprep.subr.bf16.mxu1 %v9106_v8  ;;  %v9157_v8 = vld [vmem:[#allocation4 + $0x1cc] ss:$16 sps:$4 sm:$0xff]  }
 0x4bd   :  { %v6638_v41 = vpop.f32.mrf.mxu0  ;;  %6883 = vmatmul.mubr.bf16.vlgmr.msra.gmra.mxu0 %v10430_v29 }
 0x4be   :  { %v6679_v58 = vpop.f32.mrf.mxu1  ;;  %6924 = vmatmul.mubr.bf16.vlgmr.msra.gmra.mxu1 %v10432_v4  ;;  %v6639_v60 = vadd.f32 %v6638_v41, %v4027_v30  ;;  %6933 = vmatpush1.bf16.msra.mxu0 %v9101_v28  ;;  %v9160_v28 = vld [vmem:[#allocation4 + $0x3cc] ss:$16 sps:$4 sm:$0xff]   ;;  %v9158_v30 = vld [vmem:[#allocation4 + $0x3c8] ss:$16 sps:$4 sm:$0xff]  }
 0x4bf   :  { %6974 = vmatpush1.bf16.msra.mxu1 %v9104_v36  ;;  %v6640_v39 = vpop.f32.mrf.mxu0  ;;  %6934 = vmatprep.subr.bf16.mxu0 %v9109_v38  ;;  %v9155_v36 = vld [vmem:[#allocation4 + $0x1c8] ss:$16 sps:$4 sm:$0xff]   ;;  %v9163_v38 = vld [vmem:[#allocation4 + $0x1ac] ss:$16 sps:$4 sm:$0xff]  }
 0x4c0   :  { %v6681_v57 = vpop.f32.mrf.mxu1  ;;  %6975 = vmatprep.subr.bf16.mxu1 %v9112_v33  ;;  %v10439_v47 = vadd.f32 %v6679_v58, %v6639_v60  ;;  %v6641_v56 = vadd.f32 %v6640_v39, %v4031_v34  ;;  %6964 = vmatprep.mubr.bf16.mxu0 %v10356_v51  ;;  %v9127_v51 = vld [vmem:[#allocation4 + $0x6c] ss:$16 sps:$4 sm:$0xff]   ;;  %v9161_v34 = vld [vmem:[#allocation4 + $0x1a8] ss:$16 sps:$4 sm:$0xff]  }
 0x4c1   :  { %7005 = vmatprep.mubr.bf16.mxu1 %v10358_v1  ;;  %v6642_v13 = vpop.f32.mrf.mxu0  ;;  %v9130_v1 = vld [vmem:[#allocation4 + $0x26c] ss:$16 sps:$4 sm:$0xff]   ;;  %v9167_v58 = vld [vmem:[#allocation4 + $0x188] ss:$16 sps:$4 sm:$0xff]  }
 0x4c2   :  { %v6683_v50 = vpop.f32.mrf.mxu1  ;;  %v10443_v55 = vadd.f32 %v6681_v57, %v6641_v56  ;;  %6935 = vmatpush1.bf16.msra.mxu0 %v9107_v21  ;;  %v9166_v33 = vld [vmem:[#allocation4 + $0x3ac] ss:$16 sps:$4 sm:$0xff]   ;;  %v9164_v21 = vld [vmem:[#allocation4 + $0x3a8] ss:$16 sps:$4 sm:$0xff]  }
 0x4c3   :  { %6976 = vmatpush1.bf16.msra.mxu1 %v9110_v32  ;;  %v6643_v45 = vpop.f32.mrf.mxu0  ;;  %6936 = vmatprep.subr.bf16.mxu0 %v9115_v43  ;;  %v9169_v32 = vld [vmem:[#allocation4 + $0x18c] ss:$16 sps:$4 sm:$0xff]   ;;  %v9170_v60 = vld [vmem:[#allocation4 + $0x388] ss:$16 sps:$4 sm:$0xff]  }
 0x4c4   :  { %v6684_v61 = vpop.f32.mrf.mxu1  ;;  %6977 = vmatprep.subr.bf16.mxu1 %v9118_v46  ;;  %v9172_v41 = vld [vmem:[#allocation4 + $0x38c] ss:$16 sps:$4 sm:$0xff]   ;;  %v9173_v43 = vld [vmem:[#allocation4 + $0x168] ss:$16 sps:$4 sm:$0xff]  }
 0x4c5   :  { %v9175_v39 = vld [vmem:[#allocation4 + $0x16c] ss:$16 sps:$4 sm:$0xff]   ;;  %v9176_v46 = vld [vmem:[#allocation4 + $0x368] ss:$16 sps:$4 sm:$0xff]  }
 0x4c6   :  { %6937 = vmatpush1.bf16.msra.mxu0 %v9113_v49  ;;  %v9178_v57 = vld [vmem:[#allocation4 + $0x36c] ss:$16 sps:$4 sm:$0xff]   ;;  %v9182_v13 = vld [vmem:[#allocation4 + $0x348] ss:$16 sps:$4 sm:$0xff]  }
 0x4c7   :  { %6978 = vmatpush1.bf16.msra.mxu1 %v9116_v40  ;;  %6938 = vmatprep.subr.bf16.mxu0 %v9121_v63  ;;  %v9181_v56 = vld [vmem:[#allocation4 + $0x14c] ss:$16 sps:$4 sm:$0xff]   ;;  %v9179_v40 = vld [vmem:[#allocation4 + $0x148] ss:$16 sps:$4 sm:$0xff]  }
 0x4c8   :  { %6979 = vmatprep.subr.bf16.mxu1 %v9124_v14  ;;  %v9184_v49 = vld [vmem:[#allocation4 + $0x34c] ss:$16 sps:$4 sm:$0xff]   ;;  %v9185_v61 = vld [vmem:[#allocation4 + $0x128] ss:$16 sps:$4 sm:$0xff]  }
 0x4c9   :  { %v9187_v50 = vld [vmem:[#allocation4 + $0x12c] ss:$16 sps:$4 sm:$0xff]   ;;  %v9188_v63 = vld [vmem:[#allocation4 + $0x328] ss:$16 sps:$4 sm:$0xff]  }
 0x4ca   :  { %6939 = vmatpush1.bf16.msra.mxu0 %v9119_v53  ;;  %v9190_v45 = vld [vmem:[#allocation4 + $0x32c] ss:$16 sps:$4 sm:$0xff]  }
 0x4cb   :  { %6980 = vmatpush1.bf16.msra.mxu1 %v9122_v3  ;;  %6940 = vmatprep.subr.bf16.mxu0 %v9127_v51  ;;  %v9193_v14 = vld [vmem:[#allocation4 + $0x10c] ss:$16 sps:$4 sm:$0xff]   ;;  %v9191_v3 = vld [vmem:[#allocation4 + $0x108] ss:$16 sps:$4 sm:$0xff]  }
 0x4cc   :  { %6981 = vmatprep.subr.bf16.mxu1 %v9130_v1  ;;  %v9196_v53 = vld [vmem:[#allocation4 + $0x30c] ss:$16 sps:$4 sm:$0xff]   ;;  %v9194_v51 = vld [vmem:[#allocation4 + $0x308] ss:$16 sps:$4 sm:$0xff]  }
 0x4cd   :  { %v9199_v1 = vld [vmem:[#allocation4 + $0x4ec] ss:$16 sps:$4 sm:$0xff]  }
 0x4ce   :  { %6941 = vmatpush1.bf16.msra.mxu0 %v9125_v6  ;;  %v9202_v6 = vld [vmem:[#allocation4 + $0x6ec] ss:$16 sps:$4 sm:$0xff]  }
 0x4cf   :  { %6982 = vmatpush1.bf16.msra.mxu1 %v9128_v2  ;;  %6942 = vmatprep.subr.bf16.mxu0 %v9133_v11  ;;  %v9197_v2 = vld [vmem:[#allocation4 + $0x4e8] ss:$16 sps:$4 sm:$0xff]  }
 0x4d0   :  { %6983 = vmatprep.subr.bf16.mxu1 %v9136_v12  ;;  %v9200_v11 = vld [vmem:[#allocation4 + $0x6e8] ss:$16 sps:$4 sm:$0xff]   ;;  %v9205_v12 = vld [vmem:[#allocation4 + $0x4cc] ss:$16 sps:$4 sm:$0xff]  }
 0x4d2   :  { %6943 = vmatpush1.bf16.msra.mxu0 %v9131_v15  ;;  %v9208_v15 = vld [vmem:[#allocation4 + $0x6cc] ss:$16 sps:$4 sm:$0xff]  }
 0x4d3   :  { %6984 = vmatpush1.bf16.msra.mxu1 %v9134_v16  ;;  %6944 = vmatprep.subr.bf16.mxu0 %v9139_v17 }
 0x4d4   :  { %6985 = vmatprep.subr.bf16.mxu1 %v9142_v18 }
 0x4d6   :  { %6945 = vmatpush1.bf16.msra.mxu0 %v9137_v22  ;;  %v9203_v22 = vld [vmem:[#allocation4 + $0x4c8] ss:$16 sps:$4 sm:$0xff]  }
 0x4d7   :  { %6986 = vmatpush1.bf16.msra.mxu1 %v9140_v5  ;;  %6946 = vmatprep.subr.bf16.mxu0 %v9145_v23  ;;  %v9206_v5 = vld [vmem:[#allocation4 + $0x6c8] ss:$16 sps:$4 sm:$0xff]  }
 0x4d8   :  { %6987 = vmatprep.subr.bf16.mxu1 %v9148_v19 }
 0x4da   :  { %6947 = vmatpush1.bf16.msra.mxu0 %v9143_v24  ;;  %v9211_v24 = vld [vmem:[#allocation4 + $0x4ac] ss:$16 sps:$4 sm:$0xff]  }
 0x4db   :  { %6988 = vmatpush1.bf16.msra.mxu1 %v9146_v62  ;;  %6948 = vmatprep.subr.bf16.mxu0 %v9151_v25  ;;  %v9214_v62 = vld [vmem:[#allocation4 + $0x6ac] ss:$16 sps:$4 sm:$0xff]  }
 0x4dc   :  { %6989 = vmatprep.subr.bf16.mxu1 %v9154_v26 }
 0x4de   :  { %6949 = vmatpush2.bf16.msra.mxu0 %v9149_v20  ;;  %v9209_v20 = vld [vmem:[#allocation4 + $0x4a8] ss:$16 sps:$4 sm:$0xff]  }
 0x4df   :  { %6990 = vmatpush2.bf16.msra.mxu1 %v9152_v48  ;;  %6950 = vmatprep.subr.bf16.mxu0 %v9157_v8  ;;  %v9212_v48 = vld [vmem:[#allocation4 + $0x6a8] ss:$16 sps:$4 sm:$0xff]  }
 0x4e0   :  { %6991 = vmatprep.subr.bf16.mxu1 %v9160_v28 }
 0x4e2   :  { %6951 = vmatpush2.bf16.msra.mxu0 %v9155_v36  ;;  %v9217_v36 = vld [vmem:[#allocation4 + $0x48c] ss:$16 sps:$4 sm:$0xff]  }
 0x4e3   :  { %6992 = vmatpush2.bf16.msra.mxu1 %v9158_v30  ;;  %6952 = vmatprep.subr.bf16.mxu0 %v9163_v38  ;;  %v9220_v30 = vld [vmem:[#allocation4 + $0x68c] ss:$16 sps:$4 sm:$0xff]  }
 0x4e4   :  { %6993 = vmatprep.subr.bf16.mxu1 %v9166_v33  ;;  %v9226_v38 = vld [vmem:[#allocation4 + $0x66c] ss:$16 sps:$4 sm:$0xff]   ;;  %v9221_v33 = vld [vmem:[#allocation4 + $0x468] ss:$16 sps:$4 sm:$0xff]  }
 0x4e6   :  { %6953 = vmatpush2.bf16.msra.mxu0 %v9161_v34  ;;  %v9224_v34 = vld [vmem:[#allocation4 + $0x668] ss:$16 sps:$4 sm:$0xff]  }
 0x4e7   :  { %6994 = vmatpush2.bf16.msra.mxu1 %v9164_v21  ;;  %6954 = vmatprep.subr.bf16.mxu0 %v9169_v32  ;;  %v9229_v21 = vld [vmem:[#allocation4 + $0x44c] ss:$16 sps:$4 sm:$0xff]  }
 0x4e8   :  { %6995 = vmatprep.subr.bf16.mxu1 %v9172_v41  ;;  %v9232_v32 = vld [vmem:[#allocation4 + $0x64c] ss:$16 sps:$4 sm:$0xff]   ;;  %v9227_v41 = vld [vmem:[#allocation4 + $0x448] ss:$16 sps:$4 sm:$0xff]  }
 0x4ea   :  { %6955 = vmatpush2.bf16.msra.mxu0 %v9167_v58  ;;  %v9230_v58 = vld [vmem:[#allocation4 + $0x648] ss:$16 sps:$4 sm:$0xff]  }
 0x4eb   :  { %6996 = vmatpush2.bf16.msra.mxu1 %v9170_v60  ;;  %6956 = vmatprep.subr.bf16.mxu0 %v9175_v39  ;;  %v9235_v60 = vld [vmem:[#allocation4 + $0x42c] ss:$16 sps:$4 sm:$0xff]  }
 0x4ec   :  { %6997 = vmatprep.subr.bf16.mxu1 %v9178_v57  ;;  %v9238_v39 = vld [vmem:[#allocation4 + $0x62c] ss:$16 sps:$4 sm:$0xff]   ;;  %v9233_v57 = vld [vmem:[#allocation4 + $0x428] ss:$16 sps:$4 sm:$0xff]  }
 0x4ee   :  { %6957 = vmatpush2.bf16.msra.mxu0 %v9173_v43  ;;  %v9236_v43 = vld [vmem:[#allocation4 + $0x628] ss:$16 sps:$4 sm:$0xff]  }
 0x4ef   :  { %6998 = vmatpush2.bf16.msra.mxu1 %v9176_v46  ;;  %6958 = vmatprep.subr.bf16.mxu0 %v9181_v56  ;;  %v9241_v46 = vld [vmem:[#allocation4 + $0x40c] ss:$16 sps:$4 sm:$0xff]  }
 0x4f0   :  { %6999 = vmatprep.subr.bf16.mxu1 %v9184_v49  ;;  %v9244_v56 = vld [vmem:[#allocation4 + $0x60c] ss:$16 sps:$4 sm:$0xff]   ;;  %v9239_v49 = vld [vmem:[#allocation4 + $0x408] ss:$16 sps:$4 sm:$0xff]  }
 0x4f2   :  { %6959 = vmatpush2.bf16.msra.mxu0 %v9179_v40  ;;  %v9242_v40 = vld [vmem:[#allocation4 + $0x608] ss:$16 sps:$4 sm:$0xff]  }
 0x4f3   :  { %7000 = vmatpush2.bf16.msra.mxu1 %v9182_v13  ;;  %6960 = vmatprep.subr.bf16.mxu0 %v9187_v50  ;;  %v9247_v13 = vld [vmem:[#allocation4 + $0x5ec] ss:$16 sps:$4 sm:$0xff]  }
 0x4f4   :  { %7001 = vmatprep.subr.bf16.mxu1 %v9190_v45  ;;  %v9250_v50 = vld [vmem:[#allocation4 + $0x7ec] ss:$16 sps:$4 sm:$0xff]   ;;  %v9245_v45 = vld [vmem:[#allocation4 + $0x5e8] ss:$16 sps:$4 sm:$0xff]  }
 0x4f6   :  { %6961 = vmatpush2.bf16.msra.mxu0 %v9185_v61  ;;  %v9248_v61 = vld [vmem:[#allocation4 + $0x7e8] ss:$16 sps:$4 sm:$0xff]  }
 0x4f7   :  { %7002 = vmatpush2.bf16.msra.mxu1 %v9188_v63  ;;  %6962 = vmatprep.subr.bf16.mxu0 %v9193_v14  ;;  %v9253_v63 = vld [vmem:[#allocation4 + $0x5cc] ss:$16 sps:$4 sm:$0xff]  }
 0x4f8   :  { %7003 = vmatprep.subr.bf16.mxu1 %v9196_v53  ;;  %v9256_v14 = vld [vmem:[#allocation4 + $0x7cc] ss:$16 sps:$4 sm:$0xff]   ;;  %v9251_v53 = vld [vmem:[#allocation4 + $0x5c8] ss:$16 sps:$4 sm:$0xff]  }
 0x4fa   :  { %6963 = vmatpush2.bf16.msra.mxu0 %v9191_v3  ;;  %v9254_v3 = vld [vmem:[#allocation4 + $0x7c8] ss:$16 sps:$4 sm:$0xff]  }
 0x4fb   :  { %7004 = vmatpush2.bf16.msra.mxu1 %v9194_v51  ;;  %7014 = vmatprep.subr.bf16.mxu0 %v9199_v1  ;;  %v9259_v51 = vld [vmem:[#allocation4 + $0x5ac] ss:$16 sps:$4 sm:$0xff]  }
 0x4fc   :  { %7055 = vmatprep.subr.bf16.mxu1 %v9202_v6  ;;  %v9262_v1 = vld [vmem:[#allocation4 + $0x7ac] ss:$16 sps:$4 sm:$0xff]   ;;  %v9257_v6 = vld [vmem:[#allocation4 + $0x5a8] ss:$16 sps:$4 sm:$0xff]  }
 0x4fd   :  { %v6720_v16 = vpop.f32.mrf.mxu0  ;;  %6965 = vmatmul.mubr.bf16.vlgmr.msra.gmra.mxu0 %v10372_v9 }
 0x4fe   :  { %v6761_v17 = vpop.f32.mrf.mxu1  ;;  %7006 = vmatmul.mubr.bf16.vlgmr.msra.gmra.mxu1 %v10374_v37  ;;  %v6721_v18 = vadd.f32 %v6720_v16, %v10439_v47  ;;  %7015 = vmatpush1.bf16.msra.mxu0 %v9197_v2  ;;  %v9260_v2 = vld [vmem:[#allocation4 + $0x7a8] ss:$16 sps:$4 sm:$0xff]  }
 0x4ff   :  { %7056 = vmatpush1.bf16.msra.mxu1 %v9200_v11  ;;  %v6722_v23 = vpop.f32.mrf.mxu0  ;;  %7016 = vmatprep.subr.bf16.mxu0 %v9205_v12  ;;  %v9265_v11 = vld [vmem:[#allocation4 + $0x58c] ss:$16 sps:$4 sm:$0xff]   ;;  %v9266_v16 = vld [vmem:[#allocation4 + $0x788] ss:$16 sps:$4 sm:$0xff]  }
 0x500   :  { %v6763_v19 = vpop.f32.mrf.mxu1  ;;  %7057 = vmatprep.subr.bf16.mxu1 %v9208_v15  ;;  %v10448_v25 = vadd.f32 %v6761_v17, %v6721_v18  ;;  %v6723_v26 = vadd.f32 %v6722_v23, %v10443_v55  ;;  %7046 = vmatprep.mubr.bf16.mxu0 %v10376_v54  ;;  %v9215_v55 = vld [vmem:[#allocation4 + $0x488] ss:$16 sps:$4 sm:$0xff]   ;;  %v9268_v12 = vld [vmem:[#allocation4 + $0x78c] ss:$16 sps:$4 sm:$0xff]  }
 0x501   :  { %7087 = vmatprep.mubr.bf16.mxu1 %v10378_v59  ;;  %v6724_v9 = vpop.f32.mrf.mxu0  ;;  %v9218_v54 = vld [vmem:[#allocation4 + $0x688] ss:$16 sps:$4 sm:$0xff]   ;;  %v9223_v59 = vld [vmem:[#allocation4 + $0x46c] ss:$16 sps:$4 sm:$0xff]  }
 0x502   :  { %v6765_v37 = vpop.f32.mrf.mxu1  ;;  %v10453_v47 = vadd.f32 %v6763_v19, %v6723_v26  ;;  %7017 = vmatpush1.bf16.msra.mxu0 %v9203_v22  ;;  %v9263_v15 = vld [vmem:[#allocation4 + $0x588] ss:$16 sps:$4 sm:$0xff]   ;;  %v9271_v17 = vld [vmem:[#allocation4 + $0x56c] ss:$16 sps:$4 sm:$0xff]  }
 0x503   :  { %7058 = vmatpush1.bf16.msra.mxu1 %v9206_v5  ;;  %v6725_v8 = vpop.f32.mrf.mxu0  ;;  %7018 = vmatprep.subr.bf16.mxu0 %v9211_v24  ;;  %v9274_v18 = vld [vmem:[#allocation4 + $0x76c] ss:$16 sps:$4 sm:$0xff]   ;;  %v9269_v22 = vld [vmem:[#allocation4 + $0x568] ss:$16 sps:$4 sm:$0xff]  }
 0x504   :  { %v6766_v28 = vpop.f32.mrf.mxu1  ;;  %7059 = vmatprep.subr.bf16.mxu1 %v9214_v62  ;;  %v9272_v5 = vld [vmem:[#allocation4 + $0x768] ss:$16 sps:$4 sm:$0xff]   ;;  %v9277_v23 = vld [vmem:[#allocation4 + $0x54c] ss:$16 sps:$4 sm:$0xff]  }
 0x505   :  { %v9280_v19 = vld [vmem:[#allocation4 + $0x74c] ss:$16 sps:$4 sm:$0xff]   ;;  %v9275_v24 = vld [vmem:[#allocation4 + $0x548] ss:$16 sps:$4 sm:$0xff]  }
 0x506   :  { %7019 = vmatpush1.bf16.msra.mxu0 %v9209_v20  ;;  %v9278_v62 = vld [vmem:[#allocation4 + $0x748] ss:$16 sps:$4 sm:$0xff]   ;;  %v9283_v26 = vld [vmem:[#allocation4 + $0x52c] ss:$16 sps:$4 sm:$0xff]  }
 0x507   :  { %7060 = vmatpush1.bf16.msra.mxu1 %v9212_v48  ;;  %7020 = vmatprep.subr.bf16.mxu0 %v9217_v36  ;;  %v9286_v9 = vld [vmem:[#allocation4 + $0x72c] ss:$16 sps:$4 sm:$0xff]   ;;  %v9281_v37 = vld [vmem:[#allocation4 + $0x528] ss:$16 sps:$4 sm:$0xff]  }
 0x508   :  { %7061 = vmatprep.subr.bf16.mxu1 %v9220_v30  ;;  %v9284_v20 = vld [vmem:[#allocation4 + $0x728] ss:$16 sps:$4 sm:$0xff]   ;;  %v9289_v48 = vld [vmem:[#allocation4 + $0x50c] ss:$16 sps:$4 sm:$0xff]  }
 0x509   :  { %v9292_v8 = vld [vmem:[#allocation4 + $0x70c] ss:$16 sps:$4 sm:$0xff]   ;;  %v9287_v28 = vld [vmem:[#allocation4 + $0x508] ss:$16 sps:$4 sm:$0xff]  }
 0x50a   :  { %7021 = vmatpush1.bf16.msra.mxu0 %v9215_v55  ;;  %v9290_v36 = vld [vmem:[#allocation4 + $0x708] ss:$16 sps:$4 sm:$0xff]   ;;  %v9295_v30 = vld [vmem:[#allocation4 + $0x8ec] ss:$16 sps:$4 sm:$0xff]  }
 0x50b   :  { %7062 = vmatpush1.bf16.msra.mxu1 %v9218_v54  ;;  %7022 = vmatprep.subr.bf16.mxu0 %v9223_v59  ;;  %v9298_v55 = vld [vmem:[#allocation4 + $0xaec] ss:$16 sps:$4 sm:$0xff]   ;;  %v9293_v54 = vld [vmem:[#allocation4 + $0x8e8] ss:$16 sps:$4 sm:$0xff]  }
 0x50c   :  { %7063 = vmatprep.subr.bf16.mxu1 %v9226_v38  ;;  %v9296_v59 = vld [vmem:[#allocation4 + $0xae8] ss:$16 sps:$4 sm:$0xff]   ;;  %v9301_v38 = vld [vmem:[#allocation4 + $0x8cc] ss:$16 sps:$4 sm:$0xff]  }
 0x50e   :  { %7023 = vmatpush1.bf16.msra.mxu0 %v9221_v33  ;;  %v9304_v33 = vld [vmem:[#allocation4 + $0xacc] ss:$16 sps:$4 sm:$0xff]  }
 0x50f   :  { %7064 = vmatpush1.bf16.msra.mxu1 %v9224_v34  ;;  %7024 = vmatprep.subr.bf16.mxu0 %v9229_v21 }
 0x510   :  { %7065 = vmatprep.subr.bf16.mxu1 %v9232_v32 }
 0x512   :  { %7025 = vmatpush1.bf16.msra.mxu0 %v9227_v41  ;;  %v9299_v41 = vld [vmem:[#allocation4 + $0x8c8] ss:$16 sps:$4 sm:$0xff]  }
 0x513   :  { %7066 = vmatpush1.bf16.msra.mxu1 %v9230_v58  ;;  %7026 = vmatprep.subr.bf16.mxu0 %v9235_v60  ;;  %v9302_v58 = vld [vmem:[#allocation4 + $0xac8] ss:$16 sps:$4 sm:$0xff]  }
 0x514   :  { %7067 = vmatprep.subr.bf16.mxu1 %v9238_v39 }
 0x516   :  { %7027 = vmatpush1.bf16.msra.mxu0 %v9233_v57  ;;  %v9307_v57 = vld [vmem:[#allocation4 + $0x8ac] ss:$16 sps:$4 sm:$0xff]  }
 0x517   :  { %7068 = vmatpush1.bf16.msra.mxu1 %v9236_v43  ;;  %7028 = vmatprep.subr.bf16.mxu0 %v9241_v46  ;;  %v9310_v43 = vld [vmem:[#allocation4 + $0xaac] ss:$16 sps:$4 sm:$0xff]  }
 0x518   :  { %7069 = vmatprep.subr.bf16.mxu1 %v9244_v56 }
 0x51a   :  { %7029 = vmatpush1.bf16.msra.mxu0 %v9239_v49  ;;  %v9305_v49 = vld [vmem:[#allocation4 + $0x8a8] ss:$16 sps:$4 sm:$0xff]  }
 0x51b   :  { %7070 = vmatpush1.bf16.msra.mxu1 %v9242_v40  ;;  %7030 = vmatprep.subr.bf16.mxu0 %v9247_v13  ;;  %v9308_v40 = vld [vmem:[#allocation4 + $0xaa8] ss:$16 sps:$4 sm:$0xff]  }
 0x51c   :  { %7071 = vmatprep.subr.bf16.mxu1 %v9250_v50 }
 0x51e   :  { %7031 = vmatpush2.bf16.msra.mxu0 %v9245_v45  ;;  %v9313_v45 = vld [vmem:[#allocation4 + $0x88c] ss:$16 sps:$4 sm:$0xff]  }
 0x51f   :  { %7072 = vmatpush2.bf16.msra.mxu1 %v9248_v61  ;;  %7032 = vmatprep.subr.bf16.mxu0 %v9253_v63  ;;  %v9316_v61 = vld [vmem:[#allocation4 + $0xa8c] ss:$16 sps:$4 sm:$0xff]  }
 0x520   :  { %7073 = vmatprep.subr.bf16.mxu1 %v9256_v14  ;;  %v9322_v63 = vld [vmem:[#allocation4 + $0xa6c] ss:$16 sps:$4 sm:$0xff]   ;;  %v9317_v14 = vld [vmem:[#allocation4 + $0x868] ss:$16 sps:$4 sm:$0xff]  }
 0x522   :  { %7033 = vmatpush2.bf16.msra.mxu0 %v9251_v53  ;;  %v9320_v53 = vld [vmem:[#allocation4 + $0xa68] ss:$16 sps:$4 sm:$0xff]  }
 0x523   :  { %7074 = vmatpush2.bf16.msra.mxu1 %v9254_v3  ;;  %7034 = vmatprep.subr.bf16.mxu0 %v9259_v51  ;;  %v9325_v3 = vld [vmem:[#allocation4 + $0x84c] ss:$16 sps:$4 sm:$0xff]  }
 0x524   :  { %7075 = vmatprep.subr.bf16.mxu1 %v9262_v1  ;;  %v9328_v51 = vld [vmem:[#allocation4 + $0xa4c] ss:$16 sps:$4 sm:$0xff]   ;;  %v9323_v1 = vld [vmem:[#allocation4 + $0x848] ss:$16 sps:$4 sm:$0xff]  }
 0x526   :  { %7035 = vmatpush2.bf16.msra.mxu0 %v9257_v6  ;;  %v9326_v6 = vld [vmem:[#allocation4 + $0xa48] ss:$16 sps:$4 sm:$0xff]  }
 0x527   :  { %7076 = vmatpush2.bf16.msra.mxu1 %v9260_v2  ;;  %7036 = vmatprep.subr.bf16.mxu0 %v9265_v11  ;;  %v9331_v2 = vld [vmem:[#allocation4 + $0x82c] ss:$16 sps:$4 sm:$0xff]  }
 0x528   :  { %7077 = vmatprep.subr.bf16.mxu1 %v9268_v12  ;;  %v9334_v11 = vld [vmem:[#allocation4 + $0xa2c] ss:$16 sps:$4 sm:$0xff]   ;;  %v9329_v12 = vld [vmem:[#allocation4 + $0x828] ss:$16 sps:$4 sm:$0xff]  }
 0x52a   :  { %7037 = vmatpush2.bf16.msra.mxu0 %v9263_v15  ;;  %v9332_v15 = vld [vmem:[#allocation4 + $0xa28] ss:$16 sps:$4 sm:$0xff]  }
 0x52b   :  { %7078 = vmatpush2.bf16.msra.mxu1 %v9266_v16  ;;  %7038 = vmatprep.subr.bf16.mxu0 %v9271_v17  ;;  %v9337_v16 = vld [vmem:[#allocation4 + $0x80c] ss:$16 sps:$4 sm:$0xff]  }
 0x52c   :  { %7079 = vmatprep.subr.bf16.mxu1 %v9274_v18  ;;  %v9340_v17 = vld [vmem:[#allocation4 + $0xa0c] ss:$16 sps:$4 sm:$0xff]   ;;  %v9335_v18 = vld [vmem:[#allocation4 + $0x808] ss:$16 sps:$4 sm:$0xff]  }
 0x52e   :  { %7039 = vmatpush2.bf16.msra.mxu0 %v9269_v22  ;;  %v9338_v22 = vld [vmem:[#allocation4 + $0xa08] ss:$16 sps:$4 sm:$0xff]  }
 0x52f   :  { %7080 = vmatpush2.bf16.msra.mxu1 %v9272_v5  ;;  %7040 = vmatprep.subr.bf16.mxu0 %v9277_v23  ;;  %v9343_v5 = vld [vmem:[#allocation4 + $0x9ec] ss:$16 sps:$4 sm:$0xff]  }
 0x530   :  { %7081 = vmatprep.subr.bf16.mxu1 %v9280_v19  ;;  %v9346_v23 = vld [vmem:[#allocation4 + $0xbec] ss:$16 sps:$4 sm:$0xff]   ;;  %v9341_v19 = vld [vmem:[#allocation4 + $0x9e8] ss:$16 sps:$4 sm:$0xff]  }
 0x532   :  { %7041 = vmatpush2.bf16.msra.mxu0 %v9275_v24  ;;  %v9344_v24 = vld [vmem:[#allocation4 + $0xbe8] ss:$16 sps:$4 sm:$0xff]  }
 0x533   :  { %7082 = vmatpush2.bf16.msra.mxu1 %v9278_v62  ;;  %7042 = vmatprep.subr.bf16.mxu0 %v9283_v26  ;;  %v9349_v62 = vld [vmem:[#allocation4 + $0x9cc] ss:$16 sps:$4 sm:$0xff]  }
 0x534   :  { %7083 = vmatprep.subr.bf16.mxu1 %v9286_v9  ;;  %v9352_v26 = vld [vmem:[#allocation4 + $0xbcc] ss:$16 sps:$4 sm:$0xff]   ;;  %v9347_v9 = vld [vmem:[#allocation4 + $0x9c8] ss:$16 sps:$4 sm:$0xff]  }
 0x536   :  { %7043 = vmatpush2.bf16.msra.mxu0 %v9281_v37  ;;  %v9350_v37 = vld [vmem:[#allocation4 + $0xbc8] ss:$16 sps:$4 sm:$0xff]  }
 0x537   :  { %7084 = vmatpush2.bf16.msra.mxu1 %v9284_v20  ;;  %7044 = vmatprep.subr.bf16.mxu0 %v9289_v48  ;;  %v9355_v20 = vld [vmem:[#allocation4 + $0x9ac] ss:$16 sps:$4 sm:$0xff]  }
 0x538   :  { %7085 = vmatprep.subr.bf16.mxu1 %v9292_v8  ;;  %v9358_v48 = vld [vmem:[#allocation4 + $0xbac] ss:$16 sps:$4 sm:$0xff]   ;;  %v9353_v8 = vld [vmem:[#allocation4 + $0x9a8] ss:$16 sps:$4 sm:$0xff]  }
 0x53a   :  { %7045 = vmatpush2.bf16.msra.mxu0 %v9287_v28  ;;  %v9356_v28 = vld [vmem:[#allocation4 + $0xba8] ss:$16 sps:$4 sm:$0xff]  }
 0x53b   :  { %7086 = vmatpush2.bf16.msra.mxu1 %v9290_v36  ;;  %7096 = vmatprep.subr.bf16.mxu0 %v9295_v30  ;;  %v9361_v36 = vld [vmem:[#allocation4 + $0x98c] ss:$16 sps:$4 sm:$0xff]  }
 0x53c   :  { %7137 = vmatprep.subr.bf16.mxu1 %v9298_v55  ;;  %v9364_v30 = vld [vmem:[#allocation4 + $0xb8c] ss:$16 sps:$4 sm:$0xff]   ;;  %v9359_v55 = vld [vmem:[#allocation4 + $0x988] ss:$16 sps:$4 sm:$0xff]  }
 0x53d   :  { %v6802_v34 = vpop.f32.mrf.mxu0  ;;  %7047 = vmatmul.mubr.bf16.vlgmr.msra.gmra.mxu0 %v10394_v27 }
 0x53e   :  { %v6843_v21 = vpop.f32.mrf.mxu1  ;;  %7088 = vmatmul.mubr.bf16.vlgmr.msra.gmra.mxu1 %v10396_v42  ;;  %v6803_v32 = vadd.f32 %v6802_v34, %v10448_v25  ;;  %7097 = vmatpush1.bf16.msra.mxu0 %v9293_v54  ;;  %v9362_v54 = vld [vmem:[#allocation4 + $0xb88] ss:$16 sps:$4 sm:$0xff]  }
 0x53f   :  { %7138 = vmatpush1.bf16.msra.mxu1 %v9296_v59  ;;  %v6804_v60 = vpop.f32.mrf.mxu0  ;;  %7098 = vmatprep.subr.bf16.mxu0 %v9301_v38  ;;  %v9367_v59 = vld [vmem:[#allocation4 + $0x96c] ss:$16 sps:$4 sm:$0xff]   ;;  %v9368_v34 = vld [vmem:[#allocation4 + $0xb68] ss:$16 sps:$4 sm:$0xff]  }
 0x540   :  { %v6845_v39 = vpop.f32.mrf.mxu1  ;;  %7139 = vmatprep.subr.bf16.mxu1 %v9304_v33  ;;  %v10458_v46 = vadd.f32 %v6843_v21, %v6803_v32  ;;  %v6805_v56 = vadd.f32 %v6804_v60, %v10453_v47  ;;  %7128 = vmatprep.mubr.bf16.mxu0 %v10398_v35  ;;  %v9311_v47 = vld [vmem:[#allocation4 + $0x888] ss:$16 sps:$4 sm:$0xff]   ;;  %v9370_v38 = vld [vmem:[#allocation4 + $0xb6c] ss:$16 sps:$4 sm:$0xff]  }
 0x541   :  { %7169 = vmatprep.mubr.bf16.mxu1 %v10400_v31  ;;  %v6806_v27 = vpop.f32.mrf.mxu0  ;;  %v9314_v35 = vld [vmem:[#allocation4 + $0xa88] ss:$16 sps:$4 sm:$0xff]   ;;  %v9319_v31 = vld [vmem:[#allocation4 + $0x86c] ss:$16 sps:$4 sm:$0xff]  }
 0x542   :  { %v6847_v42 = vpop.f32.mrf.mxu1  ;;  %v10463_v25 = vadd.f32 %v6845_v39, %v6805_v56  ;;  %7099 = vmatpush1.bf16.msra.mxu0 %v9299_v41  ;;  %v9365_v33 = vld [vmem:[#allocation4 + $0x968] ss:$16 sps:$4 sm:$0xff]   ;;  %v9373_v21 = vld [vmem:[#allocation4 + $0x94c] ss:$16 sps:$4 sm:$0xff]  }
 0x543   :  { %7140 = vmatpush1.bf16.msra.mxu1 %v9302_v58  ;;  %v6807_v13 = vpop.f32.mrf.mxu0  ;;  %7100 = vmatprep.subr.bf16.mxu0 %v9307_v57  ;;  %v9376_v32 = vld [vmem:[#allocation4 + $0xb4c] ss:$16 sps:$4 sm:$0xff]   ;;  %v9371_v41 = vld [vmem:[#allocation4 + $0x948] ss:$16 sps:$4 sm:$0xff]  }
 0x544   :  { %v6848_v50 = vpop.f32.mrf.mxu1  ;;  %7141 = vmatprep.subr.bf16.mxu1 %v9310_v43  ;;  %v9374_v58 = vld [vmem:[#allocation4 + $0xb48] ss:$16 sps:$4 sm:$0xff]   ;;  %v9379_v60 = vld [vmem:[#allocation4 + $0x92c] ss:$16 sps:$4 sm:$0xff]  }
 0x545   :  { %v9382_v39 = vld [vmem:[#allocation4 + $0xb2c] ss:$16 sps:$4 sm:$0xff]   ;;  %v9377_v57 = vld [vmem:[#allocation4 + $0x928] ss:$16 sps:$4 sm:$0xff]  }
 0x546   :  { %7101 = vmatpush1.bf16.msra.mxu0 %v9305_v49  ;;  %v9380_v43 = vld [vmem:[#allocation4 + $0xb28] ss:$16 sps:$4 sm:$0xff]   ;;  %v9385_v56 = vld [vmem:[#allocation4 + $0x90c] ss:$16 sps:$4 sm:$0xff]  }
 0x547   :  { %7142 = vmatpush1.bf16.msra.mxu1 %v9308_v40  ;;  %7102 = vmatprep.subr.bf16.mxu0 %v9313_v45  ;;  %v9388_v27 = vld [vmem:[#allocation4 + $0xb0c] ss:$16 sps:$4 sm:$0xff]   ;;  %v9383_v42 = vld [vmem:[#allocation4 + $0x908] ss:$16 sps:$4 sm:$0xff]  }
 0x548   :  { %7143 = vmatprep.subr.bf16.mxu1 %v9316_v61  ;;  %v9386_v49 = vld [vmem:[#allocation4 + $0xb08] ss:$16 sps:$4 sm:$0xff]   ;;  %v9391_v40 = vld [vmem:[#allocation4 + $0xcec] ss:$16 sps:$4 sm:$0xff]  }
 0x549   :  { %v9394_v13 = vld [vmem:[#allocation4 + $0xeec] ss:$16 sps:$4 sm:$0xff]   ;;  %v9389_v50 = vld [vmem:[#allocation4 + $0xce8] ss:$16 sps:$4 sm:$0xff]  }
 0x54a   :  { %7103 = vmatpush1.bf16.msra.mxu0 %v9311_v47  ;;  %v9392_v45 = vld [vmem:[#allocation4 + $0xee8] ss:$16 sps:$4 sm:$0xff]   ;;  %v9397_v61 = vld [vmem:[#allocation4 + $0xccc] ss:$16 sps:$4 sm:$0xff]  }
 0x54b   :  { %7144 = vmatpush1.bf16.msra.mxu1 %v9314_v35  ;;  %7104 = vmatprep.subr.bf16.mxu0 %v9319_v31  ;;  %v9400_v47 = vld [vmem:[#allocation4 + $0xecc] ss:$16 sps:$4 sm:$0xff]  }
 0x54c   :  { %7145 = vmatprep.subr.bf16.mxu1 %v9322_v63 }
 0x54e   :  { %7105 = vmatpush1.bf16.msra.mxu0 %v9317_v14  ;;  %v9395_v14 = vld [vmem:[#allocation4 + $0xcc8] ss:$16 sps:$4 sm:$0xff]  }
 0x54f   :  { %7146 = vmatpush1.bf16.msra.mxu1 %v9320_v53  ;;  %7106 = vmatprep.subr.bf16.mxu0 %v9325_v3  ;;  %v9398_v53 = vld [vmem:[#allocation4 + $0xec8] ss:$16 sps:$4 sm:$0xff]  }
 0x550   :  { %7147 = vmatprep.subr.bf16.mxu1 %v9328_v51 }
 0x552   :  { %7107 = vmatpush1.bf16.msra.mxu0 %v9323_v1  ;;  %v9403_v1 = vld [vmem:[#allocation4 + $0xcac] ss:$16 sps:$4 sm:$0xff]  }
 0x553   :  { %7148 = vmatpush1.bf16.msra.mxu1 %v9326_v6  ;;  %7108 = vmatprep.subr.bf16.mxu0 %v9331_v2  ;;  %v9406_v6 = vld [vmem:[#allocation4 + $0xeac] ss:$16 sps:$4 sm:$0xff]  }
 0x554   :  { %7149 = vmatprep.subr.bf16.mxu1 %v9334_v11 }
 0x556   :  { %7109 = vmatpush1.bf16.msra.mxu0 %v9329_v12 }
 0x557   :  { %7150 = vmatpush1.bf16.msra.mxu1 %v9332_v15  ;;  %7110 = vmatprep.subr.bf16.mxu0 %v9337_v16  ;;  %v9401_v15 = vld [vmem:[#allocation4 + $0xca8] ss:$16 sps:$4 sm:$0xff]  }
 0x558   :  { %7151 = vmatprep.subr.bf16.mxu1 %v9340_v17  ;;  %v9404_v16 = vld [vmem:[#allocation4 + $0xea8] ss:$16 sps:$4 sm:$0xff]  }
 0x55a   :  { %7111 = vmatpush1.bf16.msra.mxu0 %v9335_v18 }
 0x55b   :  { %7152 = vmatpush1.bf16.msra.mxu1 %v9338_v22  ;;  %7112 = vmatprep.subr.bf16.mxu0 %v9343_v5  ;;  %v9409_v22 = vld [vmem:[#allocation4 + $0xc8c] ss:$16 sps:$4 sm:$0xff]   ;;  %v9410_v5 = vld [vmem:[#allocation4 + $0xe88] ss:$16 sps:$4 sm:$0xff]  }
 0x55c   :  { %7153 = vmatprep.subr.bf16.mxu1 %v9346_v23  ;;  %v9415_v23 = vld [vmem:[#allocation4 + $0xc6c] ss:$16 sps:$4 sm:$0xff]  }
 0x55e   :  { %7113 = vmatpush2.bf16.msra.mxu0 %v9341_v19  ;;  %v9418_v19 = vld [vmem:[#allocation4 + $0xe6c] ss:$16 sps:$4 sm:$0xff]  }
 0x55f   :  { %7154 = vmatpush2.bf16.msra.mxu1 %v9344_v24  ;;  %7114 = vmatprep.subr.bf16.mxu0 %v9349_v62  ;;  %v9413_v24 = vld [vmem:[#allocation4 + $0xc68] ss:$16 sps:$4 sm:$0xff]  }
 0x560   :  { %7155 = vmatprep.subr.bf16.mxu1 %v9352_v26  ;;  %v9416_v62 = vld [vmem:[#allocation4 + $0xe68] ss:$16 sps:$4 sm:$0xff]   ;;  %v9421_v26 = vld [vmem:[#allocation4 + $0xc4c] ss:$16 sps:$4 sm:$0xff]  }
 0x562   :  { %7115 = vmatpush2.bf16.msra.mxu0 %v9347_v9  ;;  %v9424_v9 = vld [vmem:[#allocation4 + $0xe4c] ss:$16 sps:$4 sm:$0xff]  }
 0x563   :  { %7156 = vmatpush2.bf16.msra.mxu1 %v9350_v37  ;;  %7116 = vmatprep.subr.bf16.mxu0 %v9355_v20  ;;  %v9419_v37 = vld [vmem:[#allocation4 + $0xc48] ss:$16 sps:$4 sm:$0xff]  }
 0x564   :  { %7157 = vmatprep.subr.bf16.mxu1 %v9358_v48  ;;  %v9422_v20 = vld [vmem:[#allocation4 + $0xe48] ss:$16 sps:$4 sm:$0xff]   ;;  %v9427_v48 = vld [vmem:[#allocation4 + $0xc2c] ss:$16 sps:$4 sm:$0xff]  }
 0x566   :  { %7117 = vmatpush2.bf16.msra.mxu0 %v9353_v8  ;;  %v9430_v8 = vld [vmem:[#allocation4 + $0xe2c] ss:$16 sps:$4 sm:$0xff]  }
 0x567   :  { %7158 = vmatpush2.bf16.msra.mxu1 %v9356_v28  ;;  %7118 = vmatprep.subr.bf16.mxu0 %v9361_v36  ;;  %v9425_v28 = vld [vmem:[#allocation4 + $0xc28] ss:$16 sps:$4 sm:$0xff]  }
 0x568   :  { %7159 = vmatprep.subr.bf16.mxu1 %v9364_v30  ;;  %v9428_v36 = vld [vmem:[#allocation4 + $0xe28] ss:$16 sps:$4 sm:$0xff]   ;;  %v9433_v30 = vld [vmem:[#allocation4 + $0xc0c] ss:$16 sps:$4 sm:$0xff]  }
 0x56a   :  { %7119 = vmatpush2.bf16.msra.mxu0 %v9359_v55  ;;  %v9436_v55 = vld [vmem:[#allocation4 + $0xe0c] ss:$16 sps:$4 sm:$0xff]  }
 0x56b   :  { %7160 = vmatpush2.bf16.msra.mxu1 %v9362_v54  ;;  %7120 = vmatprep.subr.bf16.mxu0 %v9367_v59  ;;  %v9431_v54 = vld [vmem:[#allocation4 + $0xc08] ss:$16 sps:$4 sm:$0xff]  }
 0x56c   :  { %7161 = vmatprep.subr.bf16.mxu1 %v9370_v38  ;;  %v9434_v59 = vld [vmem:[#allocation4 + $0xe08] ss:$16 sps:$4 sm:$0xff]   ;;  %v9439_v38 = vld [vmem:[#allocation4 + $0xdec] ss:$16 sps:$4 sm:$0xff]  }
 0x56e   :  { %7121 = vmatpush2.bf16.msra.mxu0 %v9365_v33  ;;  %v9442_v33 = vld [vmem:[#allocation4 + $0xfec] ss:$16 sps:$4 sm:$0xff]  }
 0x56f   :  { %7162 = vmatpush2.bf16.msra.mxu1 %v9368_v34  ;;  %7122 = vmatprep.subr.bf16.mxu0 %v9373_v21  ;;  %v9437_v34 = vld [vmem:[#allocation4 + $0xde8] ss:$16 sps:$4 sm:$0xff]  }
 0x570   :  { %7163 = vmatprep.subr.bf16.mxu1 %v9376_v32  ;;  %v9440_v21 = vld [vmem:[#allocation4 + $0xfe8] ss:$16 sps:$4 sm:$0xff]   ;;  %v9445_v32 = vld [vmem:[#allocation4 + $0xdcc] ss:$16 sps:$4 sm:$0xff]  }
 0x572   :  { %7123 = vmatpush2.bf16.msra.mxu0 %v9371_v41  ;;  %v9448_v41 = vld [vmem:[#allocation4 + $0xfcc] ss:$16 sps:$4 sm:$0xff]  }
 0x573   :  { %7164 = vmatpush2.bf16.msra.mxu1 %v9374_v58  ;;  %7124 = vmatprep.subr.bf16.mxu0 %v9379_v60  ;;  %v9443_v58 = vld [vmem:[#allocation4 + $0xdc8] ss:$16 sps:$4 sm:$0xff]  }
 0x574   :  { %7165 = vmatprep.subr.bf16.mxu1 %v9382_v39  ;;  %v9446_v60 = vld [vmem:[#allocation4 + $0xfc8] ss:$16 sps:$4 sm:$0xff]   ;;  %v9451_v39 = vld [vmem:[#allocation4 + $0xdac] ss:$16 sps:$4 sm:$0xff]  }
 0x576   :  { %7125 = vmatpush2.bf16.msra.mxu0 %v9377_v57  ;;  %v9454_v57 = vld [vmem:[#allocation4 + $0xfac] ss:$16 sps:$4 sm:$0xff]  }
 0x577   :  { %7166 = vmatpush2.bf16.msra.mxu1 %v9380_v43  ;;  %7126 = vmatprep.subr.bf16.mxu0 %v9385_v56  ;;  %v9449_v43 = vld [vmem:[#allocation4 + $0xda8] ss:$16 sps:$4 sm:$0xff]  }
 0x578   :  { %7167 = vmatprep.subr.bf16.mxu1 %v9388_v27  ;;  %v9452_v56 = vld [vmem:[#allocation4 + $0xfa8] ss:$16 sps:$4 sm:$0xff]   ;;  %v9457_v27 = vld [vmem:[#allocation4 + $0xd8c] ss:$16 sps:$4 sm:$0xff]  }
 0x57a   :  { %7127 = vmatpush2.bf16.msra.mxu0 %v9383_v42  ;;  %v9460_v42 = vld [vmem:[#allocation4 + $0xf8c] ss:$16 sps:$4 sm:$0xff]  }
 0x57b   :  { %7168 = vmatpush2.bf16.msra.mxu1 %v9386_v49  ;;  %7178 = vmatprep.subr.bf16.mxu0 %v9391_v40  ;;  %v9455_v49 = vld [vmem:[#allocation4 + $0xd88] ss:$16 sps:$4 sm:$0xff]  }
 0x57c   :  { %7219 = vmatprep.subr.bf16.mxu1 %v9394_v13  ;;  %v9458_v40 = vld [vmem:[#allocation4 + $0xf88] ss:$16 sps:$4 sm:$0xff]   ;;  %v9463_v13 = vld [vmem:[#allocation4 + $0xd6c] ss:$16 sps:$4 sm:$0xff]  }
 0x57d   :  { %v6884_v35 = vpop.f32.mrf.mxu0  ;;  %7129 = vmatmul.mubr.bf16.vlgmr.msra.gmra.mxu0 %v10416_v52 }
 0x57e   :  { %v6925_v31 = vpop.f32.mrf.mxu1  ;;  %7170 = vmatmul.mubr.bf16.vlgmr.msra.gmra.mxu1 %v10418_v0  ;;  %v6885_v63 = vadd.f32 %v6884_v35, %v10458_v46  ;;  %7179 = vmatpush1.bf16.msra.mxu0 %v9389_v50  ;;  %v9466_v50 = vld [vmem:[#allocation4 + $0xf6c] ss:$16 sps:$4 sm:$0xff]  }
 0x57f   :  { %7220 = vmatpush1.bf16.msra.mxu1 %v9392_v45  ;;  %v6886_v3 = vpop.f32.mrf.mxu0  ;;  %7180 = vmatprep.subr.bf16.mxu0 %v9397_v61  ;;  %v9461_v45 = vld [vmem:[#allocation4 + $0xd68] ss:$16 sps:$4 sm:$0xff]   ;;  %v9472_v35 = vld [vmem:[#allocation4 + $0xf4c] ss:$16 sps:$4 sm:$0xff]  }
 0x580   :  { %v6927_v51 = vpop.f32.mrf.mxu1  ;;  %7221 = vmatprep.subr.bf16.mxu1 %v9400_v47  ;;  %v10468_v2 = vadd.f32 %v6925_v31, %v6885_v63  ;;  %v6887_v11 = vadd.f32 %v6886_v3, %v10463_v25  ;;  %7210 = vmatprep.mubr.bf16.mxu0 %v10420_v7  ;;  %v9412_v25 = vld [vmem:[#allocation4 + $0xe8c] ss:$16 sps:$4 sm:$0xff]   ;;  %v9464_v61 = vld [vmem:[#allocation4 + $0xf68] ss:$16 sps:$4 sm:$0xff]  }
 0x581   :  { %7251 = vmatprep.mubr.bf16.mxu1 %v10422_v10  ;;  %v6888_v52 = vpop.f32.mrf.mxu0  ;;  %v9407_v10 = vld [vmem:[#allocation4 + $0xc88] ss:$16 sps:$4 sm:$0xff]   ;;  %v9469_v47 = vld [vmem:[#allocation4 + $0xd4c] ss:$16 sps:$4 sm:$0xff]  }
 0x582   :  { %v6929_v0 = vpop.f32.mrf.mxu1  ;;  %v7260_v46 = vmax.f32 %v10468_v2, 0.0  ;;  %v10474_v12 = vadd.f32 %v6927_v51, %v6887_v11  ;;  %7181 = vmatpush1.bf16.msra.mxu0 %v9395_v14  ;;  %v9467_v31 = vld [vmem:[#allocation4 + $0xd48] ss:$16 sps:$4 sm:$0xff]   ;;  %v9475_v14 = vld [vmem:[#allocation4 + $0xd2c] ss:$16 sps:$4 sm:$0xff]  }
 0x583   :  { %7222 = vmatpush1.bf16.msra.mxu1 %v9398_v53  ;;  %v6889_v17 = vpop.f32.mrf.mxu0  ;;  %7182 = vmatprep.subr.bf16.mxu0 %v9403_v1  ;;  %v9470_v63 = vld [vmem:[#allocation4 + $0xf48] ss:$16 sps:$4 sm:$0xff]   ;;  %v9478_v53 = vld [vmem:[#allocation4 + $0xf2c] ss:$16 sps:$4 sm:$0xff]   ;;  %v4034_v0 = vsub.s32 2, %v9933_v44 }
 0x584   :  { %v6930_v18 = vpop.f32.mrf.mxu1  ;;  %7223 = vmatprep.subr.bf16.mxu1 %v9406_v6  ;;  %v7261_v7 = vmax.f32 %v10474_v12, 0.0  ;;  %v9473_v3 = vld [vmem:[#allocation4 + $0xd28] ss:$16 sps:$4 sm:$0xff]   ;;  %v9481_v1 = vld [vmem:[#allocation4 + $0xd0c] ss:$16 sps:$4 sm:$0xff]  }
 0x585   :  { %v9476_v51 = vld [vmem:[#allocation4 + $0xf28] ss:$16 sps:$4 sm:$0xff]   ;;  %v9484_v6 = vld [vmem:[#allocation4 + $0xf0c] ss:$16 sps:$4 sm:$0xff]  }
 0x586   :  { %7183 = vmatpush1.bf16.msra.mxu0 %v9401_v15  ;;  %v9479_v11 = vld [vmem:[#allocation4 + $0xd08] ss:$16 sps:$4 sm:$0xff]   ;;  %v4038_v15 = vsub.s32 3, %v9933_v44 }
 0x587   :  { %7224 = vmatpush1.bf16.msra.mxu1 %v9404_v16  ;;  %7184 = vmatprep.subr.bf16.mxu0 %v9409_v22  ;;  %v9482_v52 = vld [vmem:[#allocation4 + $0xf08] ss:$16 sps:$4 sm:$0xff]  }
 0x588   :  { %7225 = vmatprep.subr.bf16.mxu1 %v9412_v25  ;;  %v9485_v16 = vld [vmem:[#allocation18] sm:$0xf] }
 0x589   :  { %v4035_v17 = vrot.slane %v9485_v16, %v4034_v0  ;;  %v4039_v18 = vrot.slane %v9485_v16, %v4038_v15 }
 0x58a   :  { %7185 = vmatpush1.bf16.msra.mxu0 %v9407_v10 }
 0x58b   :  { %7226 = vmatpush1.bf16.msra.mxu1 %v9410_v5  ;;  %7186 = vmatprep.subr.bf16.mxu0 %v9415_v23 }
 0x58c   :  { %7227 = vmatprep.subr.bf16.mxu1 %v9418_v19 }
 0x58e   :  { %7187 = vmatpush1.bf16.msra.mxu0 %v9413_v24 }
 0x58f   :  { %7228 = vmatpush1.bf16.msra.mxu1 %v9416_v62  ;;  %7188 = vmatprep.subr.bf16.mxu0 %v9421_v26 }
 0x590   :  { %7229 = vmatprep.subr.bf16.mxu1 %v9424_v9 }
 0x592   :  { %7189 = vmatpush1.bf16.msra.mxu0 %v9419_v37 }
 0x593   :  { %7230 = vmatpush1.bf16.msra.mxu1 %v9422_v20  ;;  %7190 = vmatprep.subr.bf16.mxu0 %v9427_v48 }
 0x594   :  { %7231 = vmatprep.subr.bf16.mxu1 %v9430_v8 }
 0x596   :  { %7191 = vmatpush1.bf16.msra.mxu0 %v9425_v28 }
 0x597   :  { %7232 = vmatpush1.bf16.msra.mxu1 %v9428_v36  ;;  %7192 = vmatprep.subr.bf16.mxu0 %v9433_v30 }
 0x598   :  { %7233 = vmatprep.subr.bf16.mxu1 %v9436_v55 }
 0x59a   :  { %7193 = vmatpush1.bf16.msra.mxu0 %v9431_v54 }
 0x59b   :  { %7234 = vmatpush1.bf16.msra.mxu1 %v9434_v59  ;;  %7194 = vmatprep.subr.bf16.mxu0 %v9439_v38 }
 0x59c   :  { %7235 = vmatprep.subr.bf16.mxu1 %v9442_v33 }
 0x59e   :  { %7195 = vmatpush2.bf16.msra.mxu0 %v9437_v34 }
 0x59f   :  { %7236 = vmatpush2.bf16.msra.mxu1 %v9440_v21  ;;  %7196 = vmatprep.subr.bf16.mxu0 %v9445_v32 }
 0x5a0   :  { %7237 = vmatprep.subr.bf16.mxu1 %v9448_v41 }
 0x5a2   :  { %7197 = vmatpush2.bf16.msra.mxu0 %v9443_v58 }
 0x5a3   :  { %7238 = vmatpush2.bf16.msra.mxu1 %v9446_v60  ;;  %7198 = vmatprep.subr.bf16.mxu0 %v9451_v39 }
 0x5a4   :  { %7239 = vmatprep.subr.bf16.mxu1 %v9454_v57 }
 0x5a6   :  { %7199 = vmatpush2.bf16.msra.mxu0 %v9449_v43 }
 0x5a7   :  { %7240 = vmatpush2.bf16.msra.mxu1 %v9452_v56  ;;  %7200 = vmatprep.subr.bf16.mxu0 %v9457_v27 }
 0x5a8   :  { %7241 = vmatprep.subr.bf16.mxu1 %v9460_v42 }
 0x5aa   :  { %7201 = vmatpush2.bf16.msra.mxu0 %v9455_v49 }
 0x5ab   :  { %7242 = vmatpush2.bf16.msra.mxu1 %v9458_v40  ;;  %7202 = vmatprep.subr.bf16.mxu0 %v9463_v13 }
 0x5ac   :  { %7243 = vmatprep.subr.bf16.mxu1 %v9466_v50 }
 0x5ae   :  { %7203 = vmatpush2.bf16.msra.mxu0 %v9461_v45 }
 0x5af   :  { %7244 = vmatpush2.bf16.msra.mxu1 %v9464_v61  ;;  %7204 = vmatprep.subr.bf16.mxu0 %v9469_v47 }
 0x5b0   :  { %7245 = vmatprep.subr.bf16.mxu1 %v9472_v35 }
 0x5b2   :  { %7205 = vmatpush2.bf16.msra.mxu0 %v9467_v31 }
 0x5b3   :  { %7246 = vmatpush2.bf16.msra.mxu1 %v9470_v63  ;;  %7206 = vmatprep.subr.bf16.mxu0 %v9475_v14 }
 0x5b4   :  { %7247 = vmatprep.subr.bf16.mxu1 %v9478_v53 }
 0x5b6   :  { %7207 = vmatpush2.bf16.msra.mxu0 %v9473_v3 }
 0x5b7   :  { %7248 = vmatpush2.bf16.msra.mxu1 %v9476_v51  ;;  %7208 = vmatprep.subr.bf16.mxu0 %v9481_v1 }
 0x5b8   :  { %7249 = vmatprep.subr.bf16.mxu1 %v9484_v6 }
 0x5ba   :  { %7209 = vmatpush2.bf16.msra.mxu0 %v9479_v11 }
 0x5bb   :  { %7250 = vmatpush2.bf16.msra.mxu1 %v9482_v52 }
 0x5bd   :  { %v6966_v22 = vpop.f32.mrf.mxu0  ;;  %7211 = vmatmul.mubr.bf16.vlgmr.msra.gmra.mxu0 %v10430_v29 }
 0x5be   :  { %v7007_v25 = vpop.f32.mrf.mxu1  ;;  %7252 = vmatmul.mubr.bf16.vlgmr.msra.gmra.mxu1 %v10432_v4  ;;  %v6967_v10 = vadd.f32 %v6966_v22, %v4035_v17 }
 0x5bf   :  { %v6968_v5 = vpop.f32.mrf.mxu0 }
 0x5c0   :  { %v7009_v23 = vpop.f32.mrf.mxu1  ;;  %v7008_v19 = vadd.f32 %v7007_v25, %v6967_v10  ;;  %v6969_v24 = vadd.f32 %v6968_v5, %v4039_v18 }
 0x5c1   :  { %v6970_v62 = vpop.f32.mrf.mxu0 }
 0x5c2   :  { %v7011_v26 = vpop.f32.mrf.mxu1  ;;  %v7010_v9 = vadd.f32 %v7009_v23, %v6969_v24 }
 0x5c3   :  { %v6971_v44 = vpop.f32.mrf.mxu0 }
 0x5c4   :  { %v7012_v37 = vpop.f32.mrf.mxu1 }
 0x5fd   :  { %v7048_v20 = vpop.f32.mrf.mxu0 }
 0x5fe   :  { %v7089_v48 = vpop.f32.mrf.mxu1  ;;  %v7049_v8 = vadd.f32 %v7048_v20, %v7008_v19 }
 0x5ff   :  { %v7050_v28 = vpop.f32.mrf.mxu0 }
 0x600   :  { %v7091_v36 = vpop.f32.mrf.mxu1  ;;  %v7090_v30 = vadd.f32 %v7089_v48, %v7049_v8  ;;  %v7051_v55 = vadd.f32 %v7050_v28, %v7010_v9 }
 0x601   :  { %v7052_v29 = vpop.f32.mrf.mxu0 }
 0x602   :  { %v7093_v54 = vpop.f32.mrf.mxu1  ;;  %v7092_v4 = vadd.f32 %v7091_v36, %v7051_v55 }
 0x603   :  { %v7053_v59 = vpop.f32.mrf.mxu0 }
 0x604   :  { %v7094_v38 = vpop.f32.mrf.mxu1 }
 0x63d   :  { %v7130_v33 = vpop.f32.mrf.mxu0 }
 0x63e   :  { %v7171_v34 = vpop.f32.mrf.mxu1  ;;  %v7131_v21 = vadd.f32 %v7130_v33, %v7090_v30 }
 0x63f   :  { %v7132_v32 = vpop.f32.mrf.mxu0 }
 0x640   :  { %v7173_v41 = vpop.f32.mrf.mxu1  ;;  %v7172_v58 = vadd.f32 %v7171_v34, %v7131_v21  ;;  %v7133_v56 = vadd.f32 %v7132_v32, %v7092_v4 }
 0x641   :  { %v7134_v60 = vpop.f32.mrf.mxu0 }
 0x642   :  { %v7175_v39 = vpop.f32.mrf.mxu1  ;;  %v7174_v49 = vadd.f32 %v7173_v41, %v7133_v56 }
 0x643   :  { %v7135_v57 = vpop.f32.mrf.mxu0 }
 0x644   :  { %v7176_v43 = vpop.f32.mrf.mxu1 }
 0x67d   :  { %v7212_v27 = vpop.f32.mrf.mxu0 }
 0x67e   :  { %v7253_v42 = vpop.f32.mrf.mxu1  ;;  %v7213_v40 = vadd.f32 %v7212_v27, %v7172_v58 }
 0x67f   :  { %v7214_v13 = vpop.f32.mrf.mxu0 }
 0x680   :  { %v7255_v50 = vpop.f32.mrf.mxu1  ;;  %v10481_v45 = vadd.f32 %v7253_v42, %v7213_v40  ;;  %v7215_v61 = vadd.f32 %v7214_v13, %v7174_v49 }
 0x681   :  { %v7216_v47 = vpop.f32.mrf.mxu0 }
 0x682   :  { %v7257_v35 = vpop.f32.mrf.mxu1  ;;  %v7262_v31 = vmax.f32 %v10481_v45, 0.0  ;;  %v7256_v63 = vadd.f32 %v7255_v50, %v7215_v61 }
 0x683   :  { %v7217_v14 = vpop.f32.mrf.mxu0 }
 0x684   :  { %v7258_v53 = vpop.f32.mrf.mxu1  ;;  %v7263_v3 = vmax.f32 %v7256_v63, 0.0 }
 0x685   :  { %9750 = dma.done.wait [#allocation6 + $0x1], 4096 }
 0x686   :  { %9751 = vsyncadd [#allocation6 + $0x1], 4294963200  ;;  %v7269_v51 = vpack.c.bf16 %v7261_v7, %v7261_v7  ;;  %v7271_v1 = vpack.c.bf16 %v7263_v3, %v7263_v3  ;;  %v9486_v6 = vld [vmem:[#allocation5 + $0x78] sm:$0xff]   ;;  %v9490_v15 = vld [vmem:[#allocation5 + $0x70] sm:$0xff]   ;;  %v7268_v59 = vpack.c.bf16 %v7260_v46, %v7260_v46  ;;  %v7270_v38 = vpack.c.bf16 %v7262_v31, %v7262_v31 }
 0x687   :  { %v9487_v11 = vld [vmem:[#allocation5 + $0xf8] sm:$0xff]   ;;  %8461 = vmatprep.subr.bf16.mxu0 %v9486_v6  ;;  %v9491_v16 = vld [vmem:[#allocation5 + $0xf0] sm:$0xff]   ;;  %v9494_v12 = vld [vmem:[#allocation5 + $0x68] sm:$0xff]   ;;  %vm7624_vm12 = vcmask 1041408   ;;  %v7629_v13 = vstv %s10511_s12 }
 0x688   :  { %7567 = vmatprep.mubr.bf16.mxu0 %v7269_v51  ;;  %7607 = vmatprep.mubr.bf16.mxu1 %v7271_v1  ;;  %v9488_v52 = vld [vmem:[#allocation5 + $0x38] sm:$0xff]   ;;  %v9492_v17 = vld [vmem:[#allocation5 + $0x30] sm:$0xff]   ;;  %v9495_v7 = vld [vmem:[#allocation5 + $0xe8] sm:$0xff]  }
 0x689   :  { %8483 = vmatprep.subr.bf16.mxu1 %v9487_v11  ;;  %v9489_v0 = vld [vmem:[#allocation5 + $0xb8] sm:$0xff]   ;;  %8462 = vmatpush3.bf16.msra.mxu0 %v9488_v52  ;;  %v9493_v18 = vld [vmem:[#allocation5 + $0xb0] sm:$0xff]   ;;  %v9496_v22 = vld [vmem:[#allocation5 + $0x28] sm:$0xff]  }
 0x68a   :  { %8484 = vmatpush3.bf16.msra.mxu1 %v9489_v0  ;;  %8463 = vmatprep.subr.bf16.mxu0 %v9490_v15  ;;  %v9497_v25 = vld [vmem:[#allocation5 + $0xa8] sm:$0xff]   ;;  %v9498_v10 = vld [vmem:[#allocation5 + $0x60] sm:$0xff]   ;;  %v9502_v24 = vld [vmem:[#allocation5 + $0x58] sm:$0xff]  }
 0x68b   :  { %8485 = vmatprep.subr.bf16.mxu1 %v9491_v16  ;;  %v9499_v5 = vld [vmem:[#allocation5 + $0xe0] sm:$0xff]   ;;  %v9503_v62 = vld [vmem:[#allocation5 + $0xd8] sm:$0xff]   ;;  %v9506_v44 = vld [vmem:[#allocation5 + $0x50] sm:$0xff]  }
 0x68c   :  { %v9500_v23 = vld [vmem:[#allocation5 + $0x20] sm:$0xff]   ;;  %v9504_v26 = vld [vmem:[#allocation5 + $0x18] sm:$0xff]   ;;  %v9507_v37 = vld [vmem:[#allocation5 + $0xd0] sm:$0xff]  }
 0x68d   :  { %8464 = vmatpush3.bf16.msra.mxu0 %v9492_v17  ;;  %v9501_v19 = vld [vmem:[#allocation5 + $0xa0] sm:$0xff]   ;;  %v9505_v9 = vld [vmem:[#allocation5 + $0x98] sm:$0xff]   ;;  %v9508_v20 = vld [vmem:[#allocation5 + $0x10] sm:$0xff]  }
 0x68e   :  { %8486 = vmatpush3.bf16.msra.mxu1 %v9493_v18  ;;  %8465 = vmatprep.subr.bf16.mxu0 %v9494_v12  ;;  %v9509_v48 = vld [vmem:[#allocation5 + $0x90] sm:$0xff]   ;;  %v9510_v8 = vld [vmem:[#allocation5 + $0x48] sm:$0xff]   ;;  %v9514_v55 = vld [vmem:[#allocation5 + $0x40] sm:$0xff]  }
 0x68f   :  { %8487 = vmatprep.subr.bf16.mxu1 %v9495_v7  ;;  %v9511_v28 = vld [vmem:[#allocation5 + $0xc8] sm:$0xff]   ;;  %v9515_v29 = vld [vmem:[#allocation5 + $0xc0] sm:$0xff]   ;;  %v8409_v27 = vld [vmem:[#allocation21] ss:$0 sm:$0xff] }
 0x690   :  { %v9512_v36 = vld [vmem:[#allocation5 + $0x8] sm:$0xff]   ;;  %v9516_v54 = vld [vmem:[#allocation5] sm:$0xff]  }
 0x691   :  { %8466 = vmatpush3.bf16.msra.mxu0 %v9496_v22  ;;  %v9513_v30 = vld [vmem:[#allocation5 + $0x88] sm:$0xff]   ;;  %v9517_v4 = vld [vmem:[#allocation5 + $0x80] sm:$0xff]  }
 0x692   :  { %8488 = vmatpush3.bf16.msra.mxu1 %v9497_v25  ;;  %8467 = vmatprep.subr.bf16.mxu0 %v9498_v10  ;;  %v8376_v21 = vld [vmem:[#allocation19] ss:$0 sm:$0xff] }
 0x693   :  { %8489 = vmatprep.subr.bf16.mxu1 %v9499_v5 }
 0x695   :  { %8468 = vmatpush3.bf16.msra.mxu0 %v9500_v23 }
 0x696   :  { %8490 = vmatpush3.bf16.msra.mxu1 %v9501_v19  ;;  %8469 = vmatprep.subr.bf16.mxu0 %v9502_v24 }
 0x697   :  { %8491 = vmatprep.subr.bf16.mxu1 %v9503_v62 }
 0x699   :  { %8470 = vmatpush3.bf16.msra.mxu0 %v9504_v26 }
 0x69a   :  { %8492 = vmatpush3.bf16.msra.mxu1 %v9505_v9  ;;  %8471 = vmatprep.subr.bf16.mxu0 %v9506_v44 }
 0x69b   :  { %8493 = vmatprep.subr.bf16.mxu1 %v9507_v37 }
 0x69d   :  { %8472 = vmatpush3.bf16.msra.mxu0 %v9508_v20 }
 0x69e   :  { %8494 = vmatpush3.bf16.msra.mxu1 %v9509_v48  ;;  %8473 = vmatprep.subr.bf16.mxu0 %v9510_v8 }
 0x69f   :  { %8495 = vmatprep.subr.bf16.mxu1 %v9511_v28 }
 0x6a1   :  { %8474 = vmatpush3.bf16.msra.mxu0 %v9512_v36 }
 0x6a2   :  { %8496 = vmatpush3.bf16.msra.mxu1 %v9513_v30  ;;  %8475 = vmatprep.subr.bf16.mxu0 %v9514_v55 }
 0x6a3   :  { %8497 = vmatprep.subr.bf16.mxu1 %v9515_v29 }
 0x6a5   :  { %8476 = vmatpush3.bf16.msra.mxu0 %v9516_v54 }
 0x6a6   :  { %8498 = vmatpush3.bf16.msra.mxu1 %v9517_v4 }
 0x6a8   :  { %7568 = vmatmul.mubr.bf16.vlgmr.msra.gmra.mxu0 %v7268_v59 }
 0x6a9   :  { %7608 = vmatmul.mubr.bf16.vlgmr.msra.gmra.mxu1 %v7270_v38 }
 0x768   :  { %v8477_v33 = vpop.f32.mrf.mxu0 }
 0x769   :  { %v8499_v34 = vpop.f32.mrf.mxu1 }
 0x76a   :  { %v8478_v32 = vpop.f32.mrf.mxu0 }
 0x76b   :  { %v8479_v41 = vadd.f32 %v8478_v32, %v8477_v33  ;;  %v8500_v58 = vpop.f32.mrf.mxu1 }
 0x76c   :  { %v8480_v60 = vpop.f32.mrf.mxu0  ;;  %v8501_v57 = vadd.f32 %v8500_v58, %v8499_v34 }
 0x76d   :  { %v7570_v39 = vadd.f32 %v8479_v41, %v8376_v21  ;;  %v8502_v2 = vpop.f32.mrf.mxu1 }
 0x76e   :  { %v8481_v43 = vpop.f32.mrf.mxu0 }
 0x76f   :  { %v7610_v46 = vadd.f32 %v8501_v57, %v7570_v39  ;;  %v8503_v56 = vpop.f32.mrf.mxu1 }
 0x771   :  { %v7615_v42 = vmax.f32 %v7610_v46, 0.0 }
 0x773   :  { %v7623_v49 = vmul.f32 %v8409_v27, %v7615_v42 }
 0x775   :  { %v7625_v40 = vsel %vm7624_vm12, %v7623_v49, 0.0 }
 0x776   :  { %7626 = vadd.xlane.f32.xlu0 %v7625_v40 }
 0x7ff   :  { %v7627_v50 = vpop.xlane.xlu0 %7626 }
 0x800   :  { %v7630_v45 = vadd.f32 %v7629_v13, %v7627_v50 }
 0x802   :  { %7631 = vst [vmem:[%s10512_s13] sm:$0x3] %v7630_v45 }
 0x803   :  { %7636 = vsyncpa [#allocation9], 1 }
 0x804   :  { %7637 = vsyncpa [#allocation11], 1 }
 0x805   :  { %7638 = vsyncpa [#allocation14], 1 }
 0x806   :  { %7639 = vsyncpa [#allocation17], 1 }
 0x807   :  { %7640 = vsyncpa [#allocation20], 1 }
 0x808   :  { %7641 = vsyncmov [#allocation6] }
 0x80b   :  { %s7642_s3 = vpop.sfrf %7641 }
 0x80c   :  { %p8410_p13 = scmp.ne.s32.totalorder %s7642_s3, 0 }
 0x80e   :  { %7646 = shalt.err (%p8410_p13)  }
 0x80f   :  { %7648 = vsyncmov [#allocation6 + $0x1] }
 0x812   :  { %s7649_s28 = vpop.sfrf %7648 }
 0x813   :  { %p8411_p0 = scmp.ne.s32.totalorder %s7649_s28, 0 }
 0x815   :  { %7653 = shalt.err (%p8411_p0)  }

</bundles_post_ra>
